<compile_context>
chip_gen: v7x
topology: tpu7x:2x2x1
jax: 0.10.0
libtpu: 0.0.40
codegen_flags: <defaults>
</compile_context>

<pallas_src>
import functools

import jax
import jax.numpy as jnp
from jax.experimental import pallas as pl
from jax.experimental.pallas import tpu as pltpu


# ---------------------------------------------------------------------------
# Fused kernel: conv-as-matmul + max/min pool + 3-layer MLP, per batch tile
# ---------------------------------------------------------------------------
def fused_kernel(patches_ref, wcol_ref, bconv2_ref,
                 w1_ref, b1_ref, w2_ref, b2_ref, w3_ref, b3_ref,
                 out_ref, *, b_tile, p_pad, c_pad, group):
    wcol = wcol_ref[...]                                   # (kk, c_pad) bf16

    # ---- conv + global max/min pool, per small image group -----------------
    feats = []
    for g in range(b_tile // group):
        r0 = g * group * p_pad
        seg = patches_ref[0, r0:r0 + group * p_pad, :]     # (group*p_pad, kk) bf16
        conv = jnp.dot(seg, wcol,
                       preferred_element_type=jnp.float32)  # (group*p_pad, c_pad) f32
        conv = conv.reshape(group, p_pad, c_pad)
        mx = jnp.max(conv, axis=1)                          # (group, c_pad)
        mn = jnp.min(conv, axis=1)                          # (group, c_pad)
        feats.append(jnp.concatenate([mx, mn], axis=-1))    # lane-dense (group, 2*c_pad)

    # (b_tile, 2*c_pad) f32; conv bias applied post-pool (identical result)
    feat = jnp.concatenate(feats, axis=0) + bconv2_ref[...]

    # ---- 3-layer MLP on this tile's rows (dropout: identity in eval mode) --
    h = jnp.maximum(
        jnp.dot(feat.astype(jnp.bfloat16), w1_ref[...],
                preferred_element_type=jnp.float32) + b1_ref[...], 0.0)
    h = jnp.maximum(
        jnp.dot(h.astype(jnp.bfloat16), w2_ref[...],
                preferred_element_type=jnp.float32) + b2_ref[...], 0.0)
    out_ref[...] = (jnp.dot(h.astype(jnp.bfloat16), w3_ref[...],
                            preferred_element_type=jnp.float32) + b3_ref[...])


# ---------------------------------------------------------------------------
# Glue
# ---------------------------------------------------------------------------
def _round_up(v, m):
    return (v + m - 1) // m * m


def _pad_axis(a, axis, target, mode="zeros"):
    pad = target - a.shape[axis]
    if pad <= 0:
        return a
    widths = [(0, 0)] * a.ndim
    widths[axis] = (0, pad)
    if mode == "edge":
        return jnp.pad(a, widths, mode="edge")
    return jnp.pad(a, widths)


def _im2col(x, ker):
    # x: (N, 1, H, W) -> (N, H_out*W_out, ker*ker); tap order matches
    # conv_w.reshape(n_kers, ker*ker) row-major order.
    n, _, h, w = x.shape
    ho, wo = h - ker + 1, w - ker + 1
    cols = []
    for di in range(ker):
        for dj in range(ker):
            cols.append(x[:, 0, di:di + ho, dj:dj + wo])
    patches = jnp.stack(cols, axis=-1)                     # (N, Ho, Wo, KK)
    return patches.reshape(n, ho * wo, ker * ker)


@functools.partial(jax.jit, static_argnames=("ker_size",))
def cnniqa_forward(x, params, ker_size=7):
    # x.view(-1, x.size(-3), x.size(-2), x.size(-1))
    x = x.reshape((-1,) + x.shape[-3:])
    n = x.shape[0]
    c = params["conv_w"].shape[0]
    kk = ker_size * ker_size
    n1 = params["w1"].shape[1]
    n2 = params["w2"].shape[1]

    # ---- static, TPU-friendly sizes ----
    h_img, w_img = x.shape[-2], x.shape[-1]
    p = (h_img - ker_size + 1) * (w_img - ker_size + 1)
    p_pad = _round_up(p, 8)            # sublane-aligned per-image row count
    c_pad = _round_up(c, 64)           # 2*c_pad is a multiple of 128 lanes
    n1_pad = _round_up(n1, 128)        # lane-dense fc1 width
    n2_pad = _round_up(n2, 128)        # lane-dense fc2 width
    out_pad = 128                      # lane-dense final output
    group = 8                          # images fused per conv matmul

    # Adaptive batch tile: as large as a ~6 MiB-per-buffer patch-block budget
    # allows (capped at 64, multiple of `group`), never over-padding tiny
    # batches.  Keeps double-buffered patches well inside the 32 MiB scoped
    # VMEM on every generation (incl. v7x's 64 MiB physical).
    per_img_bytes = p_pad * kk * 2     # bf16
    budget = 6 * 1024 * 1024
    fit = max(group, (budget // max(per_img_bytes, 1)) // group * group)
    b_tile = int(min(64, fit))
    b_tile = int(min(b_tile, _round_up(n, group)))
    b_tile = max(group, b_tile // group * group)

    n_pad = _round_up(n, b_tile)
    num_tiles = n_pad // b_tile

    # ---- patches: bf16 im2col (no KK padding!), batch/patch-row pads -------
    xb = x.astype(jnp.bfloat16)                            # cast BEFORE im2col
    patches = _im2col(xb, ker_size)                        # (n, p, kk) bf16
    patches = _pad_axis(patches, 0, n_pad)                 # zero images
    patches = _pad_axis(patches, 1, p_pad, mode="edge")    # replicate last patch
    patches = patches.reshape(num_tiles, b_tile * p_pad, kk)

    # ---- conv weights as (kk, c_pad) column matrix, bias as (1, 2*c_pad) ---
    wcol = params["conv_w"].reshape(c, kk).T               # (kk, c)
    wcol = _pad_axis(wcol, 1, c_pad).astype(jnp.bfloat16)  # (kk, c_pad)
    bconv = _pad_axis(params["conv_b"].reshape(1, c), 1, c_pad)      # (1, c_pad) f32
    bconv2 = jnp.concatenate([bconv, bconv], axis=-1)                # (1, 2*c_pad)

    # ---- fc weights (padded to feat / lane-dense layout, bf16) -------------
    w1 = params["w1"]                                      # (2c, n1)
    w1p = jnp.zeros((2 * c_pad, n1_pad), jnp.float32)
    w1p = w1p.at[:c, :n1].set(w1[:c]).at[c_pad:c_pad + c, :n1].set(w1[c:])
    w1p = w1p.astype(jnp.bfloat16)
    b1p = _pad_axis(params["b1"].reshape(1, n1), 1, n1_pad)           # f32
    w2p = _pad_axis(_pad_axis(params["w2"], 0, n1_pad), 1, n2_pad)
    w2p = w2p.astype(jnp.bfloat16)
    b2p = _pad_axis(params["b2"].reshape(1, n2), 1, n2_pad)           # f32
    w3p = _pad_axis(_pad_axis(params["w3"], 0, n2_pad), 1, out_pad)
    w3p = w3p.astype(jnp.bfloat16)
    b3p = _pad_axis(params["b3"].reshape(1, 1), 1, out_pad)           # f32

    kernel = functools.partial(fused_kernel, b_tile=b_tile, p_pad=p_pad,
                               c_pad=c_pad, group=group)

    out = pl.pallas_call(
        kernel,
        out_shape=jax.ShapeDtypeStruct((n_pad, out_pad), jnp.float32),
        grid=(num_tiles,),
        in_specs=[
            pl.BlockSpec((1, b_tile * p_pad, kk), lambda i: (i, 0, 0)),
            pl.BlockSpec((kk, c_pad), lambda i: (0, 0)),
            pl.BlockSpec((1, 2 * c_pad), lambda i: (0, 0)),
            pl.BlockSpec((2 * c_pad, n1_pad), lambda i: (0, 0)),
            pl.BlockSpec((1, n1_pad), lambda i: (0, 0)),
            pl.BlockSpec((n1_pad, n2_pad), lambda i: (0, 0)),
            pl.BlockSpec((1, n2_pad), lambda i: (0, 0)),
            pl.BlockSpec((n2_pad, out_pad), lambda i: (0, 0)),
            pl.BlockSpec((1, out_pad), lambda i: (0, 0)),
        ],
        out_specs=pl.BlockSpec((b_tile, out_pad), lambda i: (i, 0)),
        compiler_params=pltpu.CompilerParams(
            dimension_semantics=("parallel",),
            vmem_limit_bytes=32 * 1024 * 1024),
    )(patches, wcol, bconv2, w1p, b1p, w2p, b2p, w3p, b3p)

    return out[:n, :1]


# ---------------------------------------------------------------------------
# Pure-JAX reference (f32, HIGHEST precision)
# ---------------------------------------------------------------------------
def reference_forward(x, params):
    x = x.reshape((-1,) + x.shape[-3:]).astype(jnp.float32)
    conv = jax.lax.conv_general_dilated(
        x, params["conv_w"], window_strides=(1, 1), padding="VALID",
        dimension_numbers=("NCHW", "OIHW", "NCHW"),
        precision=jax.lax.Precision.HIGHEST)
    conv = conv + params["conv_b"][None, :, None, None]
    h1 = jnp.max(conv, axis=(2, 3))
    h2 = jnp.min(conv, axis=(2, 3))
    h = jnp.concatenate([h1, h2], axis=1)
    hp = jax.lax.Precision.HIGHEST
    h = jnp.maximum(jnp.dot(h, params["w1"], precision=hp) + params["b1"], 0.0)
    h = jnp.maximum(jnp.dot(h, params["w2"], precision=hp) + params["b2"], 0.0)
    return jnp.dot(h, params["w3"], precision=hp) + params["b3"]


def init_params(key, ker_size=7, n_kers=50, n1_nodes=800, n2_nodes=800):
    ks = jax.random.split(key, 8)

    def dense(k, fan_in, shape):
        return jax.random.normal(k, shape, jnp.float32) / jnp.sqrt(fan_in)

    return {
        "conv_w": dense(ks[0], ker_size * ker_size,
                        (n_kers, 1, ker_size, ker_size)),
        "conv_b": dense(ks[1], ker_size * ker_size, (n_kers,)),
        "w1": dense(ks[2], 2 * n_kers, (2 * n_kers, n1_nodes)),
        "b1": dense(ks[3], 2 * n_kers, (1, n1_nodes)),
        "w2": dense(ks[4], n1_nodes, (n1_nodes, n2_nodes)),
        "b2": dense(ks[5], n1_nodes, (1, n2_nodes)),
        "w3": dense(ks[6], n2_nodes, (n2_nodes, 1)),
        "b3": dense(ks[7], n2_nodes, (1, 1)),
    }


if __name__ == "__main__":
    key = jax.random.PRNGKey(0)
    k_x, k_p = jax.random.split(key)

    # Small input consistent with the module: (batch=2, channels=1, 16, 16).
    x = jax.random.normal(k_x, (2, 1, 16, 16), jnp.float32)
    params = init_params(k_p, ker_size=7, n_kers=50,
                         n1_nodes=800, n2_nodes=800)

    q = jax.block_until_ready(cnniqa_forward(x, params, ker_size=7))
    q_ref = jax.block_until_ready(reference_forward(x, params))

    assert q.shape == (2, 1), q.shape
    # Kernel uses bf16 MXU inputs (patches + weights) with f32 accumulation;
    # tolerance accounts for bf16 quantization through 4 chained matmuls vs
    # the f32 HIGHEST-precision reference.
    assert jnp.allclose(q, q_ref, rtol=1e-1, atol=1e-1), (q, q_ref)

    print("KERNEL_OK")
</pallas_src>

<mosaic_0001>
module attributes {stable_mosaic.version = 11 : i64} {
  func.func @fused_kernel(%arg0: i32, %arg1: memref<1x832x49xbf16, #tpu.memory_space<vmem>>, %arg2: memref<49x64xbf16, #tpu.memory_space<vmem>>, %arg3: memref<1x128xf32, #tpu.memory_space<vmem>>, %arg4: memref<128x896xbf16, #tpu.memory_space<vmem>>, %arg5: memref<1x896xf32, #tpu.memory_space<vmem>>, %arg6: memref<896x896xbf16, #tpu.memory_space<vmem>>, %arg7: memref<1x896xf32, #tpu.memory_space<vmem>>, %arg8: memref<896x128xbf16, #tpu.memory_space<vmem>>, %arg9: memref<1x128xf32, #tpu.memory_space<vmem>>, %arg10: memref<8x128xf32, #tpu.memory_space<vmem>>) attributes {dimension_semantics = [#tpu.dimension_semantics<parallel>], iteration_bounds = array<i64: 1>, scalar_prefetch = 0 : i64, scratch_operands = 0 : i64, tpu.core_type = #tpu.core_type<tc>, window_params = [{transform_indices = @transform_0, window_bounds = array<i64: 1, 832, 49>}, {pipeline_mode = #tpu.pipeline_mode<synchronous>, transform_indices = @transform_1, window_bounds = array<i64: 49, 64>}, {pipeline_mode = #tpu.pipeline_mode<synchronous>, transform_indices = @transform_2, window_bounds = array<i64: 1, 128>}, {pipeline_mode = #tpu.pipeline_mode<synchronous>, transform_indices = @transform_3, window_bounds = array<i64: 128, 896>}, {pipeline_mode = #tpu.pipeline_mode<synchronous>, transform_indices = @transform_4, window_bounds = array<i64: 1, 896>}, {pipeline_mode = #tpu.pipeline_mode<synchronous>, transform_indices = @transform_5, window_bounds = array<i64: 896, 896>}, {pipeline_mode = #tpu.pipeline_mode<synchronous>, transform_indices = @transform_6, window_bounds = array<i64: 1, 896>}, {pipeline_mode = #tpu.pipeline_mode<synchronous>, transform_indices = @transform_7, window_bounds = array<i64: 896, 128>}, {pipeline_mode = #tpu.pipeline_mode<synchronous>, transform_indices = @transform_8, window_bounds = array<i64: 1, 128>}, {transform_indices = @transform_9, window_bounds = array<i64: 8, 128>}]} {
    %c0 = arith.constant 0 : index
    %c0_0 = arith.constant 0 : index
    %0 = vector.load %arg2[%c0, %c0_0] : memref<49x64xbf16, #tpu.memory_space<vmem>>, vector<49x64xbf16>
    %c0_1 = arith.constant 0 : index
    %c0_2 = arith.constant 0 : index
    %c0_3 = arith.constant 0 : index
    %1 = vector.load %arg1[%c0_1, %c0_2, %c0_3] : memref<1x832x49xbf16, #tpu.memory_space<vmem>>, vector<1x832x49xbf16>
    %2 = vector.shape_cast %1 : vector<1x832x49xbf16> to vector<832x49xbf16>
    %cst = arith.constant dense<0.000000e+00> : vector<832x64xf32>
    %3 = tpu.matmul %2, %0, %cst {dimension_numbers = #tpu.dot_dimension_numbers<[1], [0], [0], [1], [0, 0, 1, 1], [], []>} : vector<832x49xbf16>, vector<49x64xbf16>, vector<832x64xf32> -> vector<832x64xf32>
    %4 = vector.shape_cast %3 : vector<832x64xf32> to vector<8x104x64xf32>
    %cst_4 = arith.constant dense<0xFF800000> : vector<8x64xf32>
    %5 = vector.multi_reduction <maximumf>, %4, %cst_4 [1] : vector<8x104x64xf32> to vector<8x64xf32>
    %cst_5 = arith.constant dense<0x7F800000> : vector<8x64xf32>
    %6 = vector.multi_reduction <minimumf>, %4, %cst_5 [1] : vector<8x104x64xf32> to vector<8x64xf32>
    %7 = tpu.concatenate %5, %6 in 1 : vector<8x64xf32>, vector<8x64xf32> -> vector<8x128xf32>
    %c0_6 = arith.constant 0 : index
    %c0_7 = arith.constant 0 : index
    %8 = vector.load %arg3[%c0_6, %c0_7] : memref<1x128xf32, #tpu.memory_space<vmem>>, vector<1x128xf32>
    %9 = vector.broadcast %8 : vector<1x128xf32> to vector<8x128xf32>
    %10 = arith.addf %7, %9 : vector<8x128xf32>
    %11 = arith.truncf %10 : vector<8x128xf32> to vector<8x128xbf16>
    %c0_8 = arith.constant 0 : index
    %c0_9 = arith.constant 0 : index
    %12 = vector.load %arg4[%c0_8, %c0_9] : memref<128x896xbf16, #tpu.memory_space<vmem>>, vector<128x896xbf16>
    %cst_10 = arith.constant dense<0.000000e+00> : vector<8x896xf32>
    %13 = tpu.matmul %11, %12, %cst_10 {dimension_numbers = #tpu.dot_dimension_numbers<[1], [0], [0], [1], [0, 0, 1, 1], [], []>} : vector<8x128xbf16>, vector<128x896xbf16>, vector<8x896xf32> -> vector<8x896xf32>
    %c0_11 = arith.constant 0 : index
    %c0_12 = arith.constant 0 : index
    %14 = vector.load %arg5[%c0_11, %c0_12] : memref<1x896xf32, #tpu.memory_space<vmem>>, vector<1x896xf32>
    %15 = vector.broadcast %14 : vector<1x896xf32> to vector<8x896xf32>
    %16 = arith.addf %13, %15 : vector<8x896xf32>
    %cst_13 = arith.constant 0.000000e+00 : f32
    %17 = vector.broadcast %cst_13 : f32 to vector<8x896xf32>
    %18 = arith.maximumf %16, %17 : vector<8x896xf32>
    %19 = arith.truncf %18 : vector<8x896xf32> to vector<8x896xbf16>
    %c0_14 = arith.constant 0 : index
    %c0_15 = arith.constant 0 : index
    %20 = vector.load %arg6[%c0_14, %c0_15] : memref<896x896xbf16, #tpu.memory_space<vmem>>, vector<896x896xbf16>
    %cst_16 = arith.constant dense<0.000000e+00> : vector<8x896xf32>
    %21 = tpu.matmul %19, %20, %cst_16 {dimension_numbers = #tpu.dot_dimension_numbers<[1], [0], [0], [1], [0, 0, 1, 1], [], []>} : vector<8x896xbf16>, vector<896x896xbf16>, vector<8x896xf32> -> vector<8x896xf32>
    %c0_17 = arith.constant 0 : index
    %c0_18 = arith.constant 0 : index
    %22 = vector.load %arg7[%c0_17, %c0_18] : memref<1x896xf32, #tpu.memory_space<vmem>>, vector<1x896xf32>
    %23 = vector.broadcast %22 : vector<1x896xf32> to vector<8x896xf32>
    %24 = arith.addf %21, %23 : vector<8x896xf32>
    %cst_19 = arith.constant 0.000000e+00 : f32
    %25 = vector.broadcast %cst_19 : f32 to vector<8x896xf32>
    %26 = arith.maximumf %24, %25 : vector<8x896xf32>
    %27 = arith.truncf %26 : vector<8x896xf32> to vector<8x896xbf16>
    %c0_20 = arith.constant 0 : index
    %c0_21 = arith.constant 0 : index
    %28 = vector.load %arg8[%c0_20, %c0_21] : memref<896x128xbf16, #tpu.memory_space<vmem>>, vector<896x128xbf16>
    %cst_22 = arith.constant dense<0.000000e+00> : vector<8x128xf32>
    %29 = tpu.matmul %27, %28, %cst_22 {dimension_numbers = #tpu.dot_dimension_numbers<[1], [0], [0], [1], [0, 0, 1, 1], [], []>} : vector<8x896xbf16>, vector<896x128xbf16>, vector<8x128xf32> -> vector<8x128xf32>
    %c0_23 = arith.constant 0 : index
    %c0_24 = arith.constant 0 : index
    %30 = vector.load %arg9[%c0_23, %c0_24] : memref<1x128xf32, #tpu.memory_space<vmem>>, vector<1x128xf32>
    %31 = vector.broadcast %30 : vector<1x128xf32> to vector<8x128xf32>
    %32 = arith.addf %29, %31 : vector<8x128xf32>
    %c0_25 = arith.constant 0 : index
    %c0_26 = arith.constant 0 : index
    %33 = vector.load %arg10[%c0_25, %c0_26] : memref<8x128xf32, #tpu.memory_space<vmem>>, vector<8x128xf32>
    tpu.vector_store %arg10[%c0_25, %c0_26], %32 {strides = array<i32>} : memref<8x128xf32, #tpu.memory_space<vmem>>, vector<8x128xf32>,
    return
  }
  func.func @transform_0(%arg0: i32) -> (i32, i32, i32) {
    %c0_i32 = arith.constant 0 : i32
    %c0_i32_0 = arith.constant 0 : i32
    %c0_i32_1 = arith.constant 0 : i32
    return %arg0, %c0_i32, %c0_i32_0 : i32, i32, i32
  }
  func.func @transform_1(%arg0: i32) -> (i32, i32) {
    %c0_i32 = arith.constant 0 : i32
    %c0_i32_0 = arith.constant 0 : i32
    %c0_i32_1 = arith.constant 0 : i32
    return %c0_i32, %c0_i32_0 : i32, i32
  }
  func.func @transform_2(%arg0: i32) -> (i32, i32) {
    %c0_i32 = arith.constant 0 : i32
    %c0_i32_0 = arith.constant 0 : i32
    %c0_i32_1 = arith.constant 0 : i32
    return %c0_i32, %c0_i32_0 : i32, i32
  }
  func.func @transform_3(%arg0: i32) -> (i32, i32) {
    %c0_i32 = arith.constant 0 : i32
    %c0_i32_0 = arith.constant 0 : i32
    %c0_i32_1 = arith.constant 0 : i32
    return %c0_i32, %c0_i32_0 : i32, i32
  }
  func.func @transform_4(%arg0: i32) -> (i32, i32) {
    %c0_i32 = arith.constant 0 : i32
    %c0_i32_0 = arith.constant 0 : i32
    %c0_i32_1 = arith.constant 0 : i32
    return %c0_i32, %c0_i32_0 : i32, i32
  }
  func.func @transform_5(%arg0: i32) -> (i32, i32) {
    %c0_i32 = arith.constant 0 : i32
    %c0_i32_0 = arith.constant 0 : i32
    %c0_i32_1 = arith.constant 0 : i32
    return %c0_i32, %c0_i32_0 : i32, i32
  }
  func.func @transform_6(%arg0: i32) -> (i32, i32) {
    %c0_i32 = arith.constant 0 : i32
    %c0_i32_0 = arith.constant 0 : i32
    %c0_i32_1 = arith.constant 0 : i32
    return %c0_i32, %c0_i32_0 : i32, i32
  }
  func.func @transform_7(%arg0: i32) -> (i32, i32) {
    %c0_i32 = arith.constant 0 : i32
    %c0_i32_0 = arith.constant 0 : i32
    %c0_i32_1 = arith.constant 0 : i32
    return %c0_i32, %c0_i32_0 : i32, i32
  }
  func.func @transform_8(%arg0: i32) -> (i32, i32) {
    %c0_i32 = arith.constant 0 : i32
    %c0_i32_0 = arith.constant 0 : i32
    %c0_i32_1 = arith.constant 0 : i32
    return %c0_i32, %c0_i32_0 : i32, i32
  }
  func.func @transform_9(%arg0: i32) -> (i32, i32) {
    %c0_i32 = arith.constant 0 : i32
    %c0_i32_0 = arith.constant 0 : i32
    return %arg0, %c0_i32 : i32, i32
  }
}

</mosaic_0001>

<bundles_post_ra>
// kernel: cnniqa_forward.1
= control target key start
LH: loop header
LB: loop body
LE: loop exit
PB: predicated region body
PF: predicated region fallthrough
CT: control target
= control target key end

     0   :  { %v7737_v1 = vmov 0   ;;  %vm582_vm0 = vcmask 1040384   ;;  %vm425_vm1 = vcmask 400384   ;;  %vm1037_vm2 = vcmask 523264   ;;  %s9931_s1 = inlined_call_operand.vmem [shape: bf16[49,64], index: 1, kind: input, shape index: {}]   ;;  %s9932_s0 = inlined_call_operand.vmem [shape: bf16[1,832,49], index: 0, kind: input, shape index: {}]   ;;  %s9933_s3 = inlined_call_operand.vmem [shape: bf16[128,896], index: 3, kind: input, shape index: {}]   ;;  %s9934_s5 = inlined_call_operand.vmem [shape: bf16[896,896], index: 5, kind: input, shape index: {}]   ;;  %s9935_s2 = inlined_call_operand.vmem [shape: f32[1,128], index: 2, kind: input, shape index: {}]   ;;  %s9936_s4 = inlined_call_operand.vmem [shape: f32[1,896], index: 4, kind: input, shape index: {}]   ;;  %s9937_s7 = inlined_call_operand.vmem [shape: bf16[896,128], index: 7, kind: input, shape index: {}]   ;;  %s9938_s6 = inlined_call_operand.vmem [shape: f32[1,896], index: 6, kind: input, shape index: {}]   ;;  %s9939_s8 = inlined_call_operand.vmem [shape: f32[1,128], index: 8, kind: input, shape index: {}]   ;;  %s9940_s9 = inlined_call_operand.vmem [shape: f32[8,128], index: 9, kind: output, shape index: {}]  }
   0x1   :  { %v6985_v0 = vld [vmem:[%s9931_s1] sm:$0xff]   ;;  %2006 = vmatprep.mubr.bf16.mxu1 %v7737_v1  ;;  %v6986_v2 = vld [vmem:[%s9931_s1 + $0x8] sm:$0xff]   ;;  %v6987_v3 = vld [vmem:[%s9931_s1 + $0x10] sm:$0xff]   ;;  %v584_v6 = vsel %vm582_vm0, 65535, %v7737_v1  ;;  %vm1542_vm3 = vcmask 1041409   ;;  %vm1544_vm4 = vcmask 1042434  }
   0x2   :  { %6767 = vmatprep.subr.bf16.mxu0 %v6985_v0  ;;  %v6988_v4 = vld [vmem:[%s9931_s1 + $0x18] ss:$0 sps:$4 sm:$0x11]   ;;  %v6989_v5 = vld [vmem:[%s9932_s0] sm:$0xff]   ;;  %v6990_v8 = vld [vmem:[%s9932_s0 + $0x8] sm:$0xff]   ;;  %vm1546_vm5 = vcmask 1043459  }
   0x3   :  { %6768 = vmatpush3.bf16.msra.mxu0 %v6985_v0  ;;  %6775 = vmatprep.mubr.msk.bf16.mxu0 %vm425_vm1, %v6989_v5  ;;  %v586_v7 = vand.u32 %v6988_v4, %v584_v6  ;;  %v6991_v9 = vld [vmem:[%s9932_s0 + $0x10] sm:$0xff]   ;;  %v6992_v10 = vld [vmem:[%s9932_s0 + $0x18] sm:$0xff]   ;;  %v6993_v11 = vld [vmem:[%s9932_s0 + $0x20] sm:$0xff]   ;;  %vm1548_vm6 = vcmask 1044484   ;;  %vm1550_vm7 = vcmask 1045509   ;;  %vm1552_vm8 = vcmask 1046534  }
   0x4   :  { %6769 = vmatprep.subr.bf16.mxu0 %v6986_v2  ;;  %v6994_v12 = vld [vmem:[%s9932_s0 + $0x28] sm:$0xff]   ;;  %v6995_v13 = vld [vmem:[%s9932_s0 + $0x30] sm:$0xff]   ;;  %v6996_v14 = vld [vmem:[%s9932_s0 + $0x38] sm:$0xff]   ;;  %vm1554_vm9 = vcmask 1047559   ;;  %s7738_s1 = smov 64   ;;  %vm7740_vm10 = vmmov 0  }
   0x5   :  { %v6997_v15 = vld [vmem:[%s9932_s0 + $0x40] sm:$0xff]   ;;  %v6998_v16 = vld [vmem:[%s9932_s0 + $0x48] sm:$0xff]   ;;  %v6999_v17 = vld [vmem:[%s9932_s0 + $0x50] sm:$0xff]  }
   0x6   :  { %v7000_v18 = vld [vmem:[%s9932_s0 + $0x58] sm:$0xff]   ;;  %v7001_v19 = vld [vmem:[%s9932_s0 + $0x60] sm:$0xff]   ;;  %v7002_v20 = vld [vmem:[%s9932_s0 + $0x68] sm:$0xff]  }
   0x7   :  { %6770 = vmatpush3.bf16.msra.mxu0 %v6986_v2  ;;  %v7003_v21 = vld [vmem:[%s9932_s0 + $0x70] sm:$0xff]   ;;  %v7004_v22 = vld [vmem:[%s9932_s0 + $0x78] sm:$0xff]   ;;  %v7005_v23 = vld [vmem:[%s9932_s0 + $0x80] sm:$0xff]  }
   0x8   :  { %6771 = vmatprep.subr.bf16.mxu0 %v6987_v3  ;;  %v7006_v24 = vld [vmem:[%s9932_s0 + $0x88] sm:$0xff]   ;;  %v7007_v25 = vld [vmem:[%s9932_s0 + $0x90] sm:$0xff]   ;;  %v7008_v26 = vld [vmem:[%s9932_s0 + $0x98] sm:$0xff]  }
   0x9   :  { %v7009_v27 = vld [vmem:[%s9932_s0 + $0xa0] sm:$0xff]   ;;  %v7010_v28 = vld [vmem:[%s9932_s0 + $0xa8] sm:$0xff]   ;;  %v7011_v29 = vld [vmem:[%s9932_s0 + $0xb0] sm:$0xff]  }
   0xa   :  { %v7012_v30 = vld [vmem:[%s9932_s0 + $0xb8] sm:$0xff]   ;;  %v7013_v31 = vld [vmem:[%s9932_s0 + $0xc0] sm:$0xff]   ;;  %v7014_v32 = vld [vmem:[%s9932_s0 + $0xc8] sm:$0xff]  }
   0xb   :  { %6772 = vmatpush3.bf16.msra.mxu0 %v6987_v3  ;;  %v7015_v33 = vld [vmem:[%s9932_s0 + $0xd0] sm:$0xff]   ;;  %v7016_v34 = vld [vmem:[%s9932_s0 + $0xd8] sm:$0xff]   ;;  %v7017_v35 = vld [vmem:[%s9932_s0 + $0xe0] sm:$0xff]  }
   0xc   :  { %6773 = vmatprep.subr.bf16.mxu0 %v586_v7  ;;  %v7018_v36 = vld [vmem:[%s9932_s0 + $0xe8] sm:$0xff]   ;;  %v7019_v37 = vld [vmem:[%s9932_s0 + $0xf0] sm:$0xff]   ;;  %v7020_v38 = vld [vmem:[%s9932_s0 + $0xf8] sm:$0xff]  }
   0xd   :  { %v7021_v39 = vld [vmem:[%s9932_s0 + $0x100] sm:$0xff]   ;;  %v7022_v40 = vld [vmem:[%s9932_s0 + $0x108] sm:$0xff]   ;;  %v7023_v41 = vld [vmem:[%s9932_s0 + $0x110] sm:$0xff]  }
   0xe   :  { %v7024_v42 = vld [vmem:[%s9932_s0 + $0x118] sm:$0xff]   ;;  %v7025_v43 = vld [vmem:[%s9932_s0 + $0x120] sm:$0xff]   ;;  %v7026_v44 = vld [vmem:[%s9932_s0 + $0x128] sm:$0xff]  }
   0xf   :  { %6774 = vmatpush3.bf16.msra.mxu0 %v586_v7  ;;  %v7027_v45 = vld [vmem:[%s9932_s0 + $0x130] sm:$0xff]   ;;  %v7028_v46 = vld [vmem:[%s9932_s0 + $0x138] sm:$0xff]   ;;  %v7029_v47 = vld [vmem:[%s9932_s0 + $0x140] sm:$0xff]  }
  0x10   :  { %v7030_v48 = vld [vmem:[%s9932_s0 + $0x148] sm:$0xff]   ;;  %v7031_v49 = vld [vmem:[%s9932_s0 + $0x150] sm:$0xff]   ;;  %v7032_v50 = vld [vmem:[%s9932_s0 + $0x158] sm:$0xff]  }
  0x11   :  { %v7033_v51 = vld [vmem:[%s9932_s0 + $0x160] sm:$0xff]   ;;  %v7034_v52 = vld [vmem:[%s9932_s0 + $0x168] sm:$0xff]   ;;  %v7035_v53 = vld [vmem:[%s9932_s0 + $0x170] sm:$0xff]  }
  0x12   :  { %6776 = vmatmul.mubr.msk.bf16.vlgmr.msra.gmra.mrb[0].mxu0 %vm425_vm1, %v6990_v8  ;;  %v7036_v54 = vld [vmem:[%s9932_s0 + $0x178] sm:$0xff]   ;;  %v7037_v55 = vld [vmem:[%s9932_s0 + $0x180] sm:$0xff]   ;;  %v7038_v56 = vld [vmem:[%s9932_s0 + $0x188] sm:$0xff]  }
  0x13   :  { %6779 = vmatprep.mubr.msk.bf16.mxu0 %vm425_vm1, %v6991_v9  ;;  %v7039_v57 = vld [vmem:[%s9932_s0 + $0x190] sm:$0xff]   ;;  %v7040_v58 = vld [vmem:[%s9932_s0 + $0x198] sm:$0xff]  }
  0x1a   :  { %6780 = vmatmul.mubr.msk.bf16.gmra.mrb[4].mxu0 %vm425_vm1, %v6992_v10 }
  0x1b   :  { %6783 = vmatprep.mubr.msk.bf16.mxu0 %vm425_vm1, %v6993_v11 }
  0x22   :  { %6784 = vmatmul.mubr.msk.bf16.gmra.mrb[8].mxu0 %vm425_vm1, %v6994_v12 }
  0x23   :  { %6787 = vmatprep.mubr.msk.bf16.mxu0 %vm425_vm1, %v6995_v13 }
  0x2a   :  { %6788 = vmatmul.mubr.msk.bf16.gmra.mrb[12].mxu0 %vm425_vm1, %v6996_v14 }
  0x2b   :  { %6791 = vmatprep.mubr.msk.bf16.mxu0 %vm425_vm1, %v6997_v15 }
  0x32   :  { %6792 = vmatmul.mubr.msk.bf16.gmra.mrb[16].mxu0 %vm425_vm1, %v6998_v16 }
  0x33   :  { %6795 = vmatprep.mubr.msk.bf16.mxu0 %vm425_vm1, %v6999_v17 }
  0x3a   :  { %6796 = vmatmul.mubr.msk.bf16.gmra.mrb[20].mxu0 %vm425_vm1, %v7000_v18 }
  0x3b   :  { %6799 = vmatprep.mubr.msk.bf16.mxu0 %vm425_vm1, %v7001_v19 }
  0x42   :  { %6800 = vmatmul.mubr.msk.bf16.gmra.mrb[24].mxu0 %vm425_vm1, %v7002_v20 }
  0x43   :  { %6803 = vmatprep.mubr.msk.bf16.mxu0 %vm425_vm1, %v7003_v21 }
  0x4a   :  { %6804 = vmatmul.mubr.msk.bf16.gmra.mrb[28].mxu0 %vm425_vm1, %v7004_v22 }
  0x4b   :  { %6807 = vmatprep.mubr.msk.bf16.mxu0 %vm425_vm1, %v7005_v23 }
  0x52   :  { %6808 = vmatmul.mubr.msk.bf16.gmra.mrb[32].mxu0 %vm425_vm1, %v7006_v24 }
  0x53   :  { %6811 = vmatprep.mubr.msk.bf16.mxu0 %vm425_vm1, %v7007_v25 }
  0x5a   :  { %6812 = vmatmul.mubr.msk.bf16.gmra.mrb[36].mxu0 %vm425_vm1, %v7008_v26 }
  0x5b   :  { %6815 = vmatprep.mubr.msk.bf16.mxu0 %vm425_vm1, %v7009_v27 }
  0x62   :  { %6816 = vmatmul.mubr.msk.bf16.gmra.mrb[40].mxu0 %vm425_vm1, %v7010_v28 }
  0x63   :  { %6819 = vmatprep.mubr.msk.bf16.mxu0 %vm425_vm1, %v7011_v29 }
  0x6a   :  { %6820 = vmatmul.mubr.msk.bf16.gmra.mrb[44].mxu0 %vm425_vm1, %v7012_v30 }
  0x6b   :  { %6823 = vmatprep.mubr.msk.bf16.mxu0 %vm425_vm1, %v7013_v31 }
  0x72   :  { %6824 = vmatmul.mubr.msk.bf16.gmra.mrb[48].mxu0 %vm425_vm1, %v7014_v32 }
  0x73   :  { %6827 = vmatprep.mubr.msk.bf16.mxu0 %vm425_vm1, %v7015_v33 }
  0x7a   :  { %6828 = vmatmul.mubr.msk.bf16.gmra.mrb[52].mxu0 %vm425_vm1, %v7016_v34 }
  0x7b   :  { %6831 = vmatprep.mubr.msk.bf16.mxu0 %vm425_vm1, %v7017_v35 }
  0x82   :  { %6832 = vmatmul.mubr.msk.bf16.gmra.mrb[56].mxu0 %vm425_vm1, %v7018_v36 }
  0x83   :  { %6835 = vmatprep.mubr.msk.bf16.mxu0 %vm425_vm1, %v7019_v37 }
  0x8a   :  { %6836 = vmatmul.mubr.msk.bf16.gmra.mrb[60].mxu0 %vm425_vm1, %v7020_v38 }
  0x8b   :  { %6839 = vmatprep.mubr.msk.bf16.mxu0 %vm425_vm1, %v7021_v39 }
  0x92   :  { %6840 = vmatmul.mubr.msk.bf16.gmra.mrb[64].mxu0 %vm425_vm1, %v7022_v40 }
  0x93   :  { %6843 = vmatprep.mubr.msk.bf16.mxu0 %vm425_vm1, %v7023_v41 }
  0x9a   :  { %6844 = vmatmul.mubr.msk.bf16.gmra.mrb[68].mxu0 %vm425_vm1, %v7024_v42 }
  0x9b   :  { %6847 = vmatprep.mubr.msk.bf16.mxu0 %vm425_vm1, %v7025_v43 }
  0xa2   :  { %6848 = vmatmul.mubr.msk.bf16.gmra.mrb[72].mxu0 %vm425_vm1, %v7026_v44 }
  0xa3   :  { %6851 = vmatprep.mubr.msk.bf16.mxu0 %vm425_vm1, %v7027_v45 }
  0xaa   :  { %6852 = vmatmul.mubr.msk.bf16.gmra.mrb[76].mxu0 %vm425_vm1, %v7028_v46 }
  0xab   :  { %6855 = vmatprep.mubr.msk.bf16.mxu0 %vm425_vm1, %v7029_v47 }
  0xb2   :  { %6856 = vmatmul.mubr.msk.bf16.gmra.mrb[80].mxu0 %vm425_vm1, %v7030_v48 }
  0xb3   :  { %6859 = vmatprep.mubr.msk.bf16.mxu0 %vm425_vm1, %v7031_v49 }
  0xba   :  { %6860 = vmatmul.mubr.msk.bf16.gmra.mrb[84].mxu0 %vm425_vm1, %v7032_v50 }
  0xbb   :  { %6863 = vmatprep.mubr.msk.bf16.mxu0 %vm425_vm1, %v7033_v51 }
  0xc2   :  { %6864 = vmatmul.mubr.msk.bf16.gmra.mrb[88].mxu0 %vm425_vm1, %v7034_v52 }
  0xc3   :  { %6867 = vmatprep.mubr.msk.bf16.mxu0 %vm425_vm1, %v7035_v53 }
  0xca   :  { %6868 = vmatmul.mubr.msk.bf16.gmra.mrb[92].mxu0 %vm425_vm1, %v7036_v54 }
  0xcb   :  { %6871 = vmatprep.mubr.msk.bf16.mxu0 %vm425_vm1, %v7037_v55 }
  0xd2   :  { %6872 = vmatmul.mubr.msk.bf16.gmra.mrb[96].mxu0 %vm425_vm1, %v7038_v56 }
  0xd3   :  { %6875 = vmatprep.mubr.msk.bf16.mxu0 %vm425_vm1, %v7039_v57 }
  0xda   :  { %6876 = vmatmul.mubr.msk.bf16.gmra.mrb[100].mxu0 %vm425_vm1, %v7040_v58 }
  0xe5   :  { %v6777_v59 = vpop.f32.mrb[0].mxu0 }
  0xe6   :  { %v622_v60 = vpop.f32.mrb[1].mxu0  ;;  %v1041_v6 = vsel %vm1037_vm2, %v6777_v59, -inf  ;;  %v1289_v7 = vsel %vm1037_vm2, %v6777_v59, inf }
  0xe7   :  { %v6778_v61 = vpop.f32.mrb[2].mxu0  ;;  %v1038_v63 = vsel %vm1037_vm2, %v622_v60, -inf  ;;  %v1286_v0 = vsel %vm1037_vm2, %v622_v60, inf }
  0xe8   :  { %v625_v62 = vpop.f32.mrb[3].mxu0  ;;  %v1043_v10 = vsel %vm1037_vm2, %v6778_v61, -inf  ;;  %v1291_v11 = vsel %vm1037_vm2, %v6778_v61, inf }
  0xe9   :  { %v1039_v2 = vsel %vm1037_vm2, %v625_v62, -inf  ;;  %v1287_v3 = vsel %vm1037_vm2, %v625_v62, inf }
  0xea   :  { %v1040_v4 = vmax.f32 %v1038_v63, %v1039_v2  ;;  %v1288_v5 = vmin.f32 %v1286_v0, %v1287_v3 }
  0xec   :  { %v1042_v8 = vmax.f32 %v1040_v4, %v1041_v6  ;;  %v1290_v9 = vmin.f32 %v1288_v5, %v1289_v7 }
  0xed   :  { %v6781_v12 = vpop.f32.mrb[4].mxu0 }
  0xee   :  { %v638_v13 = vpop.f32.mrb[5].mxu0  ;;  %v1044_v14 = vmax.f32 %v1042_v8, %v1043_v10  ;;  %v1292_v15 = vmin.f32 %v1290_v9, %v1291_v11  ;;  %v1049_v26 = vsel %vm1037_vm2, %v6781_v12, -inf  ;;  %v1297_v27 = vsel %vm1037_vm2, %v6781_v12, inf }
  0xef   :  { %v1045_v16 = vsel %vm1037_vm2, %v638_v13, -inf  ;;  %v1293_v17 = vsel %vm1037_vm2, %v638_v13, inf  ;;  %v6782_v18 = vpop.f32.mrb[6].mxu0 }
  0xf0   :  { %v1046_v19 = vmax.f32 %v1044_v14, %v1045_v16  ;;  %v1294_v20 = vmin.f32 %v1292_v15, %v1293_v17  ;;  %v641_v21 = vpop.f32.mrb[7].mxu0  ;;  %v1051_v30 = vsel %vm1037_vm2, %v6782_v18, -inf  ;;  %v1299_v31 = vsel %vm1037_vm2, %v6782_v18, inf }
  0xf1   :  { %v1047_v22 = vsel %vm1037_vm2, %v641_v21, -inf  ;;  %v1295_v23 = vsel %vm1037_vm2, %v641_v21, inf }
  0xf2   :  { %v1048_v24 = vmax.f32 %v1046_v19, %v1047_v22  ;;  %v1296_v25 = vmin.f32 %v1294_v20, %v1295_v23 }
  0xf4   :  { %v1050_v28 = vmax.f32 %v1048_v24, %v1049_v26  ;;  %v1298_v29 = vmin.f32 %v1296_v25, %v1297_v27 }
  0xf5   :  { %v6785_v32 = vpop.f32.mrb[8].mxu0 }
  0xf6   :  { %v654_v33 = vpop.f32.mrb[9].mxu0  ;;  %v1052_v34 = vmax.f32 %v1050_v28, %v1051_v30  ;;  %v1300_v35 = vmin.f32 %v1298_v29, %v1299_v31  ;;  %v1057_v46 = vsel %vm1037_vm2, %v6785_v32, -inf  ;;  %v1305_v47 = vsel %vm1037_vm2, %v6785_v32, inf }
  0xf7   :  { %v1053_v36 = vsel %vm1037_vm2, %v654_v33, -inf  ;;  %v1301_v37 = vsel %vm1037_vm2, %v654_v33, inf  ;;  %v6786_v38 = vpop.f32.mrb[10].mxu0 }
  0xf8   :  { %v1054_v39 = vmax.f32 %v1052_v34, %v1053_v36  ;;  %v1302_v40 = vmin.f32 %v1300_v35, %v1301_v37  ;;  %v657_v41 = vpop.f32.mrb[11].mxu0  ;;  %v1059_v50 = vsel %vm1037_vm2, %v6786_v38, -inf  ;;  %v1307_v51 = vsel %vm1037_vm2, %v6786_v38, inf }
  0xf9   :  { %v1055_v42 = vsel %vm1037_vm2, %v657_v41, -inf  ;;  %v1303_v43 = vsel %vm1037_vm2, %v657_v41, inf }
  0xfa   :  { %v1056_v44 = vmax.f32 %v1054_v39, %v1055_v42  ;;  %v1304_v45 = vmin.f32 %v1302_v40, %v1303_v43 }
  0xfc   :  { %v1058_v48 = vmax.f32 %v1056_v44, %v1057_v46  ;;  %v1306_v49 = vmin.f32 %v1304_v45, %v1305_v47 }
  0xfd   :  { %v6789_v52 = vpop.f32.mrb[12].mxu0 }
  0xfe   :  { %v670_v53 = vpop.f32.mrb[13].mxu0  ;;  %v1060_v54 = vmax.f32 %v1058_v48, %v1059_v50  ;;  %v1308_v55 = vmin.f32 %v1306_v49, %v1307_v51  ;;  %v1070_v62 = vsel %vm1037_vm2, %v6789_v52, -inf  ;;  %v1318_v63 = vsel %vm1037_vm2, %v6789_v52, inf }
  0xff   :  { %v1061_v56 = vsel %vm1037_vm2, %v670_v53, -inf  ;;  %v1309_v57 = vsel %vm1037_vm2, %v670_v53, inf  ;;  %v6790_v58 = vpop.f32.mrb[14].mxu0 }
 0x100   :  { %v1062_v59 = vmax.f32 %v1060_v54, %v1061_v56  ;;  %v1310_v60 = vmin.f32 %v1308_v55, %v1309_v57  ;;  %v673_v61 = vpop.f32.mrb[15].mxu0  ;;  %v1072_v5 = vsel %vm1037_vm2, %v6790_v58, -inf  ;;  %v1320_v6 = vsel %vm1037_vm2, %v6790_v58, inf }
 0x101   :  { %v1069_v0 = vsel %vm1037_vm2, %v673_v61, -inf  ;;  %v1317_v2 = vsel %vm1037_vm2, %v673_v61, inf }
 0x102   :  { %v1071_v3 = vmax.f32 %v1069_v0, %v1070_v62  ;;  %v1319_v4 = vmin.f32 %v1317_v2, %v1318_v63  ;;  %v1063_v28 = vrot.slane %v1062_v59, 4  ;;  %v1311_v29 = vrot.slane %v1310_v60, 4 }
 0x104   :  { %v1073_v7 = vmax.f32 %v1071_v3, %v1072_v5  ;;  %v1321_v8 = vmin.f32 %v1319_v4, %v1320_v6  ;;  %v1064_v41 = vmax.f32 %v1062_v59, %v1063_v28  ;;  %v1312_v42 = vmin.f32 %v1310_v60, %v1311_v29 }
 0x105   :  { %v6793_v9 = vpop.f32.mrb[16].mxu0 }
 0x106   :  { %v686_v10 = vpop.f32.mrb[17].mxu0  ;;  %v1078_v21 = vsel %vm1037_vm2, %v6793_v9, -inf  ;;  %v1326_v22 = vsel %vm1037_vm2, %v6793_v9, inf  ;;  %v1065_v52 = vrot.slane %v1064_v41, 2  ;;  %v1313_v53 = vrot.slane %v1312_v42, 2 }
 0x107   :  { %v1074_v11 = vsel %vm1037_vm2, %v686_v10, -inf  ;;  %v1322_v12 = vsel %vm1037_vm2, %v686_v10, inf  ;;  %v6794_v13 = vpop.f32.mrb[18].mxu0 }
 0x108   :  { %v1075_v14 = vmax.f32 %v1073_v7, %v1074_v11  ;;  %v1323_v15 = vmin.f32 %v1321_v8, %v1322_v12  ;;  %v689_v16 = vpop.f32.mrb[19].mxu0  ;;  %v1080_v25 = vsel %vm1037_vm2, %v6794_v13, -inf  ;;  %v1328_v26 = vsel %vm1037_vm2, %v6794_v13, inf }
 0x109   :  { %v1076_v17 = vsel %vm1037_vm2, %v689_v16, -inf  ;;  %v1324_v18 = vsel %vm1037_vm2, %v689_v16, inf  ;;  %v1066_v12 = vmax.f32 %v1064_v41, %v1065_v52  ;;  %v1314_v13 = vmin.f32 %v1312_v42, %v1313_v53 }
 0x10a   :  { %v1077_v19 = vmax.f32 %v1075_v14, %v1076_v17  ;;  %v1325_v20 = vmin.f32 %v1323_v15, %v1324_v18 }
 0x10c   :  { %v1079_v23 = vmax.f32 %v1077_v19, %v1078_v21  ;;  %v1327_v24 = vmin.f32 %v1325_v20, %v1326_v22 }
 0x10d   :  { %v6797_v27 = vpop.f32.mrb[20].mxu0 }
 0x10e   :  { %v702_v30 = vpop.f32.mrb[21].mxu0  ;;  %v1081_v31 = vmax.f32 %v1079_v23, %v1080_v25  ;;  %v1329_v32 = vmin.f32 %v1327_v24, %v1328_v26  ;;  %v1086_v45 = vsel %vm1037_vm2, %v6797_v27, -inf  ;;  %v1334_v46 = vsel %vm1037_vm2, %v6797_v27, inf }
 0x10f   :  { %v1082_v33 = vsel %vm1037_vm2, %v702_v30, -inf  ;;  %v1330_v34 = vsel %vm1037_vm2, %v702_v30, inf  ;;  %v6798_v35 = vpop.f32.mrb[22].mxu0  ;;  %v1067_v26 = vrot.slane %v1066_v12, 1  ;;  %v1315_v27 = vrot.slane %v1314_v13, 1 }
 0x110   :  { %v1083_v36 = vmax.f32 %v1081_v31, %v1082_v33  ;;  %v1331_v37 = vmin.f32 %v1329_v32, %v1330_v34  ;;  %v705_v38 = vpop.f32.mrb[23].mxu0  ;;  %v1088_v49 = vsel %vm1037_vm2, %v6798_v35, -inf  ;;  %v1336_v50 = vsel %vm1037_vm2, %v6798_v35, inf }
 0x111   :  { %v1084_v39 = vsel %vm1037_vm2, %v705_v38, -inf  ;;  %v1332_v40 = vsel %vm1037_vm2, %v705_v38, inf  ;;  %v1316_v41 = vmin.f32 %v1314_v13, %v1315_v27 }
 0x112   :  { %v1085_v43 = vmax.f32 %v1083_v36, %v1084_v39  ;;  %v1333_v44 = vmin.f32 %v1331_v37, %v1332_v40  ;;  %v1068_v40 = vmax.f32 %v1066_v12, %v1067_v26 }
 0x114   :  { %v1087_v47 = vmax.f32 %v1085_v43, %v1086_v45  ;;  %v1335_v48 = vmin.f32 %v1333_v44, %v1334_v46 }
 0x115   :  { %v6801_v51 = vpop.f32.mrb[24].mxu0 }
 0x116   :  { %v718_v54 = vpop.f32.mrb[25].mxu0  ;;  %v1089_v55 = vmax.f32 %v1087_v47, %v1088_v49  ;;  %v1337_v56 = vmin.f32 %v1335_v48, %v1336_v50  ;;  %v1100_v57 = vsel %vm1037_vm2, %v6801_v51, -inf  ;;  %v1348_v58 = vsel %vm1037_vm2, %v6801_v51, inf }
 0x117   :  { %v1090_v59 = vsel %vm1037_vm2, %v718_v54, -inf  ;;  %v1338_v60 = vsel %vm1037_vm2, %v718_v54, inf  ;;  %v6802_v61 = vpop.f32.mrb[26].mxu0 }
 0x118   :  { %v1091_v62 = vmax.f32 %v1089_v55, %v1090_v59  ;;  %v1339_v63 = vmin.f32 %v1337_v56, %v1338_v60  ;;  %v1101_v0 = vsel %vm1037_vm2, %v6802_v61, -inf  ;;  %v1349_v2 = vsel %vm1037_vm2, %v6802_v61, inf  ;;  %v721_v3 = vpop.f32.mrb[27].mxu0 }
 0x119   :  { %v1102_v4 = vmax.f32 %v1100_v57, %v1101_v0  ;;  %v1350_v5 = vmin.f32 %v1348_v58, %v1349_v2  ;;  %v1092_v6 = vsel %vm1037_vm2, %v721_v3, -inf  ;;  %v1340_v7 = vsel %vm1037_vm2, %v721_v3, inf }
 0x11a   :  { %v1093_v8 = vmax.f32 %v1091_v62, %v1092_v6  ;;  %v1341_v9 = vmin.f32 %v1339_v63, %v1340_v7 }
 0x11c   :  { %v1094_v10 = vrot.slane %v1093_v8, 4  ;;  %v1342_v11 = vrot.slane %v1341_v9, 4 }
 0x11d   :  { %v6805_v14 = vpop.f32.mrb[28].mxu0 }
 0x11e   :  { %v1095_v15 = vmax.f32 %v1093_v8, %v1094_v10  ;;  %v1343_v16 = vmin.f32 %v1341_v9, %v1342_v11  ;;  %v734_v17 = vpop.f32.mrb[29].mxu0  ;;  %v1107_v34 = vsel %vm1037_vm2, %v6805_v14, -inf  ;;  %v1355_v35 = vsel %vm1037_vm2, %v6805_v14, inf }
 0x11f   :  { %v1103_v18 = vsel %vm1037_vm2, %v734_v17, -inf  ;;  %v1351_v19 = vsel %vm1037_vm2, %v734_v17, inf  ;;  %v6806_v20 = vpop.f32.mrb[30].mxu0 }
 0x120   :  { %v1096_v21 = vrot.slane %v1095_v15, 2  ;;  %v1344_v22 = vrot.slane %v1343_v16, 2  ;;  %v1104_v23 = vmax.f32 %v1102_v4, %v1103_v18  ;;  %v1352_v24 = vmin.f32 %v1350_v5, %v1351_v19  ;;  %v737_v25 = vpop.f32.mrb[31].mxu0 }
 0x121   :  { %v1105_v28 = vsel %vm1037_vm2, %v737_v25, -inf  ;;  %v1353_v29 = vsel %vm1037_vm2, %v737_v25, inf  ;;  %v1109_v45 = vsel %vm1037_vm2, %v6806_v20, -inf  ;;  %v1357_v46 = vsel %vm1037_vm2, %v6806_v20, inf }
 0x122   :  { %v1097_v30 = vmax.f32 %v1095_v15, %v1096_v21  ;;  %v1345_v31 = vmin.f32 %v1343_v16, %v1344_v22  ;;  %v1106_v32 = vmax.f32 %v1104_v23, %v1105_v28  ;;  %v1354_v33 = vmin.f32 %v1352_v24, %v1353_v29 }
 0x124   :  { %v1098_v36 = vrot.slane %v1097_v30, 1  ;;  %v1346_v37 = vrot.slane %v1345_v31, 1  ;;  %v1108_v38 = vmax.f32 %v1106_v32, %v1107_v34  ;;  %v1356_v39 = vmin.f32 %v1354_v33, %v1355_v35 }
 0x125   :  { %v6809_v42 = vpop.f32.mrb[32].mxu0 }
 0x126   :  { %v1099_v43 = vmax.f32 %v1097_v30, %v1098_v36  ;;  %v1347_v44 = vmin.f32 %v1345_v31, %v1346_v37  ;;  %v750_v47 = vpop.f32.mrb[33].mxu0  ;;  %v1110_v48 = vmax.f32 %v1108_v38, %v1109_v45  ;;  %v1358_v50 = vmin.f32 %v1356_v39, %v1357_v46 }
 0x127   :  { %v1111_v49 = vsel %vm1037_vm2, %v750_v47, -inf  ;;  %v1359_v51 = vsel %vm1037_vm2, %v750_v47, inf  ;;  %v6810_v52 = vpop.f32.mrb[34].mxu0  ;;  %v1115_v62 = vsel %vm1037_vm2, %v6809_v42, -inf  ;;  %v1363_v63 = vsel %vm1037_vm2, %v6809_v42, inf }
 0x128   :  { %v8079_v53 = vsel %vm1542_vm3, %v1099_v43, %v1068_v40  ;;  %v8081_v54 = vsel %vm1542_vm3, %v1347_v44, %v1316_v41  ;;  %v753_v55 = vpop.f32.mrb[35].mxu0  ;;  %v1112_v56 = vmax.f32 %v1110_v48, %v1111_v49  ;;  %v1360_v57 = vmin.f32 %v1358_v50, %v1359_v51 }
 0x129   :  { %v1113_v58 = vsel %vm1037_vm2, %v753_v55, -inf  ;;  %v1361_v59 = vsel %vm1037_vm2, %v753_v55, inf  ;;  %v1117_v4 = vsel %vm1037_vm2, %v6810_v52, -inf  ;;  %v1365_v5 = vsel %vm1037_vm2, %v6810_v52, inf }
 0x12a   :  { %v1114_v60 = vmax.f32 %v1112_v56, %v1113_v58  ;;  %v1362_v61 = vmin.f32 %v1360_v57, %v1361_v59 }
 0x12c   :  { %v1116_v0 = vmax.f32 %v1114_v60, %v1115_v62  ;;  %v1364_v2 = vmin.f32 %v1362_v61, %v1363_v63 }
 0x12d   :  { %v6813_v3 = vpop.f32.mrb[36].mxu0 }
 0x12e   :  { %v766_v6 = vpop.f32.mrb[37].mxu0  ;;  %v1118_v7 = vmax.f32 %v1116_v0, %v1117_v4  ;;  %v1366_v9 = vmin.f32 %v1364_v2, %v1365_v5  ;;  %v1123_v19 = vsel %vm1037_vm2, %v6813_v3, -inf  ;;  %v1371_v20 = vsel %vm1037_vm2, %v6813_v3, inf }
 0x12f   :  { %v1119_v8 = vsel %vm1037_vm2, %v766_v6, -inf  ;;  %v1367_v10 = vsel %vm1037_vm2, %v766_v6, inf  ;;  %v6814_v11 = vpop.f32.mrb[38].mxu0 }
 0x130   :  { %v769_v12 = vpop.f32.mrb[39].mxu0  ;;  %v1120_v13 = vmax.f32 %v1118_v7, %v1119_v8  ;;  %v1368_v14 = vmin.f32 %v1366_v9, %v1367_v10  ;;  %v1131_v24 = vsel %vm1037_vm2, %v6814_v11, -inf  ;;  %v1379_v25 = vsel %vm1037_vm2, %v6814_v11, inf }
 0x131   :  { %v1121_v15 = vsel %vm1037_vm2, %v769_v12, -inf  ;;  %v1369_v16 = vsel %vm1037_vm2, %v769_v12, inf }
 0x132   :  { %v1122_v17 = vmax.f32 %v1120_v13, %v1121_v15  ;;  %v1370_v18 = vmin.f32 %v1368_v14, %v1369_v16 }
 0x134   :  { %v1124_v21 = vmax.f32 %v1122_v17, %v1123_v19  ;;  %v1372_v22 = vmin.f32 %v1370_v18, %v1371_v20 }
 0x135   :  { %v6817_v23 = vpop.f32.mrb[40].mxu0 }
 0x136   :  { %v782_v26 = vpop.f32.mrb[41].mxu0  ;;  %v1125_v27 = vrot.slane %v1124_v21, 4  ;;  %v1373_v28 = vrot.slane %v1372_v22, 4  ;;  %v1136_v43 = vsel %vm1037_vm2, %v6817_v23, -inf  ;;  %v1384_v44 = vsel %vm1037_vm2, %v6817_v23, inf }
 0x137   :  { %v1132_v29 = vsel %vm1037_vm2, %v782_v26, -inf  ;;  %v1380_v30 = vsel %vm1037_vm2, %v782_v26, inf  ;;  %v6818_v31 = vpop.f32.mrb[42].mxu0 }
 0x138   :  { %v1133_v32 = vmax.f32 %v1131_v24, %v1132_v29  ;;  %v1381_v33 = vmin.f32 %v1379_v25, %v1380_v30  ;;  %v785_v34 = vpop.f32.mrb[43].mxu0  ;;  %v1126_v35 = vmax.f32 %v1124_v21, %v1125_v27  ;;  %v1374_v36 = vmin.f32 %v1372_v22, %v1373_v28  ;;  %v7043_v25 = vld [vmem:[%s9933_s3] ss:$28 sps:$4 sm:$0xff]  }
 0x139   :  { %v1134_v37 = vsel %vm1037_vm2, %v785_v34, -inf  ;;  %v1382_v38 = vsel %vm1037_vm2, %v785_v34, inf  ;;  %v1138_v49 = vsel %vm1037_vm2, %v6818_v31, -inf  ;;  %v1386_v50 = vsel %vm1037_vm2, %v6818_v31, inf  ;;  %v7044_v28 = vld [vmem:[%s9933_s3 + $0x3c] ss:$28 sps:$4 sm:$0xff]  }
 0x13a   :  { %v1135_v39 = vmax.f32 %v1133_v32, %v1134_v37  ;;  %v1383_v40 = vmin.f32 %v1381_v33, %v1382_v38  ;;  %v1127_v41 = vrot.slane %v1126_v35, 2  ;;  %v1375_v42 = vrot.slane %v1374_v36, 2  ;;  %v7046_v31 = vld [vmem:[%s9933_s3 + $0x38] ss:$28 sps:$4 sm:$0xff]  }
 0x13b   :  { %v7047_v34 = vld [vmem:[%s9933_s3 + $0x74] ss:$28 sps:$4 sm:$0xff]  }
 0x13c   :  { %v1137_v45 = vmax.f32 %v1135_v39, %v1136_v43  ;;  %v1385_v46 = vmin.f32 %v1383_v40, %v1384_v44  ;;  %v1128_v47 = vmax.f32 %v1126_v35, %v1127_v41  ;;  %v1376_v48 = vmin.f32 %v1374_v36, %v1375_v42  ;;  %v7049_v43 = vld [vmem:[%s9933_s3 + $0x70] ss:$28 sps:$4 sm:$0xff]  }
 0x13d   :  { %v6821_v51 = vpop.f32.mrb[44].mxu0 }
 0x13e   :  { %v798_v52 = vpop.f32.mrb[45].mxu0  ;;  %v1139_v55 = vmax.f32 %v1137_v45, %v1138_v49  ;;  %v1387_v56 = vmin.f32 %v1385_v46, %v1386_v50  ;;  %v1129_v57 = vrot.slane %v1128_v47, 1  ;;  %v1377_v58 = vrot.slane %v1376_v48, 1  ;;  %v7050_v45 = vld [vmem:[%s9933_s3 + $0xac] ss:$28 sps:$4 sm:$0xff]  }
 0x13f   :  { %v1140_v59 = vsel %vm1037_vm2, %v798_v52, -inf  ;;  %v1388_v60 = vsel %vm1037_vm2, %v798_v52, inf  ;;  %v6822_v61 = vpop.f32.mrb[46].mxu0  ;;  %v1144_v8 = vsel %vm1037_vm2, %v6821_v51, -inf  ;;  %v1392_v9 = vsel %vm1037_vm2, %v6821_v51, inf }
 0x140   :  { %v1141_v62 = vmax.f32 %v1139_v55, %v1140_v59  ;;  %v1389_v63 = vmin.f32 %v1387_v56, %v1388_v60  ;;  %v801_v0 = vpop.f32.mrb[47].mxu0  ;;  %v1130_v2 = vmax.f32 %v1128_v47, %v1129_v57  ;;  %v1378_v3 = vmin.f32 %v1376_v48, %v1377_v58  ;;  %v7052_v49 = vld [vmem:[%s9933_s3 + $0xa8] ss:$28 sps:$4 sm:$0xff]  }
 0x141   :  { %v1142_v4 = vsel %vm1037_vm2, %v801_v0, -inf  ;;  %v1390_v5 = vsel %vm1037_vm2, %v801_v0, inf  ;;  %v1146_v14 = vsel %vm1037_vm2, %v6822_v61, -inf  ;;  %v1394_v15 = vsel %vm1037_vm2, %v6822_v61, inf  ;;  %v7053_v56 = vld [vmem:[%s9933_s3 + $0xe4] ss:$28 sps:$4 sm:$0xff]  }
 0x142   :  { %v1143_v6 = vmax.f32 %v1141_v62, %v1142_v4  ;;  %v1391_v7 = vmin.f32 %v1389_v63, %v1390_v5  ;;  %v8112_v10 = vsel %vm1544_vm4, %v1378_v3, %v8081_v54  ;;  %v8115_v11 = vsel %vm1544_vm4, %v1130_v2, %v8079_v53  ;;  %v7041_v53 = vld [vmem:[%s9933_s3 + $0x4] ss:$28 sps:$4 sm:$0xff]  }
 0x143   :  { %1974 = vmatprep.subr.bf16.mxu1 %v7041_v53  ;;  %v7055_v4 = vld [vmem:[%s9933_s3 + $0xe0] ss:$28 sps:$4 sm:$0xff]  }
 0x144   :  { %v1145_v12 = vmax.f32 %v1143_v6, %v1144_v8  ;;  %v1393_v13 = vmin.f32 %v1391_v7, %v1392_v9  ;;  %1975 = vmatpush1.bf16.msra.mxu1 %v7043_v25  ;;  %v7056_v6 = vld [vmem:[%s9933_s3 + $0x11c] ss:$28 sps:$4 sm:$0xff]   ;;  %v7059_v25 = vld [vmem:[%s9933_s3 + $0x154] ss:$28 sps:$4 sm:$0xff]  }
 0x145   :  { %v6825_v16 = vpop.f32.mrb[48].mxu0  ;;  %1976 = vmatprep.subr.bf16.mxu1 %v7044_v28 }
 0x146   :  { %v814_v17 = vpop.f32.mrb[49].mxu0  ;;  %v1147_v18 = vmax.f32 %v1145_v12, %v1146_v14  ;;  %v1395_v19 = vmin.f32 %v1393_v13, %v1394_v15  ;;  %v1152_v32 = vsel %vm1037_vm2, %v6825_v16, -inf  ;;  %v1400_v33 = vsel %vm1037_vm2, %v6825_v16, inf }
 0x147   :  { %v1148_v20 = vsel %vm1037_vm2, %v814_v17, -inf  ;;  %v1396_v21 = vsel %vm1037_vm2, %v814_v17, inf  ;;  %v6826_v22 = vpop.f32.mrb[50].mxu0 }
 0x148   :  { %v1149_v54 = vmax.f32 %v1147_v18, %v1148_v20  ;;  %v1397_v23 = vmin.f32 %v1395_v19, %v1396_v21  ;;  %v817_v24 = vpop.f32.mrb[51].mxu0  ;;  %v1154_v37 = vsel %vm1037_vm2, %v6826_v22, -inf  ;;  %v1402_v38 = vsel %vm1037_vm2, %v6826_v22, inf  ;;  %1977 = vmatpush1.bf16.msra.mxu1 %v7046_v31  ;;  %v7058_v22 = vld [vmem:[%s9933_s3 + $0x118] ss:$28 sps:$4 sm:$0xff]  }
 0x149   :  { %v1150_v26 = vsel %vm1037_vm2, %v817_v24, -inf  ;;  %v1398_v27 = vsel %vm1037_vm2, %v817_v24, inf  ;;  %1978 = vmatprep.subr.bf16.mxu1 %v7047_v34 }
 0x14a   :  { %v1151_v29 = vmax.f32 %v1149_v54, %v1150_v26  ;;  %v1399_v30 = vmin.f32 %v1397_v23, %v1398_v27 }
 0x14c   :  { %v1153_v35 = vmax.f32 %v1151_v29, %v1152_v32  ;;  %v1401_v36 = vmin.f32 %v1399_v30, %v1400_v33  ;;  %1979 = vmatpush1.bf16.msra.mxu1 %v7049_v43  ;;  %v7061_v33 = vld [vmem:[%s9933_s3 + $0x150] ss:$28 sps:$4 sm:$0xff]  }
 0x14d   :  { %v6829_v39 = vpop.f32.mrb[52].mxu0  ;;  %1980 = vmatprep.subr.bf16.mxu1 %v7050_v45 }
 0x14e   :  { %v1155_v40 = vmax.f32 %v1153_v35, %v1154_v37  ;;  %v1403_v41 = vmin.f32 %v1401_v36, %v1402_v38  ;;  %v830_v42 = vpop.f32.mrb[53].mxu0  ;;  %v1165_v61 = vsel %vm1037_vm2, %v6829_v39, -inf  ;;  %v1413_v62 = vsel %vm1037_vm2, %v6829_v39, inf }
 0x14f   :  { %v6830_v44 = vpop.f32.mrb[54].mxu0  ;;  %v1162_v50 = vsel %vm1037_vm2, %v830_v42, -inf  ;;  %v1410_v51 = vsel %vm1037_vm2, %v830_v42, inf }
 0x150   :  { %v1156_v46 = vrot.slane %v1155_v40, 4  ;;  %v1404_v47 = vrot.slane %v1403_v41, 4  ;;  %v833_v48 = vpop.f32.mrb[55].mxu0  ;;  %v1167_v9 = vsel %vm1037_vm2, %v6830_v44, -inf  ;;  %v1415_v12 = vsel %vm1037_vm2, %v6830_v44, inf  ;;  %1981 = vmatpush1.bf16.msra.mxu1 %v7052_v49 }
 0x151   :  { %v1163_v52 = vsel %vm1037_vm2, %v833_v48, -inf  ;;  %v1411_v55 = vsel %vm1037_vm2, %v833_v48, inf  ;;  %1982 = vmatprep.subr.bf16.mxu1 %v7053_v56 }
 0x152   :  { %v1157_v57 = vmax.f32 %v1155_v40, %v1156_v46  ;;  %v1405_v58 = vmin.f32 %v1403_v41, %v1404_v47  ;;  %v1164_v59 = vmax.f32 %v1162_v50, %v1163_v52  ;;  %v1412_v60 = vmin.f32 %v1410_v51, %v1411_v55 }
 0x154   :  { %v1158_v63 = vrot.slane %v1157_v57, 2  ;;  %v1406_v0 = vrot.slane %v1405_v58, 2  ;;  %v1166_v2 = vmax.f32 %v1164_v59, %v1165_v61  ;;  %v1414_v3 = vmin.f32 %v1412_v60, %v1413_v62  ;;  %1983 = vmatpush1.bf16.msra.mxu1 %v7055_v4 }
 0x155   :  { %v6833_v5 = vpop.f32.mrb[56].mxu0  ;;  %1984 = vmatprep.subr.bf16.mxu1 %v7056_v6 }
 0x156   :  { %v1159_v7 = vmax.f32 %v1157_v57, %v1158_v63  ;;  %v1407_v8 = vmin.f32 %v1405_v58, %v1406_v0  ;;  %v846_v13 = vpop.f32.mrb[57].mxu0  ;;  %v1168_v14 = vmax.f32 %v1166_v2, %v1167_v9  ;;  %v1416_v16 = vmin.f32 %v1414_v3, %v1415_v12 }
 0x157   :  { %v1169_v15 = vsel %vm1037_vm2, %v846_v13, -inf  ;;  %v1417_v17 = vsel %vm1037_vm2, %v846_v13, inf  ;;  %v6834_v18 = vpop.f32.mrb[58].mxu0  ;;  %v1173_v30 = vsel %vm1037_vm2, %v6833_v5, -inf  ;;  %v1421_v31 = vsel %vm1037_vm2, %v6833_v5, inf }
 0x158   :  { %v1160_v19 = vrot.slane %v1159_v7, 1  ;;  %v1408_v20 = vrot.slane %v1407_v8, 1  ;;  %v849_v21 = vpop.f32.mrb[59].mxu0  ;;  %v1170_v53 = vmax.f32 %v1168_v14, %v1169_v15  ;;  %v1418_v54 = vmin.f32 %v1416_v16, %v1417_v17  ;;  %1985 = vmatpush1.bf16.msra.mxu1 %v7058_v22 }
 0x159   :  { %v1171_v23 = vsel %vm1037_vm2, %v849_v21, -inf  ;;  %v1419_v24 = vsel %vm1037_vm2, %v849_v21, inf  ;;  %v1175_v38 = vsel %vm1037_vm2, %v6834_v18, -inf  ;;  %v1423_v39 = vsel %vm1037_vm2, %v6834_v18, inf  ;;  %1986 = vmatprep.subr.bf16.mxu1 %v7059_v25 }
 0x15a   :  { %v1161_v26 = vmax.f32 %v1159_v7, %v1160_v19  ;;  %v1409_v27 = vmin.f32 %v1407_v8, %v1408_v20  ;;  %v1172_v28 = vmax.f32 %v1170_v53, %v1171_v23  ;;  %v1420_v29 = vmin.f32 %v1418_v54, %v1419_v24 }
 0x15c   :  { %v8182_v32 = vsel %vm1546_vm5, %v1409_v27, %v8112_v10  ;;  %v8189_v34 = vsel %vm1546_vm5, %v1161_v26, %v8115_v11  ;;  %v1174_v35 = vmax.f32 %v1172_v28, %v1173_v30  ;;  %v1422_v36 = vmin.f32 %v1420_v29, %v1421_v31  ;;  %1987 = vmatpush1.bf16.msra.mxu1 %v7061_v33 }
 0x15d   :  { %v6837_v37 = vpop.f32.mrb[60].mxu0 }
 0x15e   :  { %v862_v40 = vpop.f32.mrb[61].mxu0  ;;  %v1176_v41 = vmax.f32 %v1174_v35, %v1175_v38  ;;  %v1424_v42 = vmin.f32 %v1422_v36, %v1423_v39  ;;  %v1181_v11 = vsel %vm1037_vm2, %v6837_v37, -inf  ;;  %v1429_v45 = vsel %vm1037_vm2, %v6837_v37, inf }
 0x15f   :  { %v1177_v10 = vsel %vm1037_vm2, %v862_v40, -inf  ;;  %v1425_v43 = vsel %vm1037_vm2, %v862_v40, inf  ;;  %v6838_v44 = vpop.f32.mrb[62].mxu0 }
 0x160   :  { %v865_v46 = vpop.f32.mrb[63].mxu0  ;;  %v1178_v47 = vmax.f32 %v1176_v41, %v1177_v10  ;;  %v1426_v48 = vmin.f32 %v1424_v42, %v1425_v43  ;;  %v1183_v58 = vsel %vm1037_vm2, %v6838_v44, -inf  ;;  %v1431_v59 = vsel %vm1037_vm2, %v6838_v44, inf }
 0x161   :  { %v1179_v49 = vsel %vm1037_vm2, %v865_v46, -inf  ;;  %v1427_v50 = vsel %vm1037_vm2, %v865_v46, inf }
 0x162   :  { %v1180_v51 = vmax.f32 %v1178_v47, %v1179_v49  ;;  %v1428_v52 = vmin.f32 %v1426_v48, %v1427_v50 }
 0x164   :  { %v1182_v55 = vmax.f32 %v1180_v51, %v1181_v11  ;;  %v1430_v56 = vmin.f32 %v1428_v52, %v1429_v45 }
 0x165   :  { %v6841_v57 = vpop.f32.mrb[64].mxu0 }
 0x166   :  { %v878_v60 = vpop.f32.mrb[65].mxu0  ;;  %v1184_v61 = vmax.f32 %v1182_v55, %v1183_v58  ;;  %v1432_v63 = vmin.f32 %v1430_v56, %v1431_v59  ;;  %v1194_v3 = vsel %vm1037_vm2, %v6841_v57, -inf  ;;  %v1442_v4 = vsel %vm1037_vm2, %v6841_v57, inf }
 0x167   :  { %v1185_v62 = vsel %vm1037_vm2, %v878_v60, -inf  ;;  %v1433_v0 = vsel %vm1037_vm2, %v878_v60, inf  ;;  %v6842_v2 = vpop.f32.mrb[66].mxu0 }
 0x168   :  { %v881_v5 = vpop.f32.mrb[67].mxu0  ;;  %v1186_v6 = vmax.f32 %v1184_v61, %v1185_v62  ;;  %v1434_v7 = vmin.f32 %v1432_v63, %v1433_v0  ;;  %v1196_v16 = vsel %vm1037_vm2, %v6842_v2, -inf  ;;  %v1444_v17 = vsel %vm1037_vm2, %v6842_v2, inf }
 0x169   :  { %v1193_v8 = vsel %vm1037_vm2, %v881_v5, -inf  ;;  %v1441_v9 = vsel %vm1037_vm2, %v881_v5, inf }
 0x16a   :  { %v1195_v12 = vmax.f32 %v1193_v8, %v1194_v3  ;;  %v1443_v13 = vmin.f32 %v1441_v9, %v1442_v4  ;;  %v1187_v14 = vrot.slane %v1186_v6, 4  ;;  %v1435_v15 = vrot.slane %v1434_v7, 4 }
 0x16c   :  { %v1197_v18 = vmax.f32 %v1195_v12, %v1196_v16  ;;  %v1445_v19 = vmin.f32 %v1443_v13, %v1444_v17  ;;  %v1188_v20 = vmax.f32 %v1186_v6, %v1187_v14  ;;  %v1436_v21 = vmin.f32 %v1434_v7, %v1435_v15 }
 0x16d   :  { %v6845_v22 = vpop.f32.mrb[68].mxu0 }
 0x16e   :  { %v894_v53 = vpop.f32.mrb[69].mxu0  ;;  %v1189_v54 = vrot.slane %v1188_v20, 2  ;;  %v1437_v23 = vrot.slane %v1436_v21, 2  ;;  %v1202_v40 = vsel %vm1037_vm2, %v6845_v22, -inf  ;;  %v1450_v41 = vsel %vm1037_vm2, %v6845_v22, inf }
 0x16f   :  { %v1198_v24 = vsel %vm1037_vm2, %v894_v53, -inf  ;;  %v1446_v25 = vsel %vm1037_vm2, %v894_v53, inf  ;;  %v6846_v26 = vpop.f32.mrb[70].mxu0 }
 0x170   :  { %v1199_v27 = vmax.f32 %v1197_v18, %v1198_v24  ;;  %v1447_v28 = vmin.f32 %v1445_v19, %v1446_v25  ;;  %v897_v29 = vpop.f32.mrb[71].mxu0  ;;  %v1190_v30 = vmax.f32 %v1188_v20, %v1189_v54  ;;  %v1438_v31 = vmin.f32 %v1436_v21, %v1437_v23 }
 0x171   :  { %v1200_v33 = vsel %vm1037_vm2, %v897_v29, -inf  ;;  %v1448_v35 = vsel %vm1037_vm2, %v897_v29, inf  ;;  %v1204_v11 = vsel %vm1037_vm2, %v6846_v26, -inf  ;;  %v1452_v45 = vsel %vm1037_vm2, %v6846_v26, inf }
 0x172   :  { %v1201_v36 = vmax.f32 %v1199_v27, %v1200_v33  ;;  %v1449_v37 = vmin.f32 %v1447_v28, %v1448_v35  ;;  %v1191_v38 = vrot.slane %v1190_v30, 1  ;;  %v1439_v39 = vrot.slane %v1438_v31, 1 }
 0x174   :  { %v1203_v10 = vmax.f32 %v1201_v36, %v1202_v40  ;;  %v1451_v42 = vmin.f32 %v1449_v37, %v1450_v41  ;;  %v1192_v43 = vmax.f32 %v1190_v30, %v1191_v38  ;;  %v1440_v44 = vmin.f32 %v1438_v31, %v1439_v39 }
 0x175   :  { %v6849_v46 = vpop.f32.mrb[72].mxu0 }
 0x176   :  { %v910_v47 = vpop.f32.mrb[73].mxu0  ;;  %v1205_v48 = vmax.f32 %v1203_v10, %v1204_v11  ;;  %v1453_v49 = vmin.f32 %v1451_v42, %v1452_v45  ;;  %v8220_v55 = vsel %vm1548_vm6, %v1440_v44, %v8182_v32  ;;  %v8223_v56 = vsel %vm1548_vm6, %v1192_v43, %v8189_v34 }
 0x177   :  { %v1206_v50 = vsel %vm1037_vm2, %v910_v47, -inf  ;;  %v1454_v51 = vsel %vm1037_vm2, %v910_v47, inf  ;;  %v6850_v52 = vpop.f32.mrb[74].mxu0  ;;  %v1210_v0 = vsel %vm1037_vm2, %v6849_v46, -inf  ;;  %v1458_v2 = vsel %vm1037_vm2, %v6849_v46, inf }
 0x178   :  { %v1207_v57 = vmax.f32 %v1205_v48, %v1206_v50  ;;  %v1455_v58 = vmin.f32 %v1453_v49, %v1454_v51  ;;  %v913_v59 = vpop.f32.mrb[75].mxu0  ;;  %v1212_v32 = vsel %vm1037_vm2, %v6850_v52, -inf  ;;  %v1460_v34 = vsel %vm1037_vm2, %v6850_v52, inf }
 0x179   :  { %v1208_v60 = vsel %vm1037_vm2, %v913_v59, -inf  ;;  %v1456_v61 = vsel %vm1037_vm2, %v913_v59, inf }
 0x17a   :  { %v1209_v62 = vmax.f32 %v1207_v57, %v1208_v60  ;;  %v1457_v63 = vmin.f32 %v1455_v58, %v1456_v61 }
 0x17c   :  { %v1211_v3 = vmax.f32 %v1209_v62, %v1210_v0  ;;  %v1459_v4 = vmin.f32 %v1457_v63, %v1458_v2 }
 0x17d   :  { %v6853_v5 = vpop.f32.mrb[76].mxu0 }
 0x17e   :  { %v926_v6 = vpop.f32.mrb[77].mxu0  ;;  %v1213_v7 = vmax.f32 %v1211_v3, %v1212_v32  ;;  %v1461_v8 = vmin.f32 %v1459_v4, %v1460_v34  ;;  %v1224_v9 = vsel %vm1037_vm2, %v6853_v5, -inf  ;;  %v1472_v12 = vsel %vm1037_vm2, %v6853_v5, inf }
 0x17f   :  { %v1214_v13 = vsel %vm1037_vm2, %v926_v6, -inf  ;;  %v1462_v14 = vsel %vm1037_vm2, %v926_v6, inf  ;;  %v6854_v15 = vpop.f32.mrb[78].mxu0 }
 0x180   :  { %v1215_v16 = vmax.f32 %v1213_v7, %v1214_v13  ;;  %v1463_v17 = vmin.f32 %v1461_v8, %v1462_v14  ;;  %v1225_v18 = vsel %vm1037_vm2, %v6854_v15, -inf  ;;  %v1473_v19 = vsel %vm1037_vm2, %v6854_v15, inf  ;;  %v929_v20 = vpop.f32.mrb[79].mxu0 }
 0x181   :  { %v1226_v21 = vmax.f32 %v1224_v9, %v1225_v18  ;;  %v1474_v22 = vmin.f32 %v1472_v12, %v1473_v19  ;;  %v1216_v53 = vsel %vm1037_vm2, %v929_v20, -inf  ;;  %v1464_v54 = vsel %vm1037_vm2, %v929_v20, inf }
 0x182   :  { %v1217_v23 = vmax.f32 %v1215_v16, %v1216_v53  ;;  %v1465_v24 = vmin.f32 %v1463_v17, %v1464_v54 }
 0x184   :  { %v1218_v25 = vrot.slane %v1217_v23, 4  ;;  %v1466_v26 = vrot.slane %v1465_v24, 4 }
 0x185   :  { %v6857_v27 = vpop.f32.mrb[80].mxu0 }
 0x186   :  { %v1219_v28 = vmax.f32 %v1217_v23, %v1218_v25  ;;  %v1467_v29 = vmin.f32 %v1465_v24, %v1466_v26  ;;  %v942_v30 = vpop.f32.mrb[81].mxu0  ;;  %v1231_v45 = vsel %vm1037_vm2, %v6857_v27, -inf  ;;  %v1479_v46 = vsel %vm1037_vm2, %v6857_v27, inf }
 0x187   :  { %v1227_v31 = vsel %vm1037_vm2, %v942_v30, -inf  ;;  %v1475_v33 = vsel %vm1037_vm2, %v942_v30, inf  ;;  %v6858_v35 = vpop.f32.mrb[82].mxu0 }
 0x188   :  { %v1220_v36 = vrot.slane %v1219_v28, 2  ;;  %v1468_v37 = vrot.slane %v1467_v29, 2  ;;  %v1228_v38 = vmax.f32 %v1226_v21, %v1227_v31  ;;  %v1476_v39 = vmin.f32 %v1474_v22, %v1475_v33  ;;  %v945_v40 = vpop.f32.mrb[83].mxu0 }
 0x189   :  { %v1229_v41 = vsel %vm1037_vm2, %v945_v40, -inf  ;;  %v1477_v10 = vsel %vm1037_vm2, %v945_v40, inf  ;;  %v1233_v58 = vsel %vm1037_vm2, %v6858_v35, -inf  ;;  %v1481_v59 = vsel %vm1037_vm2, %v6858_v35, inf }
 0x18a   :  { %v1221_v42 = vmax.f32 %v1219_v28, %v1220_v36  ;;  %v1469_v43 = vmin.f32 %v1467_v29, %v1468_v37  ;;  %v1230_v44 = vmax.f32 %v1228_v38, %v1229_v41  ;;  %v1478_v11 = vmin.f32 %v1476_v39, %v1477_v10 }
 0x18c   :  { %v1222_v47 = vrot.slane %v1221_v42, 1  ;;  %v1470_v48 = vrot.slane %v1469_v43, 1  ;;  %v1232_v49 = vmax.f32 %v1230_v44, %v1231_v45  ;;  %v1480_v50 = vmin.f32 %v1478_v11, %v1479_v46 }
 0x18d   :  { %v6861_v51 = vpop.f32.mrb[84].mxu0 }
 0x18e   :  { %v1223_v52 = vmax.f32 %v1221_v42, %v1222_v47  ;;  %v1471_v57 = vmin.f32 %v1469_v43, %v1470_v48  ;;  %v958_v60 = vpop.f32.mrb[85].mxu0  ;;  %v1234_v61 = vmax.f32 %v1232_v49, %v1233_v58  ;;  %v1482_v63 = vmin.f32 %v1480_v50, %v1481_v59 }
 0x18f   :  { %v1235_v62 = vsel %vm1037_vm2, %v958_v60, -inf  ;;  %v1483_v0 = vsel %vm1037_vm2, %v958_v60, inf  ;;  %v6862_v2 = vpop.f32.mrb[86].mxu0  ;;  %v1239_v12 = vsel %vm1037_vm2, %v6861_v51, -inf  ;;  %v1487_v13 = vsel %vm1037_vm2, %v6861_v51, inf }
 0x190   :  { %v961_v3 = vpop.f32.mrb[87].mxu0  ;;  %v8250_v4 = vsel %vm1550_vm7, %v1471_v57, %v8220_v55  ;;  %v8253_v32 = vsel %vm1550_vm7, %v1223_v52, %v8223_v56  ;;  %v1236_v34 = vmax.f32 %v1234_v61, %v1235_v62  ;;  %v1484_v5 = vmin.f32 %v1482_v63, %v1483_v0 }
 0x191   :  { %v1237_v6 = vsel %vm1037_vm2, %v961_v3, -inf  ;;  %v1485_v7 = vsel %vm1037_vm2, %v961_v3, inf  ;;  %v1241_v55 = vsel %vm1037_vm2, %v6862_v2, -inf  ;;  %v1489_v56 = vsel %vm1037_vm2, %v6862_v2, inf }
 0x192   :  { %v1238_v8 = vmax.f32 %v1236_v34, %v1237_v6  ;;  %v1486_v9 = vmin.f32 %v1484_v5, %v1485_v7 }
 0x194   :  { %v1240_v14 = vmax.f32 %v1238_v8, %v1239_v12  ;;  %v1488_v15 = vmin.f32 %v1486_v9, %v1487_v13 }
 0x195   :  { %v6865_v16 = vpop.f32.mrb[88].mxu0 }
 0x196   :  { %v974_v17 = vpop.f32.mrb[89].mxu0  ;;  %v1242_v18 = vmax.f32 %v1240_v14, %v1241_v55  ;;  %v1490_v20 = vmin.f32 %v1488_v15, %v1489_v56  ;;  %v1247_v28 = vsel %vm1037_vm2, %v6865_v16, -inf  ;;  %v1495_v29 = vsel %vm1037_vm2, %v6865_v16, inf }
 0x197   :  { %v1243_v19 = vsel %vm1037_vm2, %v974_v17, -inf  ;;  %v1491_v21 = vsel %vm1037_vm2, %v974_v17, inf  ;;  %v6866_v22 = vpop.f32.mrb[90].mxu0 }
 0x198   :  { %v977_v53 = vpop.f32.mrb[91].mxu0  ;;  %v1244_v54 = vmax.f32 %v1242_v18, %v1243_v19  ;;  %v1492_v23 = vmin.f32 %v1490_v20, %v1491_v21  ;;  %v1255_v35 = vsel %vm1037_vm2, %v6866_v22, -inf  ;;  %v1503_v36 = vsel %vm1037_vm2, %v6866_v22, inf }
 0x199   :  { %v1245_v24 = vsel %vm1037_vm2, %v977_v53, -inf  ;;  %v1493_v25 = vsel %vm1037_vm2, %v977_v53, inf }
 0x19a   :  { %v1246_v26 = vmax.f32 %v1244_v54, %v1245_v24  ;;  %v1494_v27 = vmin.f32 %v1492_v23, %v1493_v25 }
 0x19c   :  { %v1248_v30 = vmax.f32 %v1246_v26, %v1247_v28  ;;  %v1496_v31 = vmin.f32 %v1494_v27, %v1495_v29 }
 0x19d   :  { %v6869_v33 = vpop.f32.mrb[92].mxu0 }
 0x19e   :  { %v990_v37 = vpop.f32.mrb[93].mxu0  ;;  %v1249_v38 = vrot.slane %v1248_v30, 4  ;;  %v1497_v39 = vrot.slane %v1496_v31, 4  ;;  %v1260_v52 = vsel %vm1037_vm2, %v6869_v33, -inf  ;;  %v1508_v57 = vsel %vm1037_vm2, %v6869_v33, inf }
 0x19f   :  { %v1256_v40 = vsel %vm1037_vm2, %v990_v37, -inf  ;;  %v1504_v41 = vsel %vm1037_vm2, %v990_v37, inf  ;;  %v6870_v10 = vpop.f32.mrb[94].mxu0 }
 0x1a0   :  { %v1257_v42 = vmax.f32 %v1255_v35, %v1256_v40  ;;  %v1505_v43 = vmin.f32 %v1503_v36, %v1504_v41  ;;  %v993_v44 = vpop.f32.mrb[95].mxu0  ;;  %v1250_v11 = vmax.f32 %v1248_v30, %v1249_v38  ;;  %v1498_v45 = vmin.f32 %v1496_v31, %v1497_v39 }
 0x1a1   :  { %v1258_v46 = vsel %vm1037_vm2, %v993_v44, -inf  ;;  %v1506_v47 = vsel %vm1037_vm2, %v993_v44, inf  ;;  %v1262_v62 = vsel %vm1037_vm2, %v6870_v10, -inf  ;;  %v1510_v63 = vsel %vm1037_vm2, %v6870_v10, inf }
 0x1a2   :  { %v1259_v48 = vmax.f32 %v1257_v42, %v1258_v46  ;;  %v1507_v49 = vmin.f32 %v1505_v43, %v1506_v47  ;;  %v1251_v50 = vrot.slane %v1250_v11, 2  ;;  %v1499_v51 = vrot.slane %v1498_v45, 2 }
 0x1a4   :  { %v1261_v58 = vmax.f32 %v1259_v48, %v1260_v52  ;;  %v1509_v59 = vmin.f32 %v1507_v49, %v1508_v57  ;;  %v1252_v60 = vmax.f32 %v1250_v11, %v1251_v50  ;;  %v1500_v61 = vmin.f32 %v1498_v45, %v1499_v51  ;;  %v7062_v45 = vld [vmem:[%s9933_s3 + $0x18c] ss:$28 sps:$4 sm:$0xff]  }
 0x1a5   :  { %v6873_v0 = vpop.f32.mrb[96].mxu0  ;;  %v7064_v48 = vld [vmem:[%s9933_s3 + $0x188] ss:$28 sps:$4 sm:$0xff]   ;;  %1988 = vmatprep.subr.bf16.mxu1 %v7062_v45  ;;  %v7202_v45 = vld [vmem:[%s9934_s5 + $0x2e0] ss:$28 sps:$4 sm:$0xff]  }
 0x1a6   :  { %v1006_v2 = vpop.f32.mrb[97].mxu0  ;;  %v1263_v3 = vmax.f32 %v1261_v58, %v1262_v62  ;;  %v1511_v34 = vmin.f32 %v1509_v59, %v1510_v63  ;;  %v1253_v5 = vrot.slane %v1252_v60, 1  ;;  %v1501_v9 = vrot.slane %v1500_v61, 1  ;;  %1989 = vmatpush1.bf16.msra.mxu1 %v7064_v48  ;;  %v7067_v51 = vld [vmem:[%s9933_s3 + $0xc] ss:$28 sps:$4 sm:$0xff]  }
 0x1a7   :  { %v1264_v6 = vsel %vm1037_vm2, %v1006_v2, -inf  ;;  %v1512_v7 = vsel %vm1037_vm2, %v1006_v2, inf  ;;  %v6874_v8 = vpop.f32.mrb[98].mxu0  ;;  %v1268_v19 = vsel %vm1037_vm2, %v6873_v0, -inf  ;;  %v1516_v20 = vsel %vm1037_vm2, %v6873_v0, inf  ;;  %2015 = vmatprep.subr.bf16.mxu1 %v7067_v51 }
 0x1a8   :  { %v1265_v12 = vmax.f32 %v1263_v3, %v1264_v6  ;;  %v1513_v13 = vmin.f32 %v1511_v34, %v1512_v7  ;;  %v1009_v14 = vpop.f32.mrb[99].mxu0  ;;  %v1502_v55 = vmin.f32 %v1500_v61, %v1501_v9  ;;  %v1254_v56 = vmax.f32 %v1252_v60, %v1253_v5  ;;  %v7121_v3 = vld [vmem:[%s9934_s5 + $0x8] ss:$28 sps:$4 sm:$0xff]   ;;  %v7124_v6 = vld [vmem:[%s9934_s5 + $0x40] ss:$28 sps:$4 sm:$0xff]  }
 0x1a9   :  { %v1266_v15 = vsel %vm1037_vm2, %v1009_v14, -inf  ;;  %v1514_v16 = vsel %vm1037_vm2, %v1009_v14, inf  ;;  %v1270_v23 = vsel %vm1037_vm2, %v6874_v8, -inf  ;;  %v1518_v24 = vsel %vm1037_vm2, %v6874_v8, inf  ;;  %v7123_v34 = vld [vmem:[%s9934_s5 + $0xc] ss:$28 sps:$4 sm:$0xff]  }
 0x1aa   :  { %v1267_v17 = vmax.f32 %v1265_v12, %v1266_v15  ;;  %v1515_v18 = vmin.f32 %v1513_v13, %v1514_v16  ;;  %v1570_v21 = vsel %vm1552_vm8, %v1502_v55, %v8250_v4  ;;  %v1553_v22 = vsel %vm1552_vm8, %v1254_v56, %v8253_v32  ;;  %v7126_v5 = vld [vmem:[%s9934_s5 + $0x44] ss:$28 sps:$4 sm:$0xff]   ;;  %4816 = vmatprep.subr.bf16.mxu0 %v7123_v34  ;;  %v7129_v7 = vld [vmem:[%s9934_s5 + $0x7c] ss:$28 sps:$4 sm:$0xff]   ;;  %v7132_v9 = vld [vmem:[%s9934_s5 + $0xb4] ss:$28 sps:$4 sm:$0xff]  }
 0x1ab   :  { %4817 = vmatpush1.bf16.msra.mxu0 %v7121_v3  ;;  %v7127_v8 = vld [vmem:[%s9934_s5 + $0x78] ss:$28 sps:$4 sm:$0xff]   ;;  %v7130_v12 = vld [vmem:[%s9934_s5 + $0xb0] ss:$28 sps:$4 sm:$0xff]   ;;  %v7142_v14 = vld [vmem:[%s9934_s5 + $0xe8] ss:$28 sps:$4 sm:$0xff]  }
 0x1ac   :  { %v1269_v53 = vmax.f32 %v1267_v17, %v1268_v19  ;;  %v1517_v54 = vmin.f32 %v1515_v18, %v1516_v20  ;;  %4818 = vmatprep.subr.bf16.mxu0 %v7126_v5  ;;  %v7144_v13 = vld [vmem:[%s9934_s5 + $0xec] ss:$28 sps:$4 sm:$0xff]   ;;  %v7156_v15 = vld [vmem:[%s9934_s5 + $0x124] ss:$28 sps:$4 sm:$0xff]   ;;  %v7162_v55 = vld [vmem:[%s9934_s5 + $0x15c] ss:$28 sps:$4 sm:$0xff]  }
 0x1ad   :  { %v6877_v25 = vpop.f32.mrb[100].mxu0  ;;  %v7154_v16 = vld [vmem:[%s9934_s5 + $0x120] ss:$28 sps:$4 sm:$0xff]   ;;  %v7160_v17 = vld [vmem:[%s9934_s5 + $0x158] ss:$28 sps:$4 sm:$0xff]   ;;  %v7739_v5 = vmov 0.0  }
 0x1ae   :  { %v1022_v26 = vpop.f32.mrb[101].mxu0  ;;  %v1271_v27 = vmax.f32 %v1269_v53, %v1270_v23  ;;  %v1519_v28 = vmin.f32 %v1517_v54, %v1518_v24  ;;  %v1276_v39 = vsel %vm1037_vm2, %v6877_v25, -inf  ;;  %v1524_v40 = vsel %vm1037_vm2, %v6877_v25, inf  ;;  %v6046_v56 = vld [vmem:[%s9935_s2] ss:$0 sm:$0xff] }
 0x1af   :  { %v1272_v29 = vsel %vm1037_vm2, %v1022_v26, -inf  ;;  %v1520_v30 = vsel %vm1037_vm2, %v1022_v26, inf  ;;  %v6878_v31 = vpop.f32.mrb[102].mxu0  ;;  %4819 = vmatpush1.bf16.msra.mxu0 %v7124_v6  ;;  %v7168_v19 = vld [vmem:[%s9934_s5 + $0x194] ss:$28 sps:$4 sm:$0xff]  }
 0x1b0   :  { %v1273_v33 = vmax.f32 %v1271_v27, %v1272_v29  ;;  %v1521_v35 = vmin.f32 %v1519_v28, %v1520_v30  ;;  %v1025_v4 = vpop.f32.mrb[103].mxu0  ;;  %v1278_v42 = vsel %vm1037_vm2, %v6878_v31, -inf  ;;  %v1526_v43 = vsel %vm1037_vm2, %v6878_v31, inf  ;;  %4820 = vmatprep.subr.bf16.mxu0 %v7129_v7  ;;  %v7070_v53 = vld [vmem:[%s9933_s3 + $0x44] ss:$28 sps:$4 sm:$0xff]  }
 0x1b1   :  { %v1274_v32 = vsel %vm1037_vm2, %v1025_v4, -inf  ;;  %v1522_v36 = vsel %vm1037_vm2, %v1025_v4, inf  ;;  %v7166_v23 = vld [vmem:[%s9934_s5 + $0x190] ss:$28 sps:$4 sm:$0xff]   ;;  %v7068_v25 = vld [vmem:[%s9933_s3 + $0x40] ss:$28 sps:$4 sm:$0xff]  }
 0x1b2   :  { %v1275_v37 = vmax.f32 %v1273_v33, %v1274_v32  ;;  %v1523_v38 = vmin.f32 %v1521_v35, %v1522_v36  ;;  %v7174_v24 = vld [vmem:[%s9934_s5 + $0x1cc] ss:$28 sps:$4 sm:$0xff]   ;;  %v7073_v26 = vld [vmem:[%s9933_s3 + $0x7c] ss:$28 sps:$4 sm:$0xff]   ;;  %v7180_v28 = vld [vmem:[%s9934_s5 + $0x204] ss:$28 sps:$4 sm:$0xff]  }
 0x1b3   :  { %4821 = vmatpush1.bf16.msra.mxu0 %v7127_v8  ;;  %v7172_v27 = vld [vmem:[%s9934_s5 + $0x1c8] ss:$28 sps:$4 sm:$0xff]   ;;  %v7071_v29 = vld [vmem:[%s9933_s3 + $0x78] ss:$28 sps:$4 sm:$0xff]   ;;  %v7178_v31 = vld [vmem:[%s9934_s5 + $0x200] ss:$28 sps:$4 sm:$0xff]  }
 0x1b4   :  { %v1277_v41 = vmax.f32 %v1275_v37, %v1276_v39  ;;  %v1525_v10 = vmin.f32 %v1523_v38, %v1524_v40  ;;  %4822 = vmatprep.subr.bf16.mxu0 %v7132_v9  ;;  %v7076_v30 = vld [vmem:[%s9933_s3 + $0xb4] ss:$28 sps:$4 sm:$0xff]   ;;  %v7186_v33 = vld [vmem:[%s9934_s5 + $0x23c] ss:$28 sps:$4 sm:$0xff]   ;;  %v7079_v4 = vld [vmem:[%s9933_s3 + $0xec] ss:$28 sps:$4 sm:$0xff]  }
 0x1b5   :  { %v7074_v35 = vld [vmem:[%s9933_s3 + $0xb0] ss:$28 sps:$4 sm:$0xff]   ;;  %v7184_v32 = vld [vmem:[%s9934_s5 + $0x238] ss:$28 sps:$4 sm:$0xff]   ;;  %v7077_v37 = vld [vmem:[%s9933_s3 + $0xe8] ss:$28 sps:$4 sm:$0xff]  }
 0x1b6   :  { %v1279_v44 = vmax.f32 %v1277_v41, %v1278_v42  ;;  %v1527_v11 = vmin.f32 %v1525_v10, %v1526_v43  ;;  %v7192_v36 = vld [vmem:[%s9934_s5 + $0x274] ss:$28 sps:$4 sm:$0xff]   ;;  %v7082_v38 = vld [vmem:[%s9933_s3 + $0x124] ss:$28 sps:$4 sm:$0xff]   ;;  %v7198_v40 = vld [vmem:[%s9934_s5 + $0x2ac] ss:$28 sps:$4 sm:$0xff]  }
 0x1b7   :  { %4823 = vmatpush1.bf16.msra.mxu0 %v7130_v12  ;;  %v7190_v39 = vld [vmem:[%s9934_s5 + $0x270] ss:$28 sps:$4 sm:$0xff]   ;;  %v7080_v41 = vld [vmem:[%s9933_s3 + $0x120] ss:$28 sps:$4 sm:$0xff]   ;;  %v7196_v42 = vld [vmem:[%s9934_s5 + $0x2a8] ss:$28 sps:$4 sm:$0xff]  }
 0x1b8   :  { %v1280_v46 = vrot.slane %v1279_v44, 4  ;;  %v1528_v47 = vrot.slane %v1527_v11, 4  ;;  %4824 = vmatprep.subr.bf16.mxu0 %v7144_v13  ;;  %v7085_v10 = vld [vmem:[%s9933_s3 + $0x15c] ss:$28 sps:$4 sm:$0xff]   ;;  %v7204_v43 = vld [vmem:[%s9934_s5 + $0x2e4] ss:$28 sps:$4 sm:$0xff]  }
 0x1b9   :  { %v7089_v48 = vld [vmem:[%s9933_s3 + $0x10] ss:$28 sps:$4 sm:$0xff]   ;;  %v7097_v51 = vld [vmem:[%s9933_s3 + $0x84] ss:$28 sps:$4 sm:$0xff]   ;;  %v7110_v3 = vld [vmem:[%s9933_s3 + $0x198] ss:$28 sps:$4 sm:$0xff]  }
 0x1ba   :  { %v1281_v49 = vmax.f32 %v1279_v44, %v1280_v46  ;;  %v1529_v50 = vmin.f32 %v1527_v11, %v1528_v47  ;;  %v7083_v44 = vld [vmem:[%s9933_s3 + $0x158] ss:$28 sps:$4 sm:$0xff]   ;;  %v7086_v46 = vld [vmem:[%s9933_s3 + $0x190] ss:$28 sps:$4 sm:$0xff]   ;;  %v7115_v7 = vld [vmem:[%s9933_s3 + $0x88] ss:$28 sps:$4 sm:$0xff]  }
 0x1bb   :  { %4825 = vmatpush1.bf16.msra.mxu0 %v7142_v14  ;;  %v7088_v11 = vld [vmem:[%s9933_s3 + $0x194] ss:$28 sps:$4 sm:$0xff]   ;;  %v7116_v8 = vld [vmem:[%s9933_s3 + $0xc0] ss:$28 sps:$4 sm:$0xff]   ;;  %v7119_v14 = vld [vmem:[%s9933_s3 + $0x168] ss:$28 sps:$4 sm:$0xff]  }
 0x1bc   :  { %v1282_v52 = vrot.slane %v1281_v49, 2  ;;  %v1530_v57 = vrot.slane %v1529_v50, 2  ;;  %4826 = vmatprep.subr.bf16.mxu0 %v7156_v15  ;;  %v7091_v47 = vld [vmem:[%s9933_s3 + $0x14] ss:$28 sps:$4 sm:$0xff]   ;;  %v7210_v13 = vld [vmem:[%s9934_s5 + $0x31c] ss:$28 sps:$4 sm:$0xff]  }
 0x1bd   :  { %v7113_v34 = vld [vmem:[%s9933_s3 + $0x18] ss:$28 sps:$4 sm:$0xff]   ;;  %v7114_v6 = vld [vmem:[%s9933_s3 + $0x50] ss:$28 sps:$4 sm:$0xff]  }
 0x1be   :  { %v1531_v58 = vmin.f32 %v1529_v50, %v1530_v57  ;;  %v1283_v59 = vmax.f32 %v1281_v49, %v1282_v52  ;;  %v7094_v49 = vld [vmem:[%s9933_s3 + $0x4c] ss:$28 sps:$4 sm:$0xff]   ;;  %v7095_v52 = vld [vmem:[%s9933_s3 + $0x80] ss:$28 sps:$4 sm:$0xff]   ;;  %v7117_v9 = vld [vmem:[%s9933_s3 + $0xf8] ss:$28 sps:$4 sm:$0xff]  }
 0x1bf   :  { %4827 = vmatpush1.bf16.msra.mxu0 %v7154_v16  ;;  %v7092_v50 = vld [vmem:[%s9933_s3 + $0x48] ss:$28 sps:$4 sm:$0xff]   ;;  %v7100_v57 = vld [vmem:[%s9933_s3 + $0xbc] ss:$28 sps:$4 sm:$0xff]   ;;  %v7118_v12 = vld [vmem:[%s9933_s3 + $0x130] ss:$28 sps:$4 sm:$0xff]  }
 0x1c0   :  { %v1532_v60 = vrot.slane %v1531_v58, 1  ;;  %v1284_v61 = vrot.slane %v1283_v59, 1  ;;  %4828 = vmatprep.subr.bf16.mxu0 %v7162_v55  ;;  %v7208_v15 = vld [vmem:[%s9934_s5 + $0x318] ss:$28 sps:$4 sm:$0xff]   ;;  %v7120_v55 = vld [vmem:[%s9933_s3 + $0x1a0] ss:$28 sps:$4 sm:$0xff]  }
 0x1c1   :  { %v7216_v16 = vld [vmem:[%s9934_s5 + $0x354] ss:$28 sps:$4 sm:$0xff]  }
 0x1c2   :  { %v1533_v62 = vmin.f32 %v1531_v58, %v1532_v60  ;;  %v1285_v63 = vmax.f32 %v1283_v59, %v1284_v61  ;;  %v7098_v58 = vld [vmem:[%s9933_s3 + $0xb8] ss:$28 sps:$4 sm:$0xff]   ;;  %v7101_v60 = vld [vmem:[%s9933_s3 + $0xf0] ss:$28 sps:$4 sm:$0xff]  }
 0x1c3   :  { %4829 = vmatpush1.bf16.msra.mxu0 %v7160_v17  ;;  %v7103_v59 = vld [vmem:[%s9933_s3 + $0xf4] ss:$28 sps:$4 sm:$0xff]   ;;  %v7106_v61 = vld [vmem:[%s9933_s3 + $0x12c] ss:$28 sps:$4 sm:$0xff]   ;;  %v7135_v17 = vld [vmem:[%s9934_s5 + $0x4] ss:$28 sps:$4 sm:$0xff]  }
 0x1c4   :  { %v1571_v0 = vsel %vm1554_vm9, %v1533_v62, %v1570_v21  ;;  %v1555_v2 = vsel %vm1554_vm9, %v1285_v63, %v1553_v22  ;;  %v7065_v22 = vld [vmem:[%s9933_s3 + $0x8] ss:$28 sps:$4 sm:$0xff]   ;;  %4830 = vmatprep.subr.bf16.mxu0 %v7168_v19  ;;  %v7133_v19 = vld [vmem:[%s9934_s5] ss:$28 sps:$4 sm:$0xff]  }
 0x1c5   :  { %1572 = vrot.lane.b32.xlu0 %v1571_v0, %s7738_s1  ;;  %v7104_v62 = vld [vmem:[%s9933_s3 + $0x128] ss:$28 sps:$4 sm:$0xff]   ;;  %v7107_v0 = vld [vmem:[%s9933_s3 + $0x160] ss:$28 sps:$4 sm:$0xff]  }
 0x1c6   :  { %v7109_v63 = vld [vmem:[%s9933_s3 + $0x164] ss:$28 sps:$4 sm:$0xff]  }
 0x1c7   :  { %4831 = vmatpush1.bf16.msra.mxu0 %v7166_v23  ;;  %v7145_v23 = vld [vmem:[%s9934_s5 + $0xa8] ss:$28 sps:$4 sm:$0xff]  }
 0x1c8   :  { %4832 = vmatprep.subr.bf16.mxu0 %v7174_v24  ;;  %v7150_v24 = vld [vmem:[%s9934_s5 + $0xe4] ss:$28 sps:$4 sm:$0xff]  }
 0x1cb   :  { %4833 = vmatpush1.bf16.msra.mxu0 %v7172_v27  ;;  %v7151_v27 = vld [vmem:[%s9934_s5 + $0x118] ss:$28 sps:$4 sm:$0xff]  }
 0x1cc   :  { %4834 = vmatprep.subr.bf16.mxu0 %v7180_v28  ;;  %v7159_v28 = vld [vmem:[%s9934_s5 + $0x154] ss:$28 sps:$4 sm:$0xff]  }
 0x1cf   :  { %4835 = vmatpush1.bf16.msra.mxu0 %v7178_v31  ;;  %v7163_v31 = vld [vmem:[%s9934_s5 + $0x188] ss:$28 sps:$4 sm:$0xff]  }
 0x1d0   :  { %4836 = vmatprep.subr.bf16.mxu0 %v7186_v33  ;;  %v7171_v33 = vld [vmem:[%s9934_s5 + $0x1c4] ss:$28 sps:$4 sm:$0xff]  }
 0x1d3   :  { %4837 = vmatpush1.bf16.msra.mxu0 %v7184_v32  ;;  %v7175_v32 = vld [vmem:[%s9934_s5 + $0x1f8] ss:$28 sps:$4 sm:$0xff]  }
 0x1d4   :  { %4838 = vmatprep.subr.bf16.mxu0 %v7192_v36  ;;  %v7183_v36 = vld [vmem:[%s9934_s5 + $0x234] ss:$28 sps:$4 sm:$0xff]  }
 0x1d7   :  { %4839 = vmatpush1.bf16.msra.mxu0 %v7190_v39  ;;  %v7187_v39 = vld [vmem:[%s9934_s5 + $0x268] ss:$28 sps:$4 sm:$0xff]  }
 0x1d8   :  { %4840 = vmatprep.subr.bf16.mxu0 %v7198_v40  ;;  %v7195_v40 = vld [vmem:[%s9934_s5 + $0x2a4] ss:$28 sps:$4 sm:$0xff]  }
 0x1db   :  { %4841 = vmatpush1.bf16.msra.mxu0 %v7196_v42  ;;  %v7199_v42 = vld [vmem:[%s9934_s5 + $0x2d8] ss:$28 sps:$4 sm:$0xff]  }
 0x1dc   :  { %4842 = vmatprep.subr.bf16.mxu0 %v7204_v43  ;;  %v7207_v43 = vld [vmem:[%s9934_s5 + $0x314] ss:$28 sps:$4 sm:$0xff]  }
 0x1df   :  { %4843 = vmatpush1.bf16.msra.mxu0 %v7202_v45  ;;  %v7211_v45 = vld [vmem:[%s9934_s5 + $0x348] ss:$28 sps:$4 sm:$0xff]  }
 0x1e0   :  { %4844 = vmatprep.subr.bf16.mxu0 %v7210_v13  ;;  %v7226_v13 = vld [vmem:[%s9934_s5 + $0x3c0] ss:$28 sps:$4 sm:$0xff]  }
 0x1e3   :  { %4845 = vmatpush1.bf16.msra.mxu0 %v7208_v15  ;;  %v7234_v15 = vld [vmem:[%s9934_s5 + $0x3fc] ss:$28 sps:$4 sm:$0xff]  }
 0x1e4   :  { %4846 = vmatprep.subr.bf16.mxu0 %v7216_v16  ;;  %v7229_v16 = vld [vmem:[%s9934_s5 + $0x3f0] ss:$28 sps:$4 sm:$0xff]  }
 0x237   :  { %v1573_v18 = vpop.permute.xlu0 %1572 }
 0x238   :  { %v1575_v20 = vsel %vm1037_vm2, %v1555_v2, %v1573_v18  ;;  %v7112_v2 = vld [vmem:[%s9933_s3 + $0x19c] ss:$28 sps:$4 sm:$0xff]   ;;  %v7222_v18 = vld [vmem:[%s9934_s5 + $0x38c] ss:$28 sps:$4 sm:$0xff]  }
 0x239   :  { %v1583_v21 = vadd.f32 %v6046_v56, %v1575_v20  ;;  %v7214_v56 = vld [vmem:[%s9934_s5 + $0x350] ss:$28 sps:$4 sm:$0xff]   ;;  %v7138_v20 = vld [vmem:[%s9934_s5 + $0x3c] ss:$28 sps:$4 sm:$0xff]  }
 0x23a   :  { %4847 = vmatpush1.bf16.msra.mxu0 %v7214_v56  ;;  %v7237_v56 = vld [vmem:[%s9934_s5 + $0x42c] ss:$28 sps:$4 sm:$0xff]  }
 0x23b   :  { %v8359_v54 = vpack.c.bf16 %v1583_v21, %v1583_v21  ;;  %4857 = vmatprep.subr.bf16.mxu0 %v7222_v18  ;;  %v7136_v21 = vld [vmem:[%s9934_s5 + $0x38] ss:$28 sps:$4 sm:$0xff]   ;;  %v7235_v18 = vld [vmem:[%s9934_s5 + $0x428] ss:$28 sps:$4 sm:$0xff]  }
 0x23d   :  { %2007 = vmatmul.mubr.bf16.vlgmr.msra.gmra.mrb[0].mxu1 %v8359_v54 }
 0x23e   :  { %2016 = vmatpush1.bf16.msra.mxu1 %v7065_v22  ;;  %2047 = vmatprep.mubr.bf16.mxu1 %v7737_v1  ;;  %v7141_v22 = vld [vmem:[%s9934_s5 + $0x74] ss:$28 sps:$4 sm:$0xff]  }
 0x23f   :  { %2017 = vmatprep.subr.bf16.mxu1 %v7070_v53  ;;  %v7139_v53 = vld [vmem:[%s9934_s5 + $0x70] ss:$28 sps:$4 sm:$0xff]  }
 0x242   :  { %2018 = vmatpush1.bf16.msra.mxu1 %v7068_v25  ;;  %v7148_v25 = vld [vmem:[%s9934_s5 + $0xe0] ss:$28 sps:$4 sm:$0xff]  }
 0x243   :  { %2019 = vmatprep.subr.bf16.mxu1 %v7073_v26  ;;  %v7153_v26 = vld [vmem:[%s9934_s5 + $0x11c] ss:$28 sps:$4 sm:$0xff]  }
 0x246   :  { %2020 = vmatpush1.bf16.msra.mxu1 %v7071_v29  ;;  %v7157_v29 = vld [vmem:[%s9934_s5 + $0x150] ss:$28 sps:$4 sm:$0xff]  }
 0x247   :  { %2021 = vmatprep.subr.bf16.mxu1 %v7076_v30  ;;  %v7165_v30 = vld [vmem:[%s9934_s5 + $0x18c] ss:$28 sps:$4 sm:$0xff]  }
 0x24a   :  { %2022 = vmatpush1.bf16.msra.mxu1 %v7074_v35  ;;  %v7169_v35 = vld [vmem:[%s9934_s5 + $0x1c0] ss:$28 sps:$4 sm:$0xff]  }
 0x24b   :  { %2023 = vmatprep.subr.bf16.mxu1 %v7079_v4  ;;  %v7177_v4 = vld [vmem:[%s9934_s5 + $0x1fc] ss:$28 sps:$4 sm:$0xff]  }
 0x24e   :  { %2024 = vmatpush1.bf16.msra.mxu1 %v7077_v37  ;;  %v7181_v37 = vld [vmem:[%s9934_s5 + $0x230] ss:$28 sps:$4 sm:$0xff]  }
 0x24f   :  { %2025 = vmatprep.subr.bf16.mxu1 %v7082_v38  ;;  %v7189_v38 = vld [vmem:[%s9934_s5 + $0x26c] ss:$28 sps:$4 sm:$0xff]  }
 0x252   :  { %2026 = vmatpush1.bf16.msra.mxu1 %v7080_v41  ;;  %v7193_v41 = vld [vmem:[%s9934_s5 + $0x2a0] ss:$28 sps:$4 sm:$0xff]  }
 0x253   :  { %2027 = vmatprep.subr.bf16.mxu1 %v7085_v10  ;;  %v7201_v10 = vld [vmem:[%s9934_s5 + $0x2dc] ss:$28 sps:$4 sm:$0xff]  }
 0x256   :  { %2028 = vmatpush1.bf16.msra.mxu1 %v7083_v44  ;;  %v7205_v44 = vld [vmem:[%s9934_s5 + $0x310] ss:$28 sps:$4 sm:$0xff]  }
 0x257   :  { %2029 = vmatprep.subr.bf16.mxu1 %v7088_v11  ;;  %v7213_v11 = vld [vmem:[%s9934_s5 + $0x34c] ss:$28 sps:$4 sm:$0xff]  }
 0x25a   :  { %2030 = vmatpush1.bf16.msra.mxu1 %v7086_v46  ;;  %v7219_v46 = vld [vmem:[%s9934_s5 + $0x384] ss:$28 sps:$4 sm:$0xff]  }
 0x25b   :  { %2056 = vmatprep.subr.bf16.mxu1 %v7091_v47  ;;  %v1651_v47 = vlaneseq }
 0x25d   :  { %2048 = vmatmul.mubr.bf16.vlgmr.msra.gmra.mrb[4].mxu1 %v8359_v54 }
 0x25e   :  { %2057 = vmatpush1.bf16.msra.mxu1 %v7089_v48  ;;  %2088 = vmatprep.mubr.bf16.mxu1 %v7737_v1  ;;  %v8641_v48 = vshrl.u32 %v1651_v47, 7  ;;  %v7271_v47 = vld [vmem:[%s9934_s5 + $0x578] ss:$28 sps:$4 sm:$0xff]  }
 0x25f   :  { %2058 = vmatprep.subr.bf16.mxu1 %v7094_v49 }
 0x260   :  { %v1653_v49 = vsub.s32 0, %v8641_v48 }
 0x262   :  { %2059 = vmatpush1.bf16.msra.mxu1 %v7092_v50  ;;  %v8647_v50 = vld [vmem:[%s9936_s4] sm:$0xff] }
 0x263   :  { %2060 = vmatprep.subr.bf16.mxu1 %v7097_v51  ;;  %v1657_v51 = vsub.s32 1, %v8641_v48 }
 0x266   :  { %2061 = vmatpush1.bf16.msra.mxu1 %v7095_v52  ;;  %v1654_v52 = vrot.slane %v8647_v50, %v1653_v49 }
 0x267   :  { %2062 = vmatprep.subr.bf16.mxu1 %v7100_v57  ;;  %v1658_v57 = vrot.slane %v8647_v50, %v1657_v51 }
 0x26a   :  { %2063 = vmatpush1.bf16.msra.mxu1 %v7098_v58 }
 0x26b   :  { %2064 = vmatprep.subr.bf16.mxu1 %v7103_v59 }
 0x26e   :  { %2065 = vmatpush1.bf16.msra.mxu1 %v7101_v60 }
 0x26f   :  { %2066 = vmatprep.subr.bf16.mxu1 %v7106_v61 }
 0x272   :  { %2067 = vmatpush1.bf16.msra.mxu1 %v7104_v62 }
 0x273   :  { %2068 = vmatprep.subr.bf16.mxu1 %v7109_v63 }
 0x276   :  { %2069 = vmatpush1.bf16.msra.mxu1 %v7107_v0 }
 0x277   :  { %2070 = vmatprep.subr.bf16.mxu1 %v7112_v2 }
 0x27a   :  { %2071 = vmatpush1.bf16.msra.mxu1 %v7110_v3 }
 0x27b   :  { %6879 = vmatprep.subr.bf16.mxu1 %v7739_v5 }
 0x27d   :  { %2089 = vmatmul.mubr.bf16.vlgmr.msra.gmra.mrb[8].mxu1 %v8359_v54 }
 0x27e   :  { %6880 = vmatpush3.bf16.msra.mxu1 %v7113_v34  ;;  %6895 = vmatprep.mubr.msk.bf16.mxu1 %vm7740_vm10, %v7739_v5  ;;  %v7217_v34 = vld [vmem:[%s9934_s5 + $0x380] ss:$28 sps:$4 sm:$0xff]  }
 0x27f   :  { %6881 = vmatprep.subr.bf16.mxu1 %v7739_v5 }
 0x282   :  { %6882 = vmatpush3.bf16.msra.mxu1 %v7114_v6  ;;  %v7220_v6 = vld [vmem:[%s9934_s5 + $0x388] ss:$28 sps:$4 sm:$0xff]  }
 0x283   :  { %6883 = vmatprep.subr.bf16.mxu1 %v7739_v5 }
 0x286   :  { %6884 = vmatpush3.bf16.msra.mxu1 %v7115_v7 }
 0x287   :  { %6885 = vmatprep.subr.bf16.mxu1 %v7739_v5 }
 0x28a   :  { %6886 = vmatpush3.bf16.msra.mxu1 %v7116_v8  ;;  %v7225_v8 = vld [vmem:[%s9934_s5 + $0x3bc] ss:$28 sps:$4 sm:$0xff]  }
 0x28b   :  { %6887 = vmatprep.subr.bf16.mxu1 %v7739_v5 }
 0x28e   :  { %6888 = vmatpush3.bf16.msra.mxu1 %v7117_v9  ;;  %v7228_v9 = vld [vmem:[%s9934_s5 + $0x3c4] ss:$28 sps:$4 sm:$0xff]  }
 0x28f   :  { %6889 = vmatprep.subr.bf16.mxu1 %v7739_v5 }
 0x292   :  { %6890 = vmatpush3.bf16.msra.mxu1 %v7118_v12  ;;  %v7223_v12 = vld [vmem:[%s9934_s5 + $0x3b8] ss:$28 sps:$4 sm:$0xff]  }
 0x293   :  { %6891 = vmatprep.subr.bf16.mxu1 %v7739_v5 }
 0x296   :  { %6892 = vmatpush3.bf16.msra.mxu1 %v7119_v14  ;;  %v7231_v14 = vld [vmem:[%s9934_s5 + $0x3f4] ss:$28 sps:$4 sm:$0xff]  }
 0x297   :  { %6893 = vmatprep.subr.bf16.mxu1 %v7739_v5 }
 0x29a   :  { %6894 = vmatpush3.bf16.msra.mxu1 %v7120_v55  ;;  %v7232_v55 = vld [vmem:[%s9934_s5 + $0x3f8] ss:$28 sps:$4 sm:$0xff]  }
 0x29b   :  { %4652 = vmatprep.subr.bf16.mxu1 %v7135_v17  ;;  %v7240_v17 = vld [vmem:[%s9934_s5 + $0x434] ss:$28 sps:$4 sm:$0xff]  }
 0x29d   :  { %6896 = vmatmul.mubr.bf16.vlgmr.msra.gmra.mrb[12].mxu1 %v8359_v54  ;;  %v7147_v54 = vld [vmem:[%s9934_s5 + $0xac] ss:$28 sps:$4 sm:$0xff]  }
 0x29e   :  { %4653 = vmatpush1.bf16.msra.mxu1 %v7133_v19  ;;  %v7238_v19 = vld [vmem:[%s9934_s5 + $0x430] ss:$28 sps:$4 sm:$0xff]  }
 0x29f   :  { %4654 = vmatprep.subr.bf16.mxu1 %v7138_v20  ;;  %v7243_v20 = vld [vmem:[%s9934_s5 + $0x464] ss:$28 sps:$4 sm:$0xff]  }
 0x2a2   :  { %4655 = vmatpush1.bf16.msra.mxu1 %v7136_v21  ;;  %v7246_v21 = vld [vmem:[%s9934_s5 + $0x46c] ss:$28 sps:$4 sm:$0xff]  }
 0x2a3   :  { %4656 = vmatprep.subr.bf16.mxu1 %v7141_v22  ;;  %v7241_v22 = vld [vmem:[%s9934_s5 + $0x460] ss:$28 sps:$4 sm:$0xff]  }
 0x2a6   :  { %4657 = vmatpush1.bf16.msra.mxu1 %v7139_v53  ;;  %v7244_v53 = vld [vmem:[%s9934_s5 + $0x468] ss:$28 sps:$4 sm:$0xff]  }
 0x2a7   :  { %4658 = vmatprep.subr.bf16.mxu1 %v7147_v54  ;;  %v7249_v54 = vld [vmem:[%s9934_s5 + $0x49c] ss:$28 sps:$4 sm:$0xff]  }
 0x2aa   :  { %4659 = vmatpush1.bf16.msra.mxu1 %v7145_v23  ;;  %v7252_v23 = vld [vmem:[%s9934_s5 + $0x4a4] ss:$28 sps:$4 sm:$0xff]  }
 0x2ab   :  { %4660 = vmatprep.subr.bf16.mxu1 %v7150_v24  ;;  %v7247_v24 = vld [vmem:[%s9934_s5 + $0x498] ss:$28 sps:$4 sm:$0xff]  }
 0x2ae   :  { %4661 = vmatpush1.bf16.msra.mxu1 %v7148_v25  ;;  %v7250_v25 = vld [vmem:[%s9934_s5 + $0x4a0] ss:$28 sps:$4 sm:$0xff]  }
 0x2af   :  { %4662 = vmatprep.subr.bf16.mxu1 %v7153_v26  ;;  %v1665_v26 = vsub.s32 3, %v8641_v48 }
 0x2b2   :  { %4663 = vmatpush1.bf16.msra.mxu1 %v7151_v27  ;;  %v7255_v27 = vld [vmem:[%s9934_s5 + $0x4d4] ss:$28 sps:$4 sm:$0xff]  }
 0x2b3   :  { %4664 = vmatprep.subr.bf16.mxu1 %v7159_v28  ;;  %v7258_v28 = vld [vmem:[%s9934_s5 + $0x4dc] ss:$28 sps:$4 sm:$0xff]  }
 0x2b6   :  { %4665 = vmatpush1.bf16.msra.mxu1 %v7157_v29  ;;  %v1666_v29 = vrot.slane %v8647_v50, %v1665_v26 }
 0x2b7   :  { %4666 = vmatprep.subr.bf16.mxu1 %v7165_v30  ;;  %v7253_v30 = vld [vmem:[%s9934_s5 + $0x4d0] ss:$28 sps:$4 sm:$0xff]  }
 0x2ba   :  { %4667 = vmatpush1.bf16.msra.mxu1 %v7163_v31  ;;  %v7256_v31 = vld [vmem:[%s9934_s5 + $0x4d8] ss:$28 sps:$4 sm:$0xff]  }
 0x2bb   :  { %4668 = vmatprep.subr.bf16.mxu1 %v7171_v33  ;;  %v7261_v33 = vld [vmem:[%s9934_s5 + $0x50c] ss:$28 sps:$4 sm:$0xff]  }
 0x2be   :  { %4669 = vmatpush1.bf16.msra.mxu1 %v7169_v35  ;;  %v7264_v35 = vld [vmem:[%s9934_s5 + $0x514] ss:$28 sps:$4 sm:$0xff]  }
 0x2bf   :  { %4670 = vmatprep.subr.bf16.mxu1 %v7177_v4 }
 0x2c2   :  { %4671 = vmatpush1.bf16.msra.mxu1 %v7175_v32 }
 0x2c3   :  { %4672 = vmatprep.subr.bf16.mxu1 %v7183_v36 }
 0x2c6   :  { %4673 = vmatpush1.bf16.msra.mxu1 %v7181_v37 }
 0x2c7   :  { %4674 = vmatprep.subr.bf16.mxu1 %v7189_v38  ;;  %v7259_v38 = vld [vmem:[%s9934_s5 + $0x508] ss:$28 sps:$4 sm:$0xff]  }
 0x2ca   :  { %4675 = vmatpush1.bf16.msra.mxu1 %v7187_v39  ;;  %v7262_v39 = vld [vmem:[%s9934_s5 + $0x510] ss:$28 sps:$4 sm:$0xff]  }
 0x2cb   :  { %4676 = vmatprep.subr.bf16.mxu1 %v7195_v40 }
 0x2ce   :  { %4677 = vmatpush1.bf16.msra.mxu1 %v7193_v41  ;;  %v7267_v41 = vld [vmem:[%s9934_s5 + $0x544] ss:$28 sps:$4 sm:$0xff]  }
 0x2cf   :  { %4678 = vmatprep.subr.bf16.mxu1 %v7201_v10  ;;  %v7270_v10 = vld [vmem:[%s9934_s5 + $0x54c] ss:$28 sps:$4 sm:$0xff]  }
 0x2d2   :  { %4679 = vmatpush1.bf16.msra.mxu1 %v7199_v42 }
 0x2d3   :  { %4680 = vmatprep.subr.bf16.mxu1 %v7207_v43 }
 0x2d6   :  { %4681 = vmatpush1.bf16.msra.mxu1 %v7205_v44  ;;  %v7265_v44 = vld [vmem:[%s9934_s5 + $0x540] ss:$28 sps:$4 sm:$0xff]  }
 0x2d7   :  { %4682 = vmatprep.subr.bf16.mxu1 %v7213_v11  ;;  %v7268_v11 = vld [vmem:[%s9934_s5 + $0x548] ss:$28 sps:$4 sm:$0xff]  }
 0x2da   :  { %4683 = vmatpush1.bf16.msra.mxu1 %v7211_v45  ;;  %v7273_v45 = vld [vmem:[%s9934_s5 + $0x57c] ss:$28 sps:$4 sm:$0xff]  }
 0x2db   :  { %4693 = vmatprep.subr.bf16.mxu1 %v7219_v46  ;;  %v7276_v46 = vld [vmem:[%s9934_s5 + $0x584] ss:$28 sps:$4 sm:$0xff]  }
 0x310   :  { %v2008_v58 = vpop.f32.mrb[0].mxu1 }
 0x311   :  { %v2009_v59 = vadd.f32 %v2008_v58, %v1654_v52  ;;  %v2010_v60 = vpop.f32.mrb[1].mxu1  ;;  %v7274_v52 = vld [vmem:[%s9934_s5 + $0x580] ss:$28 sps:$4 sm:$0xff]  }
 0x312   :  { %v2011_v61 = vadd.f32 %v2010_v60, %v1658_v57  ;;  %v2012_v62 = vpop.f32.mrb[2].mxu1  ;;  %v7279_v57 = vld [vmem:[%s9934_s5 + $0x5b4] ss:$28 sps:$4 sm:$0xff]   ;;  %v7282_v58 = vld [vmem:[%s9934_s5 + $0x5bc] ss:$28 sps:$4 sm:$0xff]  }
 0x313   :  { %v2137_v63 = vmax.f32 %v2009_v59, 0.0  ;;  %v2013_v0 = vpop.f32.mrb[3].mxu1  ;;  %v7277_v59 = vld [vmem:[%s9934_s5 + $0x5b0] ss:$28 sps:$4 sm:$0xff]   ;;  %v7280_v60 = vld [vmem:[%s9934_s5 + $0x5b8] ss:$28 sps:$4 sm:$0xff]  }
 0x314   :  { %v2138_v2 = vmax.f32 %v2011_v61, 0.0  ;;  %v7285_v61 = vld [vmem:[%s9934_s5 + $0x5ec] ss:$28 sps:$4 sm:$0xff]   ;;  %v7288_v62 = vld [vmem:[%s9934_s5 + $0x5f4] ss:$28 sps:$4 sm:$0xff]  }
 0x315   :  { %v8664_v7 = vpack.c.bf16 %v2137_v63, %v2137_v63  ;;  %v7283_v63 = vld [vmem:[%s9934_s5 + $0x5e8] ss:$28 sps:$4 sm:$0xff]   ;;  %v7286_v0 = vld [vmem:[%s9934_s5 + $0x5f0] ss:$28 sps:$4 sm:$0xff]  }
 0x316   :  { %v8656_v3 = vpack.c.bf16 %v2138_v2, %v2138_v2  ;;  %v7291_v2 = vld [vmem:[%s9934_s5 + $0x624] ss:$28 sps:$4 sm:$0xff]  }
 0x318   :  { %4684 = vmatprep.mubr.bf16.mxu1 %v8656_v3  ;;  %4848 = vmatprep.mubr.bf16.mxu0 %v8656_v3 }
 0x319   :  { %4685 = vmatmul.mubr.bf16.vlgmr.msra.gmra.mrb[16].mxu1 %v8664_v7  ;;  %4849 = vmatmul.mubr.bf16.vlgmr.msra.gmra.mrb[104].mxu0 %v8664_v7 }
 0x31a   :  { %4694 = vmatpush1.bf16.msra.mxu1 %v7217_v34  ;;  %4858 = vmatpush1.bf16.msra.mxu0 %v7220_v6  ;;  %v7294_v34 = vld [vmem:[%s9934_s5 + $0x62c] ss:$28 sps:$4 sm:$0xff]   ;;  %v7289_v6 = vld [vmem:[%s9934_s5 + $0x620] ss:$28 sps:$4 sm:$0xff]  }
 0x31b   :  { %4695 = vmatprep.subr.bf16.mxu1 %v7225_v8  ;;  %4859 = vmatprep.subr.bf16.mxu0 %v7228_v9  ;;  %v7292_v8 = vld [vmem:[%s9934_s5 + $0x628] ss:$28 sps:$4 sm:$0xff]   ;;  %v1661_v9 = vsub.s32 2, %v8641_v48 }
 0x31e   :  { %4696 = vmatpush1.bf16.msra.mxu1 %v7223_v12  ;;  %4860 = vmatpush1.bf16.msra.mxu0 %v7226_v13  ;;  %v7297_v12 = vld [vmem:[%s9934_s5 + $0x65c] ss:$28 sps:$4 sm:$0xff]   ;;  %v7300_v13 = vld [vmem:[%s9934_s5 + $0x664] ss:$28 sps:$4 sm:$0xff]  }
 0x31f   :  { %4697 = vmatprep.subr.bf16.mxu1 %v7231_v14  ;;  %4861 = vmatprep.subr.bf16.mxu0 %v7234_v15  ;;  %v7295_v14 = vld [vmem:[%s9934_s5 + $0x658] ss:$28 sps:$4 sm:$0xff]   ;;  %v7298_v15 = vld [vmem:[%s9934_s5 + $0x660] ss:$28 sps:$4 sm:$0xff]  }
 0x322   :  { %4698 = vmatpush1.bf16.msra.mxu1 %v7229_v16  ;;  %4862 = vmatpush1.bf16.msra.mxu0 %v7232_v55  ;;  %v1673_v16 = vsub.s32 5, %v8641_v48  ;;  %v1662_v55 = vrot.slane %v8647_v50, %v1661_v9 }
 0x323   :  { %4699 = vmatprep.subr.bf16.mxu1 %v7237_v56  ;;  %4863 = vmatprep.subr.bf16.mxu0 %v7240_v17  ;;  %v7303_v56 = vld [vmem:[%s9934_s5 + $0x694] ss:$28 sps:$4 sm:$0xff]   ;;  %v7306_v17 = vld [vmem:[%s9934_s5 + $0x69c] ss:$28 sps:$4 sm:$0xff]  }
 0x326   :  { %4700 = vmatpush1.bf16.msra.mxu1 %v7235_v18  ;;  %4864 = vmatpush1.bf16.msra.mxu0 %v7238_v19  ;;  %v1674_v18 = vrot.slane %v8647_v50, %v1673_v16  ;;  %v7301_v19 = vld [vmem:[%s9934_s5 + $0x690] ss:$28 sps:$4 sm:$0xff]  }
 0x327   :  { %4701 = vmatprep.subr.bf16.mxu1 %v7243_v20  ;;  %4865 = vmatprep.subr.bf16.mxu0 %v7246_v21  ;;  %v7304_v20 = vld [vmem:[%s9934_s5 + $0x698] ss:$28 sps:$4 sm:$0xff]  }
 0x32a   :  { %4702 = vmatpush1.bf16.msra.mxu1 %v7241_v22  ;;  %4866 = vmatpush1.bf16.msra.mxu0 %v7244_v53  ;;  %v7309_v22 = vld [vmem:[%s9934_s5 + $0x6cc] ss:$28 sps:$4 sm:$0xff]   ;;  %v7312_v53 = vld [vmem:[%s9934_s5 + $0x6d4] ss:$28 sps:$4 sm:$0xff]  }
 0x32b   :  { %4703 = vmatprep.subr.bf16.mxu1 %v7249_v54  ;;  %4867 = vmatprep.subr.bf16.mxu0 %v7252_v23 }
 0x32e   :  { %4704 = vmatpush1.bf16.msra.mxu1 %v7247_v24  ;;  %4868 = vmatpush1.bf16.msra.mxu0 %v7250_v25 }
 0x32f   :  { %4705 = vmatprep.subr.bf16.mxu1 %v7255_v27  ;;  %4869 = vmatprep.subr.bf16.mxu0 %v7258_v28  ;;  %v7307_v27 = vld [vmem:[%s9934_s5 + $0x6c8] ss:$28 sps:$4 sm:$0xff]   ;;  %v7310_v28 = vld [vmem:[%s9934_s5 + $0x6d0] ss:$28 sps:$4 sm:$0xff]  }
 0x330   :  { %v8752_v4 = vpop.f32.mrb[4].mxu1 }
 0x331   :  { %v2051_v32 = vpop.f32.mrb[5].mxu1  ;;  %v2050_v21 = vadd.f32 %v8752_v4, %v1662_v55  ;;  %v7313_v4 = vld [vmem:[%s9934_s5 + $0x700] ss:$28 sps:$4 sm:$0xff]  }
 0x332   :  { %v2052_v36 = vadd.f32 %v2051_v32, %v1666_v29  ;;  %v2053_v37 = vpop.f32.mrb[6].mxu1  ;;  %4706 = vmatpush1.bf16.msra.mxu1 %v7253_v30  ;;  %4870 = vmatpush1.bf16.msra.mxu0 %v7256_v31  ;;  %v7315_v31 = vld [vmem:[%s9934_s5 + $0x704] ss:$28 sps:$4 sm:$0xff]  }
 0x333   :  { %v2054_v40 = vpop.f32.mrb[7].mxu1  ;;  %4707 = vmatprep.subr.bf16.mxu1 %v7261_v33  ;;  %4871 = vmatprep.subr.bf16.mxu0 %v7264_v35  ;;  %v2139_v29 = vmax.f32 %v2050_v21, 0.0  ;;  %v7318_v33 = vld [vmem:[%s9934_s5 + $0x70c] ss:$28 sps:$4 sm:$0xff]   ;;  %v7361_v21 = vld [vmem:[%s9934_s5 + $0x8c0] ss:$28 sps:$4 sm:$0xff]  }
 0x334   :  { %v2140_v42 = vmax.f32 %v2052_v36, 0.0  ;;  %v7316_v36 = vld [vmem:[%s9934_s5 + $0x708] ss:$28 sps:$4 sm:$0xff]   ;;  %v7319_v40 = vld [vmem:[%s9934_s5 + $0x738] ss:$28 sps:$4 sm:$0xff]  }
 0x335   :  { %v8880_v32 = vpack.c.bf16 %v2139_v29, %v2139_v29  ;;  %v7373_v29 = vld [vmem:[%s9934_s5 + $0x930] ss:$28 sps:$4 sm:$0xff]  }
 0x336   :  { %v8766_v43 = vpack.c.bf16 %v2140_v42, %v2140_v42  ;;  %4708 = vmatpush1.bf16.msra.mxu1 %v7259_v38  ;;  %4872 = vmatpush1.bf16.msra.mxu0 %v7262_v39  ;;  %v7321_v38 = vld [vmem:[%s9934_s5 + $0x73c] ss:$28 sps:$4 sm:$0xff]   ;;  %v7324_v39 = vld [vmem:[%s9934_s5 + $0x744] ss:$28 sps:$4 sm:$0xff]  }
 0x337   :  { %4709 = vmatprep.subr.bf16.mxu1 %v7267_v41  ;;  %4873 = vmatprep.subr.bf16.mxu0 %v7270_v10  ;;  %v7322_v41 = vld [vmem:[%s9934_s5 + $0x740] ss:$28 sps:$4 sm:$0xff]   ;;  %v7327_v10 = vld [vmem:[%s9934_s5 + $0x774] ss:$28 sps:$4 sm:$0xff]  }
 0x338   :  { %4725 = vmatprep.mubr.bf16.mxu1 %v8766_v43  ;;  %4889 = vmatprep.mubr.bf16.mxu0 %v8766_v43  ;;  %v7330_v42 = vld [vmem:[%s9934_s5 + $0x77c] ss:$28 sps:$4 sm:$0xff]  }
 0x33a   :  { %4710 = vmatpush1.bf16.msra.mxu1 %v7265_v44  ;;  %4874 = vmatpush1.bf16.msra.mxu0 %v7268_v11  ;;  %v7325_v44 = vld [vmem:[%s9934_s5 + $0x770] ss:$28 sps:$4 sm:$0xff]   ;;  %v7328_v11 = vld [vmem:[%s9934_s5 + $0x778] ss:$28 sps:$4 sm:$0xff]  }
 0x33b   :  { %4711 = vmatprep.subr.bf16.mxu1 %v7273_v45  ;;  %4875 = vmatprep.subr.bf16.mxu0 %v7276_v46  ;;  %v7333_v45 = vld [vmem:[%s9934_s5 + $0x7ac] ss:$28 sps:$4 sm:$0xff]   ;;  %v7336_v46 = vld [vmem:[%s9934_s5 + $0x7b4] ss:$28 sps:$4 sm:$0xff]  }
 0x33e   :  { %4712 = vmatpush1.bf16.msra.mxu1 %v7271_v47  ;;  %4876 = vmatpush1.bf16.msra.mxu0 %v7274_v52  ;;  %v7331_v47 = vld [vmem:[%s9934_s5 + $0x7a8] ss:$28 sps:$4 sm:$0xff]   ;;  %v7334_v52 = vld [vmem:[%s9934_s5 + $0x7b0] ss:$28 sps:$4 sm:$0xff]  }
 0x33f   :  { %4713 = vmatprep.subr.bf16.mxu1 %v7279_v57  ;;  %4877 = vmatprep.subr.bf16.mxu0 %v7282_v58  ;;  %v7339_v57 = vld [vmem:[%s9934_s5 + $0x7e4] ss:$28 sps:$4 sm:$0xff]   ;;  %v7342_v58 = vld [vmem:[%s9934_s5 + $0x7ec] ss:$28 sps:$4 sm:$0xff]  }
 0x342   :  { %4714 = vmatpush1.bf16.msra.mxu1 %v7277_v59  ;;  %4878 = vmatpush1.bf16.msra.mxu0 %v7280_v60  ;;  %v7337_v59 = vld [vmem:[%s9934_s5 + $0x7e0] ss:$28 sps:$4 sm:$0xff]   ;;  %v7340_v60 = vld [vmem:[%s9934_s5 + $0x7e8] ss:$28 sps:$4 sm:$0xff]  }
 0x343   :  { %4715 = vmatprep.subr.bf16.mxu1 %v7285_v61  ;;  %4879 = vmatprep.subr.bf16.mxu0 %v7288_v62  ;;  %v7345_v61 = vld [vmem:[%s9934_s5 + $0x81c] ss:$28 sps:$4 sm:$0xff]   ;;  %v7348_v62 = vld [vmem:[%s9934_s5 + $0x824] ss:$28 sps:$4 sm:$0xff]  }
 0x346   :  { %4716 = vmatpush1.bf16.msra.mxu1 %v7283_v63  ;;  %4880 = vmatpush1.bf16.msra.mxu0 %v7286_v0  ;;  %v7343_v63 = vld [vmem:[%s9934_s5 + $0x818] ss:$28 sps:$4 sm:$0xff]   ;;  %v7346_v0 = vld [vmem:[%s9934_s5 + $0x820] ss:$28 sps:$4 sm:$0xff]  }
 0x347   :  { %4717 = vmatprep.subr.bf16.mxu1 %v7291_v2  ;;  %4881 = vmatprep.subr.bf16.mxu0 %v7294_v34  ;;  %v7351_v2 = vld [vmem:[%s9934_s5 + $0x854] ss:$28 sps:$4 sm:$0xff]   ;;  %v7354_v34 = vld [vmem:[%s9934_s5 + $0x85c] ss:$28 sps:$4 sm:$0xff]  }
 0x34a   :  { %4718 = vmatpush1.bf16.msra.mxu1 %v7289_v6  ;;  %4882 = vmatpush1.bf16.msra.mxu0 %v7292_v8  ;;  %v7349_v6 = vld [vmem:[%s9934_s5 + $0x850] ss:$28 sps:$4 sm:$0xff]   ;;  %v7352_v8 = vld [vmem:[%s9934_s5 + $0x858] ss:$28 sps:$4 sm:$0xff]  }
 0x34b   :  { %4719 = vmatprep.subr.bf16.mxu1 %v7297_v12  ;;  %4883 = vmatprep.subr.bf16.mxu0 %v7300_v13  ;;  %v7357_v12 = vld [vmem:[%s9934_s5 + $0x88c] ss:$28 sps:$4 sm:$0xff]  }
 0x34e   :  { %4720 = vmatpush1.bf16.msra.mxu1 %v7295_v14  ;;  %4884 = vmatpush1.bf16.msra.mxu0 %v7298_v15  ;;  %v7360_v14 = vld [vmem:[%s9934_s5 + $0x894] ss:$28 sps:$4 sm:$0xff]  }
 0x34f   :  { %4721 = vmatprep.subr.bf16.mxu1 %v7303_v56  ;;  %4885 = vmatprep.subr.bf16.mxu0 %v7306_v17  ;;  %v7355_v56 = vld [vmem:[%s9934_s5 + $0x888] ss:$28 sps:$4 sm:$0xff]  }
 0x350   :  { %v8863_v54 = vpop.f32.mrb[8].mxu1 }
 0x351   :  { %v2092_v23 = vpop.f32.mrb[9].mxu1 }
 0x352   :  { %v2093_v24 = vadd.f32 %v2092_v23, %v1674_v18  ;;  %v2094_v25 = vpop.f32.mrb[10].mxu1  ;;  %4722 = vmatpush1.bf16.msra.mxu1 %v7301_v19  ;;  %4886 = vmatpush1.bf16.msra.mxu0 %v7304_v20  ;;  %v7358_v18 = vld [vmem:[%s9934_s5 + $0x890] ss:$28 sps:$4 sm:$0xff]   ;;  %v7363_v19 = vld [vmem:[%s9934_s5 + $0x8c4] ss:$28 sps:$4 sm:$0xff]  }
 0x353   :  { %v2095_v30 = vpop.f32.mrb[11].mxu1  ;;  %4723 = vmatprep.subr.bf16.mxu1 %v7309_v22  ;;  %4887 = vmatprep.subr.bf16.mxu0 %v7312_v53  ;;  %v7366_v20 = vld [vmem:[%s9934_s5 + $0x8cc] ss:$28 sps:$4 sm:$0xff]   ;;  %v7369_v53 = vld [vmem:[%s9934_s5 + $0x8fc] ss:$28 sps:$4 sm:$0xff]  }
 0x354   :  { %v2142_v35 = vmax.f32 %v2093_v24, 0.0  ;;  %v7364_v22 = vld [vmem:[%s9934_s5 + $0x8c8] ss:$28 sps:$4 sm:$0xff]   ;;  %v7367_v24 = vld [vmem:[%s9934_s5 + $0x8f8] ss:$28 sps:$4 sm:$0xff]  }
 0x355   :  { %v7372_v23 = vld [vmem:[%s9934_s5 + $0x904] ss:$28 sps:$4 sm:$0xff]   ;;  %v7376_v30 = vld [vmem:[%s9934_s5 + $0x938] ss:$28 sps:$4 sm:$0xff]  }
 0x356   :  { %4724 = vmatpush1.bf16.msra.mxu1 %v7307_v27  ;;  %4888 = vmatpush1.bf16.msra.mxu0 %v7310_v28  ;;  %v8885_v37 = vpack.c.bf16 %v2142_v35, %v2142_v35  ;;  %v7370_v25 = vld [vmem:[%s9934_s5 + $0x900] ss:$28 sps:$4 sm:$0xff]   ;;  %v7375_v27 = vld [vmem:[%s9934_s5 + $0x934] ss:$28 sps:$4 sm:$0xff]   ;;  %v7379_v35 = vld [vmem:[%s9934_s5 + $0x968] ss:$28 sps:$4 sm:$0xff]  }
 0x357   :  { %4734 = vmatprep.subr.bf16.mxu1 %v7315_v31  ;;  %4898 = vmatprep.subr.bf16.mxu0 %v7318_v33  ;;  %v7378_v28 = vld [vmem:[%s9934_s5 + $0x93c] ss:$28 sps:$4 sm:$0xff]   ;;  %v7381_v31 = vld [vmem:[%s9934_s5 + $0x96c] ss:$28 sps:$4 sm:$0xff]   ;;  %v7384_v33 = vld [vmem:[%s9934_s5 + $0x974] ss:$28 sps:$4 sm:$0xff]  }
 0x359   :  { %4726 = vmatmul.mubr.bf16.vlgmr.msra.gmra.mrb[16].mxu1 %v8880_v32  ;;  %4890 = vmatmul.mubr.bf16.vlgmr.msra.gmra.mrb[104].mxu0 %v8880_v32 }
 0x35a   :  { %4735 = vmatpush1.bf16.msra.mxu1 %v7313_v4  ;;  %4766 = vmatprep.mubr.bf16.mxu1 %v8885_v37  ;;  %v7382_v4 = vld [vmem:[%s9934_s5 + $0x970] ss:$28 sps:$4 sm:$0xff]  }
 0x35b   :  { %4899 = vmatpush1.bf16.msra.mxu0 %v7316_v36  ;;  %4930 = vmatprep.mubr.bf16.mxu0 %v8885_v37  ;;  %v7387_v36 = vld [vmem:[%s9934_s5 + $0x9a4] ss:$28 sps:$4 sm:$0xff]  }
 0x35c   :  { %4736 = vmatprep.subr.bf16.mxu1 %v7321_v38  ;;  %4900 = vmatprep.subr.bf16.mxu0 %v7324_v39  ;;  %v7390_v38 = vld [vmem:[%s9934_s5 + $0x9ac] ss:$28 sps:$4 sm:$0xff]   ;;  %v7385_v39 = vld [vmem:[%s9934_s5 + $0x9a0] ss:$28 sps:$4 sm:$0xff]  }
 0x35e   :  { %4737 = vmatpush1.bf16.msra.mxu1 %v7319_v40  ;;  %v1669_v40 = vsub.s32 4, %v8641_v48 }
 0x35f   :  { %4901 = vmatpush1.bf16.msra.mxu0 %v7322_v41  ;;  %4738 = vmatprep.subr.bf16.mxu1 %v7327_v10  ;;  %v7388_v41 = vld [vmem:[%s9934_s5 + $0x9a8] ss:$28 sps:$4 sm:$0xff]   ;;  %v7393_v10 = vld [vmem:[%s9934_s5 + $0x9dc] ss:$28 sps:$4 sm:$0xff]  }
 0x360   :  { %4902 = vmatprep.subr.bf16.mxu0 %v7330_v42  ;;  %v7396_v42 = vld [vmem:[%s9934_s5 + $0x9e4] ss:$28 sps:$4 sm:$0xff]  }
 0x362   :  { %4739 = vmatpush1.bf16.msra.mxu1 %v7325_v44  ;;  %v7391_v44 = vld [vmem:[%s9934_s5 + $0x9d8] ss:$28 sps:$4 sm:$0xff]  }
 0x363   :  { %4903 = vmatpush1.bf16.msra.mxu0 %v7328_v11  ;;  %4740 = vmatprep.subr.bf16.mxu1 %v7333_v45  ;;  %v1670_v11 = vrot.slane %v8647_v50, %v1669_v40  ;;  %v7394_v45 = vld [vmem:[%s9934_s5 + $0x9e0] ss:$28 sps:$4 sm:$0xff]  }
 0x364   :  { %4904 = vmatprep.subr.bf16.mxu0 %v7336_v46  ;;  %v7399_v46 = vld [vmem:[%s9934_s5 + $0xa14] ss:$28 sps:$4 sm:$0xff]  }
 0x366   :  { %4741 = vmatpush1.bf16.msra.mxu1 %v7331_v47  ;;  %v7402_v47 = vld [vmem:[%s9934_s5 + $0xa1c] ss:$28 sps:$4 sm:$0xff]  }
 0x367   :  { %4905 = vmatpush1.bf16.msra.mxu0 %v7334_v52  ;;  %4742 = vmatprep.subr.bf16.mxu1 %v7339_v57  ;;  %v7397_v52 = vld [vmem:[%s9934_s5 + $0xa10] ss:$28 sps:$4 sm:$0xff]   ;;  %v2091_v57 = vadd.f32 %v8863_v54, %v1670_v11  ;;  %v7403_v54 = vld [vmem:[%s9934_s5 + $0xa48] ss:$28 sps:$4 sm:$0xff]   ;;  %v7460_v11 = vld [vmem:[%s9934_s5 + $0x1d8] ss:$28 sps:$4 sm:$0xff]  }
 0x368   :  { %4906 = vmatprep.subr.bf16.mxu0 %v7342_v58  ;;  %v7400_v58 = vld [vmem:[%s9934_s5 + $0xa18] ss:$28 sps:$4 sm:$0xff]  }
 0x36a   :  { %4743 = vmatpush1.bf16.msra.mxu1 %v7337_v59  ;;  %v7405_v59 = vld [vmem:[%s9934_s5 + $0xa4c] ss:$28 sps:$4 sm:$0xff]  }
 0x36b   :  { %4907 = vmatpush1.bf16.msra.mxu0 %v7340_v60  ;;  %4744 = vmatprep.subr.bf16.mxu1 %v7345_v61  ;;  %v7408_v60 = vld [vmem:[%s9934_s5 + $0xa54] ss:$28 sps:$4 sm:$0xff]   ;;  %v2141_v61 = vmax.f32 %v2091_v57, 0.0 }
 0x36c   :  { %4908 = vmatprep.subr.bf16.mxu0 %v7348_v62  ;;  %v7406_v62 = vld [vmem:[%s9934_s5 + $0xa50] ss:$28 sps:$4 sm:$0xff]  }
 0x36d   :  { %v7465_v57 = vld [vmem:[%s9934_s5 + $0x210] ss:$28 sps:$4 sm:$0xff]  }
 0x36e   :  { %4745 = vmatpush1.bf16.msra.mxu1 %v7343_v63  ;;  %v7411_v63 = vld [vmem:[%s9934_s5 + $0xa84] ss:$28 sps:$4 sm:$0xff]  }
 0x36f   :  { %4909 = vmatpush1.bf16.msra.mxu0 %v7346_v0  ;;  %4746 = vmatprep.subr.bf16.mxu1 %v7351_v2  ;;  %v7414_v0 = vld [vmem:[%s9934_s5 + $0xa8c] ss:$28 sps:$4 sm:$0xff]   ;;  %v7409_v2 = vld [vmem:[%s9934_s5 + $0xa80] ss:$28 sps:$4 sm:$0xff]  }
 0x370   :  { %v8966_v13 = vpop.f32.mrb[12].mxu1  ;;  %4910 = vmatprep.subr.bf16.mxu0 %v7354_v34  ;;  %v9087_v34 = vpack.c.bf16 %v2141_v61, %v2141_v61  ;;  %v7467_v61 = vld [vmem:[%s9934_s5 + $0x80] ss:$28 sps:$4 sm:$0xff]  }
 0x371   :  { %v6897_v15 = vpop.f32.mrb[13].mxu1 }
 0x372   :  { %v2134_v55 = vpop.f32.mrb[14].mxu1  ;;  %4747 = vmatpush1.bf16.msra.mxu1 %v7349_v6  ;;  %v7412_v6 = vld [vmem:[%s9934_s5 + $0xa88] ss:$28 sps:$4 sm:$0xff]   ;;  %v7418_v15 = vld [vmem:[%s9934_s5 + $0xac0] ss:$28 sps:$4 sm:$0xff]  }
 0x373   :  { %4911 = vmatpush1.bf16.msra.mxu0 %v7352_v8  ;;  %v6898_v17 = vpop.f32.mrb[15].mxu1  ;;  %4748 = vmatprep.subr.bf16.mxu1 %v7357_v12  ;;  %v7417_v8 = vld [vmem:[%s9934_s5 + $0xabc] ss:$28 sps:$4 sm:$0xff]   ;;  %v7420_v12 = vld [vmem:[%s9934_s5 + $0xac4] ss:$28 sps:$4 sm:$0xff]  }
 0x374   :  { %4912 = vmatprep.subr.bf16.mxu0 %v7360_v14  ;;  %v7415_v14 = vld [vmem:[%s9934_s5 + $0xab8] ss:$28 sps:$4 sm:$0xff]   ;;  %v7421_v17 = vld [vmem:[%s9934_s5 + $0xaf0] ss:$28 sps:$4 sm:$0xff]  }
 0x375   :  { %v7423_v55 = vld [vmem:[%s9934_s5 + $0xaf4] ss:$28 sps:$4 sm:$0xff]  }
 0x376   :  { %4749 = vmatpush1.bf16.msra.mxu1 %v7355_v56  ;;  %v7426_v56 = vld [vmem:[%s9934_s5 + $0xafc] ss:$28 sps:$4 sm:$0xff]  }
 0x377   :  { %4913 = vmatpush1.bf16.msra.mxu0 %v7358_v18  ;;  %4750 = vmatprep.subr.bf16.mxu1 %v7363_v19  ;;  %v7424_v18 = vld [vmem:[%s9934_s5 + $0xaf8] ss:$28 sps:$4 sm:$0xff]   ;;  %v7429_v19 = vld [vmem:[%s9934_s5 + $0xb2c] ss:$28 sps:$4 sm:$0xff]  }
 0x378   :  { %4914 = vmatprep.subr.bf16.mxu0 %v7366_v20  ;;  %v7432_v20 = vld [vmem:[%s9934_s5 + $0xb34] ss:$28 sps:$4 sm:$0xff]  }
 0x37a   :  { %4751 = vmatpush1.bf16.msra.mxu1 %v7361_v21  ;;  %v7427_v21 = vld [vmem:[%s9934_s5 + $0xb28] ss:$28 sps:$4 sm:$0xff]  }
 0x37b   :  { %4915 = vmatpush1.bf16.msra.mxu0 %v7364_v22  ;;  %4752 = vmatprep.subr.bf16.mxu1 %v7369_v53  ;;  %v7430_v22 = vld [vmem:[%s9934_s5 + $0xb30] ss:$28 sps:$4 sm:$0xff]   ;;  %v7435_v53 = vld [vmem:[%s9934_s5 + $0xb64] ss:$28 sps:$4 sm:$0xff]  }
 0x37c   :  { %4916 = vmatprep.subr.bf16.mxu0 %v7372_v23  ;;  %v7438_v23 = vld [vmem:[%s9934_s5 + $0xb6c] ss:$28 sps:$4 sm:$0xff]  }
 0x37e   :  { %4753 = vmatpush1.bf16.msra.mxu1 %v7367_v24  ;;  %v7433_v24 = vld [vmem:[%s9934_s5 + $0xb60] ss:$28 sps:$4 sm:$0xff]  }
 0x37f   :  { %4917 = vmatpush1.bf16.msra.mxu0 %v7370_v25  ;;  %4754 = vmatprep.subr.bf16.mxu1 %v7375_v27  ;;  %v1677_v25 = vsub.s32 6, %v8641_v48  ;;  %v7436_v27 = vld [vmem:[%s9934_s5 + $0xb68] ss:$28 sps:$4 sm:$0xff]  }
 0x380   :  { %4918 = vmatprep.subr.bf16.mxu0 %v7378_v28  ;;  %v7441_v28 = vld [vmem:[%s9934_s5 + $0xb9c] ss:$28 sps:$4 sm:$0xff]  }
 0x382   :  { %4755 = vmatpush1.bf16.msra.mxu1 %v7373_v29  ;;  %v7444_v29 = vld [vmem:[%s9934_s5 + $0xba4] ss:$28 sps:$4 sm:$0xff]  }
 0x383   :  { %4919 = vmatpush1.bf16.msra.mxu0 %v7376_v30  ;;  %4756 = vmatprep.subr.bf16.mxu1 %v7381_v31  ;;  %v7439_v30 = vld [vmem:[%s9934_s5 + $0xb98] ss:$28 sps:$4 sm:$0xff]   ;;  %v1678_v31 = vrot.slane %v8647_v50, %v1677_v25  ;;  %v7445_v50 = vld [vmem:[%s9934_s5 + $0xbd0] ss:$28 sps:$4 sm:$0xff]  }
 0x384   :  { %4920 = vmatprep.subr.bf16.mxu0 %v7384_v33  ;;  %v7442_v33 = vld [vmem:[%s9934_s5 + $0xba0] ss:$28 sps:$4 sm:$0xff]  }
 0x386   :  { %4757 = vmatpush1.bf16.msra.mxu1 %v7379_v35  ;;  %v7447_v35 = vld [vmem:[%s9934_s5 + $0xbd4] ss:$28 sps:$4 sm:$0xff]  }
 0x387   :  { %4921 = vmatpush1.bf16.msra.mxu0 %v7382_v4  ;;  %4758 = vmatprep.subr.bf16.mxu1 %v7387_v36  ;;  %v7450_v4 = vld [vmem:[%s9934_s5 + $0xbdc] ss:$28 sps:$4 sm:$0xff]   ;;  %v2132_v36 = vadd.f32 %v8966_v13, %v1678_v31  ;;  %v7451_v13 = vld [vmem:[%s9934_s5 + $0xc08] ss:$28 sps:$4 sm:$0xff]  }
 0x388   :  { %4922 = vmatprep.subr.bf16.mxu0 %v7390_v38  ;;  %v7448_v38 = vld [vmem:[%s9934_s5 + $0xbd8] ss:$28 sps:$4 sm:$0xff]   ;;  %v7504_v31 = vld [vmem:[%s9934_s5 + $0x20c] ss:$28 sps:$4 sm:$0xff]  }
 0x38a   :  { %4759 = vmatpush1.bf16.msra.mxu1 %v7385_v39  ;;  %v7453_v39 = vld [vmem:[%s9934_s5 + $0xc0c] ss:$28 sps:$4 sm:$0xff]  }
 0x38b   :  { %4923 = vmatpush1.bf16.msra.mxu0 %v7388_v41  ;;  %4760 = vmatprep.subr.bf16.mxu1 %v7393_v10  ;;  %v7456_v41 = vld [vmem:[%s9934_s5 + $0xc14] ss:$28 sps:$4 sm:$0xff]   ;;  %v2143_v10 = vmax.f32 %v2132_v36, 0.0  ;;  %v7510_v36 = vld [vmem:[%s9934_s5 + $0x5c8] ss:$28 sps:$4 sm:$0xff]  }
 0x38c   :  { %4924 = vmatprep.subr.bf16.mxu0 %v7396_v42  ;;  %v7454_v42 = vld [vmem:[%s9934_s5 + $0xc10] ss:$28 sps:$4 sm:$0xff]  }
 0x38e   :  { %4761 = vmatpush1.bf16.msra.mxu1 %v7391_v44  ;;  %v7459_v44 = vld [vmem:[%s9934_s5 + $0x14] ss:$28 sps:$4 sm:$0xff]  }
 0x38f   :  { %4925 = vmatpush1.bf16.msra.mxu0 %v7394_v45  ;;  %4762 = vmatprep.subr.bf16.mxu1 %v7399_v46  ;;  %v7457_v45 = vld [vmem:[%s9934_s5 + $0x10] ss:$28 sps:$4 sm:$0xff]   ;;  %v9194_v46 = vpack.c.bf16 %v2143_v10, %v2143_v10  ;;  %v7512_v10 = vld [vmem:[%s9934_s5 + $0x278] ss:$28 sps:$4 sm:$0xff]  }
 0x390   :  { %4926 = vmatprep.subr.bf16.mxu0 %v7402_v47  ;;  %v7461_v47 = vld [vmem:[%s9934_s5 + $0x18] ss:$28 sps:$4 sm:$0xff]  }
 0x392   :  { %4763 = vmatpush1.bf16.msra.mxu1 %v7397_v52  ;;  %v7464_v52 = vld [vmem:[%s9934_s5 + $0x4c] ss:$28 sps:$4 sm:$0xff]  }
 0x393   :  { %4927 = vmatpush1.bf16.msra.mxu0 %v7400_v58  ;;  %4764 = vmatprep.subr.bf16.mxu1 %v7405_v59  ;;  %v7462_v58 = vld [vmem:[%s9934_s5 + $0x48] ss:$28 sps:$4 sm:$0xff]   ;;  %v7466_v59 = vld [vmem:[%s9934_s5 + $0x50] ss:$28 sps:$4 sm:$0xff]  }
 0x394   :  { %4928 = vmatprep.subr.bf16.mxu0 %v7408_v60  ;;  %v7469_v60 = vld [vmem:[%s9934_s5 + $0x84] ss:$28 sps:$4 sm:$0xff]  }
 0x396   :  { %4765 = vmatpush1.bf16.msra.mxu1 %v7403_v54  ;;  %v7470_v54 = vld [vmem:[%s9934_s5 + $0x248] ss:$28 sps:$4 sm:$0xff]  }
 0x397   :  { %4929 = vmatpush1.bf16.msra.mxu0 %v7406_v62  ;;  %4775 = vmatprep.subr.bf16.mxu1 %v7411_v63  ;;  %v7471_v62 = vld [vmem:[%s9934_s5 + $0x88] ss:$28 sps:$4 sm:$0xff]   ;;  %v7475_v63 = vld [vmem:[%s9934_s5 + $0x280] ss:$28 sps:$4 sm:$0xff]  }
 0x398   :  { %4939 = vmatprep.subr.bf16.mxu0 %v7414_v0  ;;  %v7472_v0 = vld [vmem:[%s9934_s5 + $0xb8] ss:$28 sps:$4 sm:$0xff]  }
 0x399   :  { %4767 = vmatmul.mubr.bf16.vlgmr.msra.gmra.mrb[16].mxu1 %v9087_v34 }
 0x39a   :  { %4931 = vmatmul.mubr.bf16.vlgmr.msra.gmra.mrb[104].mxu0 %v9087_v34  ;;  %4776 = vmatpush1.bf16.msra.mxu1 %v7409_v2  ;;  %v7476_v2 = vld [vmem:[%s9934_s5 + $0xc0] ss:$28 sps:$4 sm:$0xff]  }
 0x39b   :  { %4940 = vmatpush1.bf16.msra.mxu0 %v7412_v6  ;;  %4777 = vmatprep.subr.bf16.mxu1 %v7417_v8  ;;  %v7479_v6 = vld [vmem:[%s9934_s5 + $0xf4] ss:$28 sps:$4 sm:$0xff]  }
 0x39c   :  { %4941 = vmatprep.subr.bf16.mxu0 %v7420_v12  ;;  %4807 = vmatprep.mubr.bf16.mxu1 %v7737_v1  ;;  %v7480_v8 = vld [vmem:[%s9934_s5 + $0x2b8] ss:$28 sps:$4 sm:$0xff]   ;;  %v7477_v12 = vld [vmem:[%s9934_s5 + $0xf0] ss:$28 sps:$4 sm:$0xff]  }
 0x39d   :  { %4971 = vmatprep.mubr.bf16.mxu0 %v7737_v1 }
 0x39e   :  { %4778 = vmatpush1.bf16.msra.mxu1 %v7415_v14  ;;  %v7481_v14 = vld [vmem:[%s9934_s5 + $0xf8] ss:$28 sps:$4 sm:$0xff]  }
 0x39f   :  { %4942 = vmatpush1.bf16.msra.mxu0 %v7418_v15  ;;  %4779 = vmatprep.subr.bf16.mxu1 %v7423_v55  ;;  %v7484_v15 = vld [vmem:[%s9934_s5 + $0x12c] ss:$28 sps:$4 sm:$0xff]  }
 0x3a0   :  { %4943 = vmatprep.subr.bf16.mxu0 %v7426_v56  ;;  %v7485_v55 = vld [vmem:[%s9934_s5 + $0x2f0] ss:$28 sps:$4 sm:$0xff]   ;;  %v7482_v56 = vld [vmem:[%s9934_s5 + $0x128] ss:$28 sps:$4 sm:$0xff]  }
 0x3a2   :  { %4780 = vmatpush1.bf16.msra.mxu1 %v7421_v17  ;;  %v7486_v17 = vld [vmem:[%s9934_s5 + $0x130] ss:$28 sps:$4 sm:$0xff]  }
 0x3a3   :  { %4944 = vmatpush1.bf16.msra.mxu0 %v7424_v18  ;;  %4781 = vmatprep.subr.bf16.mxu1 %v7429_v19  ;;  %v7489_v18 = vld [vmem:[%s9934_s5 + $0x164] ss:$28 sps:$4 sm:$0xff]  }
 0x3a4   :  { %4945 = vmatprep.subr.bf16.mxu0 %v7432_v20  ;;  %v7490_v19 = vld [vmem:[%s9934_s5 + $0x328] ss:$28 sps:$4 sm:$0xff]   ;;  %v7487_v20 = vld [vmem:[%s9934_s5 + $0x160] ss:$28 sps:$4 sm:$0xff]  }
 0x3a6   :  { %4782 = vmatpush1.bf16.msra.mxu1 %v7427_v21  ;;  %v7491_v21 = vld [vmem:[%s9934_s5 + $0x168] ss:$28 sps:$4 sm:$0xff]  }
 0x3a7   :  { %4946 = vmatpush1.bf16.msra.mxu0 %v7430_v22  ;;  %4783 = vmatprep.subr.bf16.mxu1 %v7435_v53  ;;  %v7494_v22 = vld [vmem:[%s9934_s5 + $0x19c] ss:$28 sps:$4 sm:$0xff]  }
 0x3a8   :  { %4947 = vmatprep.subr.bf16.mxu0 %v7438_v23  ;;  %v7495_v53 = vld [vmem:[%s9934_s5 + $0x360] ss:$28 sps:$4 sm:$0xff]   ;;  %v7492_v23 = vld [vmem:[%s9934_s5 + $0x198] ss:$28 sps:$4 sm:$0xff]  }
 0x3aa   :  { %4784 = vmatpush1.bf16.msra.mxu1 %v7433_v24  ;;  %v7496_v24 = vld [vmem:[%s9934_s5 + $0x1a0] ss:$28 sps:$4 sm:$0xff]  }
 0x3ab   :  { %4948 = vmatpush1.bf16.msra.mxu0 %v7436_v27  ;;  %4785 = vmatprep.subr.bf16.mxu1 %v7441_v28  ;;  %v7499_v27 = vld [vmem:[%s9934_s5 + $0x1d4] ss:$28 sps:$4 sm:$0xff]  }
 0x3ac   :  { %4949 = vmatprep.subr.bf16.mxu0 %v7444_v29  ;;  %v7500_v28 = vld [vmem:[%s9934_s5 + $0x558] ss:$28 sps:$4 sm:$0xff]   ;;  %v7497_v29 = vld [vmem:[%s9934_s5 + $0x1d0] ss:$28 sps:$4 sm:$0xff]  }
 0x3ae   :  { %4786 = vmatpush1.bf16.msra.mxu1 %v7439_v30  ;;  %v7501_v30 = vld [vmem:[%s9934_s5 + $0x398] ss:$28 sps:$4 sm:$0xff]  }
 0x3af   :  { %4950 = vmatpush1.bf16.msra.mxu0 %v7442_v33  ;;  %4787 = vmatprep.subr.bf16.mxu1 %v7447_v35  ;;  %v7505_v33 = vld [vmem:[%s9934_s5 + $0x590] ss:$28 sps:$4 sm:$0xff]   ;;  %v7502_v35 = vld [vmem:[%s9934_s5 + $0x208] ss:$28 sps:$4 sm:$0xff]  }
 0x3b0   :  { %4951 = vmatprep.subr.bf16.mxu0 %v7450_v4  ;;  %v7506_v4 = vld [vmem:[%s9934_s5 + $0x3d0] ss:$28 sps:$4 sm:$0xff]  }
 0x3b2   :  { %4788 = vmatpush1.bf16.msra.mxu1 %v7445_v50  ;;  %v7509_v50 = vld [vmem:[%s9934_s5 + $0x244] ss:$28 sps:$4 sm:$0xff]  }
 0x3b3   :  { %4952 = vmatpush1.bf16.msra.mxu0 %v7448_v38  ;;  %4789 = vmatprep.subr.bf16.mxu1 %v7453_v39  ;;  %v7507_v38 = vld [vmem:[%s9934_s5 + $0x240] ss:$28 sps:$4 sm:$0xff]   ;;  %v7511_v39 = vld [vmem:[%s9934_s5 + $0x408] ss:$28 sps:$4 sm:$0xff]  }
 0x3b4   :  { %4953 = vmatprep.subr.bf16.mxu0 %v7456_v41  ;;  %v7514_v41 = vld [vmem:[%s9934_s5 + $0x27c] ss:$28 sps:$4 sm:$0xff]  }
 0x3b6   :  { %4790 = vmatpush1.bf16.msra.mxu1 %v7451_v13  ;;  %v7515_v13 = vld [vmem:[%s9934_s5 + $0x600] ss:$28 sps:$4 sm:$0xff]  }
 0x3b7   :  { %4954 = vmatpush1.bf16.msra.mxu0 %v7454_v42  ;;  %4980 = vmatprep.subr.bf16.mxu1 %v7459_v44  ;;  %v7516_v42 = vld [vmem:[%s9934_s5 + $0x440] ss:$28 sps:$4 sm:$0xff]   ;;  %v7519_v44 = vld [vmem:[%s9934_s5 + $0x2b4] ss:$28 sps:$4 sm:$0xff]  }
 0x3b8   :  { %6617 = vmatprep.subr.bf16.mxu0 %v7460_v11  ;;  %v7520_v11 = vld [vmem:[%s9934_s5 + $0x638] ss:$28 sps:$4 sm:$0xff]  }
 0x3b9   :  { %4808 = vmatmul.mubr.bf16.vlgmr.msra.gmra.mrb[16].mxu1 %v9194_v46 }
 0x3ba   :  { %4972 = vmatmul.mubr.bf16.vlgmr.msra.gmra.mrb[104].mxu0 %v9194_v46  ;;  %4981 = vmatpush1.bf16.msra.mxu1 %v7457_v45  ;;  %v7517_v45 = vld [vmem:[%s9934_s5 + $0x2b0] ss:$28 sps:$4 sm:$0xff]  }
 0x3bb   :  { %5012 = vmatprep.mubr.bf16.mxu1 %v8656_v3  ;;  %6618 = vmatpush3.bf16.msra.mxu0 %v7461_v47  ;;  %v7521_v47 = vld [vmem:[%s9934_s5 + $0x478] ss:$28 sps:$4 sm:$0xff]  }
 0x3bc   :  { %5176 = vmatprep.mubr.bf16.mxu0 %v8656_v3  ;;  %4982 = vmatprep.subr.bf16.mxu1 %v7464_v52  ;;  %v7474_v3 = vld [vmem:[%s9934_s5 + $0xbc] ss:$28 sps:$4 sm:$0xff]   ;;  %v7524_v52 = vld [vmem:[%s9934_s5 + $0x2ec] ss:$28 sps:$4 sm:$0xff]  }
 0x3bd   :  { %6619 = vmatprep.subr.bf16.mxu0 %v7465_v57  ;;  %v7525_v57 = vld [vmem:[%s9934_s5 + $0x670] ss:$28 sps:$4 sm:$0xff]  }
 0x3be   :  { %4983 = vmatpush1.bf16.msra.mxu1 %v7462_v58  ;;  %v7522_v58 = vld [vmem:[%s9934_s5 + $0x2e8] ss:$28 sps:$4 sm:$0xff]  }
 0x3bf   :  { %6620 = vmatpush3.bf16.msra.mxu0 %v7466_v59  ;;  %4984 = vmatprep.subr.bf16.mxu1 %v7469_v60  ;;  %v7526_v59 = vld [vmem:[%s9934_s5 + $0x4b0] ss:$28 sps:$4 sm:$0xff]   ;;  %v7529_v60 = vld [vmem:[%s9934_s5 + $0x324] ss:$28 sps:$4 sm:$0xff]  }
 0x3c0   :  { %6621 = vmatprep.subr.bf16.mxu0 %v7470_v54  ;;  %v7530_v54 = vld [vmem:[%s9934_s5 + $0x6a8] ss:$28 sps:$4 sm:$0xff]  }
 0x3c2   :  { %4985 = vmatpush1.bf16.msra.mxu1 %v7467_v61  ;;  %v7527_v61 = vld [vmem:[%s9934_s5 + $0x320] ss:$28 sps:$4 sm:$0xff]  }
 0x3c3   :  { %6622 = vmatpush3.bf16.msra.mxu0 %v7471_v62  ;;  %4986 = vmatprep.subr.bf16.mxu1 %v7474_v3  ;;  %v7531_v62 = vld [vmem:[%s9934_s5 + $0x4e8] ss:$28 sps:$4 sm:$0xff]   ;;  %v7534_v3 = vld [vmem:[%s9934_s5 + $0x35c] ss:$28 sps:$4 sm:$0xff]  }
 0x3c4   :  { %6623 = vmatprep.subr.bf16.mxu0 %v7475_v63  ;;  %v7535_v63 = vld [vmem:[%s9934_s5 + $0x6e0] ss:$28 sps:$4 sm:$0xff]  }
 0x3c6   :  { %4987 = vmatpush1.bf16.msra.mxu1 %v7472_v0  ;;  %v7532_v0 = vld [vmem:[%s9934_s5 + $0x358] ss:$28 sps:$4 sm:$0xff]  }
 0x3c7   :  { %6624 = vmatpush3.bf16.msra.mxu0 %v7476_v2  ;;  %4988 = vmatprep.subr.bf16.mxu1 %v7479_v6  ;;  %v7536_v2 = vld [vmem:[%s9934_s5 + $0x520] ss:$28 sps:$4 sm:$0xff]   ;;  %v7539_v6 = vld [vmem:[%s9934_s5 + $0x394] ss:$28 sps:$4 sm:$0xff]  }
 0x3c8   :  { %6625 = vmatprep.subr.bf16.mxu0 %v7480_v8  ;;  %v7537_v8 = vld [vmem:[%s9934_s5 + $0x390] ss:$28 sps:$4 sm:$0xff]  }
 0x3ca   :  { %4989 = vmatpush1.bf16.msra.mxu1 %v7477_v12  ;;  %v7540_v12 = vld [vmem:[%s9934_s5 + $0x8d8] ss:$28 sps:$4 sm:$0xff]  }
 0x3cb   :  { %6626 = vmatpush3.bf16.msra.mxu0 %v7481_v14  ;;  %4990 = vmatprep.subr.bf16.mxu1 %v7484_v15  ;;  %v7541_v14 = vld [vmem:[%s9934_s5 + $0x718] ss:$28 sps:$4 sm:$0xff]   ;;  %v7544_v15 = vld [vmem:[%s9934_s5 + $0x3cc] ss:$28 sps:$4 sm:$0xff]  }
 0x3cc   :  { %6627 = vmatprep.subr.bf16.mxu0 %v7485_v55  ;;  %v7545_v55 = vld [vmem:[%s9934_s5 + $0x910] ss:$28 sps:$4 sm:$0xff]  }
 0x3ce   :  { %4991 = vmatpush1.bf16.msra.mxu1 %v7482_v56  ;;  %v7542_v56 = vld [vmem:[%s9934_s5 + $0x3c8] ss:$28 sps:$4 sm:$0xff]  }
 0x3cf   :  { %6628 = vmatpush3.bf16.msra.mxu0 %v7486_v17  ;;  %4992 = vmatprep.subr.bf16.mxu1 %v7489_v18  ;;  %v7546_v17 = vld [vmem:[%s9934_s5 + $0x750] ss:$28 sps:$4 sm:$0xff]   ;;  %v7549_v18 = vld [vmem:[%s9934_s5 + $0x404] ss:$28 sps:$4 sm:$0xff]  }
 0x3d0   :  { %6629 = vmatprep.subr.bf16.mxu0 %v7490_v19  ;;  %v7547_v19 = vld [vmem:[%s9934_s5 + $0x400] ss:$28 sps:$4 sm:$0xff]  }
 0x3d2   :  { %4993 = vmatpush1.bf16.msra.mxu1 %v7487_v20  ;;  %v7551_v20 = vld [vmem:[%s9934_s5 + $0x788] ss:$28 sps:$4 sm:$0xff]  }
 0x3d3   :  { %6630 = vmatpush3.bf16.msra.mxu0 %v7491_v21  ;;  %4994 = vmatprep.subr.bf16.mxu1 %v7494_v22  ;;  %v7555_v21 = vld [vmem:[%s9934_s5 + $0x980] ss:$28 sps:$4 sm:$0xff]   ;;  %v7552_v22 = vld [vmem:[%s9934_s5 + $0x438] ss:$28 sps:$4 sm:$0xff]  }
 0x3d4   :  { %6631 = vmatprep.subr.bf16.mxu0 %v7495_v53  ;;  %v7556_v53 = vld [vmem:[%s9934_s5 + $0x7c0] ss:$28 sps:$4 sm:$0xff]  }
 0x3d6   :  { %4995 = vmatpush1.bf16.msra.mxu1 %v7492_v23  ;;  %v7559_v23 = vld [vmem:[%s9934_s5 + $0x474] ss:$28 sps:$4 sm:$0xff]  }
 0x3d7   :  { %6632 = vmatpush3.bf16.msra.mxu0 %v7496_v24  ;;  %4996 = vmatprep.subr.bf16.mxu1 %v7499_v27  ;;  %v7560_v24 = vld [vmem:[%s9934_s5 + $0x9b8] ss:$28 sps:$4 sm:$0xff]   ;;  %v7557_v27 = vld [vmem:[%s9934_s5 + $0x470] ss:$28 sps:$4 sm:$0xff]  }
 0x3d8   :  { %6639 = vmatprep.subr.bf16.mxu0 %v7500_v28  ;;  %v7561_v28 = vld [vmem:[%s9934_s5 + $0x7f8] ss:$28 sps:$4 sm:$0xff]  }
 0x3da   :  { %5177 = vmatmul.mubr.bf16.vlgmr.msra.gmra.mrb[108].mxu0 %v8664_v7  ;;  %4997 = vmatpush1.bf16.msra.mxu1 %v7497_v29  ;;  %v7564_v29 = vld [vmem:[%s9934_s5 + $0x4ac] ss:$28 sps:$4 sm:$0xff]  }
 0x3db   :  { %6640 = vmatpush3.bf16.msra.mxu0 %v7501_v30  ;;  %5216 = vmatprep.mubr.bf16.mxu0 %v8766_v43  ;;  %v7565_v30 = vld [vmem:[%s9934_s5 + $0x9f0] ss:$28 sps:$4 sm:$0xff]  }
 0x3dc   :  { %4998 = vmatprep.subr.bf16.mxu1 %v7504_v31  ;;  %6641 = vmatprep.subr.bf16.mxu0 %v7505_v33  ;;  %v7562_v31 = vld [vmem:[%s9934_s5 + $0x4a8] ss:$28 sps:$4 sm:$0xff]   ;;  %v7566_v33 = vld [vmem:[%s9934_s5 + $0x830] ss:$28 sps:$4 sm:$0xff]  }
 0x3de   :  { %4999 = vmatpush1.bf16.msra.mxu1 %v7502_v35  ;;  %v7569_v35 = vld [vmem:[%s9934_s5 + $0x4e4] ss:$28 sps:$4 sm:$0xff]  }
 0x3df   :  { %6642 = vmatpush3.bf16.msra.mxu0 %v7506_v4  ;;  %5000 = vmatprep.subr.bf16.mxu1 %v7509_v50  ;;  %v7570_v4 = vld [vmem:[%s9934_s5 + $0xa28] ss:$28 sps:$4 sm:$0xff]   ;;  %v7567_v50 = vld [vmem:[%s9934_s5 + $0x4e0] ss:$28 sps:$4 sm:$0xff]  }
 0x3e0   :  { %6643 = vmatprep.subr.bf16.mxu0 %v7510_v36  ;;  %v7571_v36 = vld [vmem:[%s9934_s5 + $0x868] ss:$28 sps:$4 sm:$0xff]  }
 0x3e2   :  { %5001 = vmatpush1.bf16.msra.mxu1 %v7507_v38  ;;  %v7574_v38 = vld [vmem:[%s9934_s5 + $0x51c] ss:$28 sps:$4 sm:$0xff]  }
 0x3e3   :  { %6644 = vmatpush3.bf16.msra.mxu0 %v7511_v39  ;;  %5002 = vmatprep.subr.bf16.mxu1 %v7514_v41  ;;  %v7575_v39 = vld [vmem:[%s9934_s5 + $0xa60] ss:$28 sps:$4 sm:$0xff]   ;;  %v7572_v41 = vld [vmem:[%s9934_s5 + $0x518] ss:$28 sps:$4 sm:$0xff]  }
 0x3e4   :  { %6645 = vmatprep.subr.bf16.mxu0 %v7515_v13  ;;  %v7576_v13 = vld [vmem:[%s9934_s5 + $0x8a0] ss:$28 sps:$4 sm:$0xff]  }
 0x3e6   :  { %5003 = vmatpush1.bf16.msra.mxu1 %v7512_v10  ;;  %v7579_v10 = vld [vmem:[%s9934_s5 + $0x554] ss:$28 sps:$4 sm:$0xff]  }
 0x3e7   :  { %6646 = vmatpush3.bf16.msra.mxu0 %v7516_v42  ;;  %5004 = vmatprep.subr.bf16.mxu1 %v7519_v44  ;;  %v7577_v42 = vld [vmem:[%s9934_s5 + $0x550] ss:$28 sps:$4 sm:$0xff]   ;;  %v7580_v44 = vld [vmem:[%s9934_s5 + $0xa98] ss:$28 sps:$4 sm:$0xff]  }
 0x3e8   :  { %6647 = vmatprep.subr.bf16.mxu0 %v7520_v11  ;;  %v7583_v11 = vld [vmem:[%s9934_s5 + $0x58c] ss:$28 sps:$4 sm:$0xff]  }
 0x3ea   :  { %5005 = vmatpush1.bf16.msra.mxu1 %v7517_v45  ;;  %v7581_v45 = vld [vmem:[%s9934_s5 + $0x588] ss:$28 sps:$4 sm:$0xff]  }
 0x3eb   :  { %6648 = vmatpush3.bf16.msra.mxu0 %v7521_v47  ;;  %5006 = vmatprep.subr.bf16.mxu1 %v7524_v52  ;;  %v7584_v47 = vld [vmem:[%s9934_s5 + $0xad0] ss:$28 sps:$4 sm:$0xff]   ;;  %v7587_v52 = vld [vmem:[%s9934_s5 + $0x5c4] ss:$28 sps:$4 sm:$0xff]  }
 0x3ec   :  { %6649 = vmatprep.subr.bf16.mxu0 %v7525_v57  ;;  %v7585_v57 = vld [vmem:[%s9934_s5 + $0x5c0] ss:$28 sps:$4 sm:$0xff]  }
 0x3ee   :  { %5007 = vmatpush1.bf16.msra.mxu1 %v7522_v58  ;;  %v7588_v58 = vld [vmem:[%s9934_s5 + $0xb08] ss:$28 sps:$4 sm:$0xff]  }
 0x3ef   :  { %6650 = vmatpush3.bf16.msra.mxu0 %v7526_v59  ;;  %5008 = vmatprep.subr.bf16.mxu1 %v7529_v60  ;;  %v7591_v59 = vld [vmem:[%s9934_s5 + $0x5fc] ss:$28 sps:$4 sm:$0xff]  }
 0x3f0   :  { %6651 = vmatprep.subr.bf16.mxu0 %v7530_v54  ;;  %v7589_v60 = vld [vmem:[%s9934_s5 + $0x5f8] ss:$28 sps:$4 sm:$0xff]   ;;  %v7592_v54 = vld [vmem:[%s9934_s5 + $0xb40] ss:$28 sps:$4 sm:$0xff]  }
 0x3f2   :  { %5009 = vmatpush1.bf16.msra.mxu1 %v7527_v61  ;;  %v7595_v61 = vld [vmem:[%s9934_s5 + $0x634] ss:$28 sps:$4 sm:$0xff]  }
 0x3f3   :  { %6652 = vmatpush3.bf16.msra.mxu0 %v7531_v62  ;;  %5010 = vmatprep.subr.bf16.mxu1 %v7534_v3  ;;  %v7593_v62 = vld [vmem:[%s9934_s5 + $0x630] ss:$28 sps:$4 sm:$0xff]   ;;  %v7596_v3 = vld [vmem:[%s9934_s5 + $0xb78] ss:$28 sps:$4 sm:$0xff]  }
 0x3f4   :  { %6653 = vmatprep.subr.bf16.mxu0 %v7535_v63  ;;  %v7599_v63 = vld [vmem:[%s9934_s5 + $0x66c] ss:$28 sps:$4 sm:$0xff]  }
 0x3f6   :  { %5011 = vmatpush1.bf16.msra.mxu1 %v7532_v0  ;;  %v7597_v0 = vld [vmem:[%s9934_s5 + $0x668] ss:$28 sps:$4 sm:$0xff]  }
 0x3f7   :  { %6654 = vmatpush3.bf16.msra.mxu0 %v7536_v2  ;;  %5021 = vmatprep.subr.bf16.mxu1 %v7539_v6  ;;  %v7600_v2 = vld [vmem:[%s9934_s5 + $0xbb0] ss:$28 sps:$4 sm:$0xff]   ;;  %v7603_v6 = vld [vmem:[%s9934_s5 + $0x6a4] ss:$28 sps:$4 sm:$0xff]  }
 0x3f8   :  { %6661 = vmatprep.subr.bf16.mxu0 %v7540_v12  ;;  %v7604_v12 = vld [vmem:[%s9934_s5 + $0xbe8] ss:$28 sps:$4 sm:$0xff]  }
 0x3f9   :  { %5013 = vmatmul.mubr.bf16.vlgmr.msra.gmra.mrb[20].mxu1 %v8664_v7  ;;  %v7550_v7 = vld [vmem:[%s9934_s5 + $0x948] ss:$28 sps:$4 sm:$0xff]  }
 0x3fa   :  { %5217 = vmatmul.mubr.bf16.vlgmr.msra.gmra.mrb[112].mxu0 %v8880_v32  ;;  %5022 = vmatpush1.bf16.msra.mxu1 %v7537_v8  ;;  %v7601_v8 = vld [vmem:[%s9934_s5 + $0x6a0] ss:$28 sps:$4 sm:$0xff]  }
 0x3fb   :  { %5053 = vmatprep.mubr.bf16.mxu1 %v8766_v43  ;;  %6662 = vmatpush3.bf16.msra.mxu0 %v7541_v14  ;;  %v7554_v43 = vld [vmem:[%s9934_s5 + $0x43c] ss:$28 sps:$4 sm:$0xff]  }
 0x3fc   :  { %5256 = vmatprep.mubr.bf16.mxu0 %v8885_v37  ;;  %5023 = vmatprep.subr.bf16.mxu1 %v7544_v15  ;;  %v7607_v14 = vld [vmem:[%s9934_s5 + $0x6dc] ss:$28 sps:$4 sm:$0xff]  }
 0x3fd   :  { %6663 = vmatprep.subr.bf16.mxu0 %v7545_v55  ;;  %v7605_v15 = vld [vmem:[%s9934_s5 + $0x6d8] ss:$28 sps:$4 sm:$0xff]   ;;  %v7608_v55 = vld [vmem:[%s9934_s5 + $0xc20] ss:$28 sps:$4 sm:$0xff]  }
 0x3fe   :  { %5024 = vmatpush1.bf16.msra.mxu1 %v7542_v56  ;;  %v7611_v56 = vld [vmem:[%s9934_s5 + $0x714] ss:$28 sps:$4 sm:$0xff]  }
 0x3ff   :  { %6664 = vmatpush3.bf16.msra.mxu0 %v7546_v17  ;;  %5025 = vmatprep.subr.bf16.mxu1 %v7549_v18  ;;  %v7654_v17 = vld [vmem:[%s9937_s7 + $0x40] sm:$0xff]   ;;  %v7609_v18 = vld [vmem:[%s9934_s5 + $0x710] ss:$28 sps:$4 sm:$0xff]  }
 0x400   :  { %6665 = vmatprep.subr.bf16.mxu0 %v7550_v7  ;;  %v7614_v7 = vld [vmem:[%s9934_s5 + $0x74c] ss:$28 sps:$4 sm:$0xff]  }
 0x402   :  { %5026 = vmatpush1.bf16.msra.mxu1 %v7547_v19  ;;  %v7658_v19 = vld [vmem:[%s9937_s7] sm:$0xff]  }
 0x403   :  { %6666 = vmatpush3.bf16.msra.mxu0 %v7551_v20  ;;  %5027 = vmatprep.subr.bf16.mxu1 %v7554_v43  ;;  %v7659_v20 = vld [vmem:[%s9937_s7 + $0x48] sm:$0xff]  }
 0x404   :  { %6667 = vmatprep.subr.bf16.mxu0 %v7555_v21  ;;  %v7612_v43 = vld [vmem:[%s9934_s5 + $0x748] ss:$28 sps:$4 sm:$0xff]  }
 0x405   :  { %v7617_v21 = vld [vmem:[%s9934_s5 + $0x784] ss:$28 sps:$4 sm:$0xff]  }
 0x406   :  { %5028 = vmatpush1.bf16.msra.mxu1 %v7552_v22  ;;  %v7664_v22 = vld [vmem:[%s9937_s7 + $0x50] sm:$0xff]  }
 0x407   :  { %6668 = vmatpush3.bf16.msra.mxu0 %v7556_v53  ;;  %5029 = vmatprep.subr.bf16.mxu1 %v7559_v23  ;;  %v7620_v53 = vld [vmem:[%s9934_s5 + $0x7bc] ss:$28 sps:$4 sm:$0xff]   ;;  %v7668_v23 = vld [vmem:[%s9937_s7 + $0x10] sm:$0xff]  }
 0x408   :  { %6669 = vmatprep.subr.bf16.mxu0 %v7560_v24  ;;  %v7669_v24 = vld [vmem:[%s9937_s7 + $0x58] sm:$0xff]  }
 0x40a   :  { %5030 = vmatpush1.bf16.msra.mxu1 %v7557_v27  ;;  %v7618_v27 = vld [vmem:[%s9934_s5 + $0x7b8] ss:$28 sps:$4 sm:$0xff]  }
 0x40b   :  { %6670 = vmatpush3.bf16.msra.mxu0 %v7561_v28  ;;  %5031 = vmatprep.subr.bf16.mxu1 %v7564_v29  ;;  %v7623_v28 = vld [vmem:[%s9934_s5 + $0x7f4] ss:$28 sps:$4 sm:$0xff]   ;;  %v7673_v29 = vld [vmem:[%s9937_s7 + $0x18] sm:$0xff]  }
 0x40c   :  { %6671 = vmatprep.subr.bf16.mxu0 %v7565_v30  ;;  %v7674_v30 = vld [vmem:[%s9937_s7 + $0x60] sm:$0xff]  }
 0x40e   :  { %5032 = vmatpush1.bf16.msra.mxu1 %v7562_v31  ;;  %v7621_v31 = vld [vmem:[%s9934_s5 + $0x7f0] ss:$28 sps:$4 sm:$0xff]  }
 0x40f   :  { %6672 = vmatpush3.bf16.msra.mxu0 %v7566_v33  ;;  %5033 = vmatprep.subr.bf16.mxu1 %v7569_v35  ;;  %v7626_v33 = vld [vmem:[%s9934_s5 + $0x82c] ss:$28 sps:$4 sm:$0xff]   ;;  %v7678_v35 = vld [vmem:[%s9937_s7 + $0x20] sm:$0xff]  }
 0x410   :  { %6673 = vmatprep.subr.bf16.mxu0 %v7570_v4  ;;  %v7679_v4 = vld [vmem:[%s9937_s7 + $0x68] sm:$0xff]  }
 0x412   :  { %5034 = vmatpush1.bf16.msra.mxu1 %v7567_v50  ;;  %v7624_v50 = vld [vmem:[%s9934_s5 + $0x828] ss:$28 sps:$4 sm:$0xff]  }
 0x413   :  { %6674 = vmatpush3.bf16.msra.mxu0 %v7571_v36  ;;  %5035 = vmatprep.subr.bf16.mxu1 %v7574_v38  ;;  %v7629_v36 = vld [vmem:[%s9934_s5 + $0x864] ss:$28 sps:$4 sm:$0xff]   ;;  %v7683_v38 = vld [vmem:[%s9937_s7 + $0x28] sm:$0xff]  }
 0x414   :  { %6675 = vmatprep.subr.bf16.mxu0 %v7575_v39  ;;  %v7684_v39 = vld [vmem:[%s9937_s7 + $0x70] sm:$0xff]  }
 0x416   :  { %5036 = vmatpush1.bf16.msra.mxu1 %v7572_v41  ;;  %v7627_v41 = vld [vmem:[%s9934_s5 + $0x860] ss:$28 sps:$4 sm:$0xff]  }
 0x417   :  { %6676 = vmatpush3.bf16.msra.mxu0 %v7576_v13  ;;  %5037 = vmatprep.subr.bf16.mxu1 %v7579_v10  ;;  %v7632_v13 = vld [vmem:[%s9934_s5 + $0x89c] ss:$28 sps:$4 sm:$0xff]   ;;  %v7688_v10 = vld [vmem:[%s9937_s7 + $0x30] sm:$0xff]  }
 0x418   :  { %6899 = vmatprep.subr.bf16.mxu0 %v7739_v5 }
 0x41a   :  { %5257 = vmatmul.mubr.bf16.vlgmr.msra.gmra.mrb[116].mxu0 %v9087_v34  ;;  %5038 = vmatpush1.bf16.msra.mxu1 %v7577_v42  ;;  %v7689_v42 = vld [vmem:[%s9937_s7 + $0x78] sm:$0xff]  }
 0x41b   :  { %6900 = vmatpush3.bf16.msra.mxu0 %v7580_v44  ;;  %5039 = vmatprep.subr.bf16.mxu1 %v7583_v11  ;;  %v7630_v44 = vld [vmem:[%s9934_s5 + $0x898] ss:$28 sps:$4 sm:$0xff]  }
 0x41c   :  { %6901 = vmatprep.subr.bf16.mxu0 %v7739_v5  ;;  %6915 = vmatprep.mubr.msk.bf16.mxu0 %vm7740_vm10, %v7739_v5  ;;  %v7635_v11 = vld [vmem:[%s9934_s5 + $0x8d4] ss:$28 sps:$4 sm:$0xff]  }
 0x41e   :  { %5040 = vmatpush1.bf16.msra.mxu1 %v7581_v45  ;;  %v7693_v45 = vld [vmem:[%s9937_s7 + $0x38] sm:$0xff]  }
 0x41f   :  { %6902 = vmatpush3.bf16.msra.mxu0 %v7584_v47  ;;  %5041 = vmatprep.subr.bf16.mxu1 %v7587_v52  ;;  %v7694_v47 = vld [vmem:[%s9937_s7 + $0xc0] sm:$0xff]   ;;  %v7633_v52 = vld [vmem:[%s9934_s5 + $0x8d0] ss:$28 sps:$4 sm:$0xff]  }
 0x420   :  { %6903 = vmatprep.subr.bf16.mxu0 %v7739_v5 }
 0x422   :  { %5042 = vmatpush1.bf16.msra.mxu1 %v7585_v57  ;;  %v7638_v57 = vld [vmem:[%s9934_s5 + $0x90c] ss:$28 sps:$4 sm:$0xff]  }
 0x423   :  { %6904 = vmatpush3.bf16.msra.mxu0 %v7588_v58  ;;  %5043 = vmatprep.subr.bf16.mxu1 %v7591_v59  ;;  %v7636_v58 = vld [vmem:[%s9934_s5 + $0x908] ss:$28 sps:$4 sm:$0xff]  }
 0x424   :  { %6905 = vmatprep.subr.bf16.mxu0 %v7739_v5  ;;  %v7641_v59 = vld [vmem:[%s9934_s5 + $0x944] ss:$28 sps:$4 sm:$0xff]  }
 0x426   :  { %5044 = vmatpush1.bf16.msra.mxu1 %v7589_v60  ;;  %v7639_v60 = vld [vmem:[%s9934_s5 + $0x940] ss:$28 sps:$4 sm:$0xff]  }
 0x427   :  { %6906 = vmatpush3.bf16.msra.mxu0 %v7592_v54  ;;  %5045 = vmatprep.subr.bf16.mxu1 %v7595_v61  ;;  %v7644_v54 = vld [vmem:[%s9934_s5 + $0x97c] ss:$28 sps:$4 sm:$0xff]  }
 0x428   :  { %6907 = vmatprep.subr.bf16.mxu0 %v7739_v5  ;;  %v7642_v61 = vld [vmem:[%s9934_s5 + $0x978] ss:$28 sps:$4 sm:$0xff]  }
 0x42a   :  { %5046 = vmatpush1.bf16.msra.mxu1 %v7593_v62  ;;  %v7647_v62 = vld [vmem:[%s9934_s5 + $0x9b4] ss:$28 sps:$4 sm:$0xff]  }
 0x42b   :  { %6908 = vmatpush3.bf16.msra.mxu0 %v7596_v3  ;;  %5047 = vmatprep.subr.bf16.mxu1 %v7599_v63  ;;  %v7645_v3 = vld [vmem:[%s9934_s5 + $0x9b0] ss:$28 sps:$4 sm:$0xff]  }
 0x42c   :  { %6909 = vmatprep.subr.bf16.mxu0 %v7739_v5  ;;  %v7650_v63 = vld [vmem:[%s9934_s5 + $0x9ec] ss:$28 sps:$4 sm:$0xff]  }
 0x42e   :  { %5048 = vmatpush1.bf16.msra.mxu1 %v7597_v0  ;;  %v7648_v0 = vld [vmem:[%s9934_s5 + $0x9e8] ss:$28 sps:$4 sm:$0xff]  }
 0x42f   :  { %6910 = vmatpush3.bf16.msra.mxu0 %v7600_v2  ;;  %5049 = vmatprep.subr.bf16.mxu1 %v7603_v6  ;;  %v7653_v2 = vld [vmem:[%s9934_s5 + $0xa24] ss:$28 sps:$4 sm:$0xff]  }
 0x430   :  { %6911 = vmatprep.subr.bf16.mxu0 %v7739_v5  ;;  %v7651_v6 = vld [vmem:[%s9934_s5 + $0xa20] ss:$28 sps:$4 sm:$0xff]  }
 0x432   :  { %5050 = vmatpush1.bf16.msra.mxu1 %v7601_v8  ;;  %v7657_v8 = vld [vmem:[%s9934_s5 + $0xa5c] ss:$28 sps:$4 sm:$0xff]  }
 0x433   :  { %6912 = vmatpush3.bf16.msra.mxu0 %v7604_v12  ;;  %5051 = vmatprep.subr.bf16.mxu1 %v7607_v14  ;;  %v7655_v12 = vld [vmem:[%s9934_s5 + $0xa58] ss:$28 sps:$4 sm:$0xff]  }
 0x434   :  { %6913 = vmatprep.subr.bf16.mxu0 %v7739_v5  ;;  %v7662_v14 = vld [vmem:[%s9934_s5 + $0xa94] ss:$28 sps:$4 sm:$0xff]  }
 0x436   :  { %5052 = vmatpush1.bf16.msra.mxu1 %v7605_v15  ;;  %v7660_v15 = vld [vmem:[%s9934_s5 + $0xa90] ss:$28 sps:$4 sm:$0xff]  }
 0x437   :  { %6914 = vmatpush3.bf16.msra.mxu0 %v7608_v55  ;;  %5062 = vmatprep.subr.bf16.mxu1 %v7611_v56  ;;  %v7667_v55 = vld [vmem:[%s9934_s5 + $0xacc] ss:$28 sps:$4 sm:$0xff]  }
 0x438   :  { %6692 = vmatprep.subr.bf16.mxu0 %v7654_v17  ;;  %v7665_v56 = vld [vmem:[%s9934_s5 + $0xac8] ss:$28 sps:$4 sm:$0xff]  }
 0x439   :  { %5054 = vmatmul.mubr.bf16.vlgmr.msra.gmra.mrb[20].mxu1 %v8880_v32  ;;  %v7663_v32 = vld [vmem:[%s9937_s7 + $0x8] sm:$0xff]   ;;  %v7672_v17 = vld [vmem:[%s9934_s5 + $0xb04] ss:$28 sps:$4 sm:$0xff]  }
 0x43a   :  { %6916 = vmatmul.mubr.bf16.vlgmr.msra.gmra.mrb[120].mxu0 %v9194_v46  ;;  %5063 = vmatpush1.bf16.msra.mxu1 %v7609_v18  ;;  %v7670_v18 = vld [vmem:[%s9934_s5 + $0xb00] ss:$28 sps:$4 sm:$0xff]  }
 0x43b   :  { %5094 = vmatprep.mubr.bf16.mxu1 %v8885_v37  ;;  %5064 = vmatprep.subr.bf16.mxu1 %v7614_v7  ;;  %v7615_v37 = vld [vmem:[%s9934_s5 + $0x780] ss:$28 sps:$4 sm:$0xff]   ;;  %v7682_v7 = vld [vmem:[%s9934_s5 + $0xb74] ss:$28 sps:$4 sm:$0xff]  }
 0x43c   :  { %6693 = vmatpush3.bf16.msra.mxu0 %v7658_v19  ;;  %v7680_v19 = vld [vmem:[%s9934_s5 + $0xb70] ss:$28 sps:$4 sm:$0xff]  }
 0x43d   :  { %6694 = vmatprep.subr.bf16.mxu0 %v7659_v20  ;;  %v9753_v20 = vld [vmem:[%s9938_s6] sm:$0xff] }
 0x43e   :  { %5065 = vmatpush1.bf16.msra.mxu1 %v7612_v43  ;;  %v7687_v43 = vld [vmem:[%s9934_s5 + $0xbac] ss:$28 sps:$4 sm:$0xff]  }
 0x43f   :  { %5066 = vmatprep.subr.bf16.mxu1 %v7617_v21  ;;  %v2604_v21 = vrot.slane %v9753_v20, %v1653_v49 }
 0x440   :  { %6695 = vmatpush3.bf16.msra.mxu0 %v7663_v32  ;;  %v2608_v32 = vrot.slane %v9753_v20, %v1657_v51 }
 0x441   :  { %6696 = vmatprep.subr.bf16.mxu0 %v7664_v22  ;;  %v7685_v22 = vld [vmem:[%s9934_s5 + $0xba8] ss:$28 sps:$4 sm:$0xff]  }
 0x442   :  { %5067 = vmatpush1.bf16.msra.mxu1 %v7615_v37  ;;  %v2616_v37 = vrot.slane %v9753_v20, %v1665_v26 }
 0x443   :  { %5068 = vmatprep.subr.bf16.mxu1 %v7620_v53  ;;  %v7692_v53 = vld [vmem:[%s9934_s5 + $0xbe4] ss:$28 sps:$4 sm:$0xff]  }
 0x444   :  { %6697 = vmatpush3.bf16.msra.mxu0 %v7668_v23 }
 0x445   :  { %6698 = vmatprep.subr.bf16.mxu0 %v7669_v24 }
 0x446   :  { %5069 = vmatpush1.bf16.msra.mxu1 %v7618_v27 }
 0x447   :  { %5070 = vmatprep.subr.bf16.mxu1 %v7623_v28 }
 0x448   :  { %6699 = vmatpush3.bf16.msra.mxu0 %v7673_v29 }
 0x449   :  { %6700 = vmatprep.subr.bf16.mxu0 %v7674_v30  ;;  %v7690_v30 = vld [vmem:[%s9934_s5 + $0xbe0] ss:$28 sps:$4 sm:$0xff]  }
 0x44a   :  { %5071 = vmatpush1.bf16.msra.mxu1 %v7621_v31 }
 0x44b   :  { %5072 = vmatprep.subr.bf16.mxu1 %v7626_v33 }
 0x44c   :  { %6701 = vmatpush3.bf16.msra.mxu0 %v7678_v35 }
 0x44d   :  { %6702 = vmatprep.subr.bf16.mxu0 %v7679_v4  ;;  %v7697_v4 = vld [vmem:[%s9934_s5 + $0xc1c] ss:$28 sps:$4 sm:$0xff]  }
 0x44e   :  { %5073 = vmatpush1.bf16.msra.mxu1 %v7624_v50 }
 0x44f   :  { %5074 = vmatprep.subr.bf16.mxu1 %v7629_v36 }
 0x450   :  { %6703 = vmatpush3.bf16.msra.mxu0 %v7683_v38 }
 0x451   :  { %6704 = vmatprep.subr.bf16.mxu0 %v7684_v39 }
 0x452   :  { %5075 = vmatpush1.bf16.msra.mxu1 %v7627_v41  ;;  %v7695_v41 = vld [vmem:[%s9934_s5 + $0xc18] ss:$28 sps:$4 sm:$0xff]  }
 0x453   :  { %5076 = vmatprep.subr.bf16.mxu1 %v7632_v13  ;;  %v7698_v13 = vld [vmem:[%s9937_s7 + $0x80] sm:$0xff]  }
 0x454   :  { %6705 = vmatpush3.bf16.msra.mxu0 %v7688_v10 }
 0x455   :  { %6706 = vmatprep.subr.bf16.mxu0 %v7689_v42  ;;  %v7699_v42 = vld [vmem:[%s9937_s7 + $0xc8] sm:$0xff]  }
 0x456   :  { %5077 = vmatpush1.bf16.msra.mxu1 %v7630_v44 }
 0x457   :  { %5078 = vmatprep.subr.bf16.mxu1 %v7635_v11  ;;  %v7700_v11 = vld [vmem:[%s9937_s7 + $0x88] sm:$0xff]  }
 0x458   :  { %6707 = vmatpush3.bf16.msra.mxu0 %v7693_v45  ;;  %v7713_v45 = vld [vmem:[%s9937_s7 + $0x180] sm:$0xff]  }
 0x459   :  { %6714 = vmatprep.subr.bf16.mxu0 %v7694_v47  ;;  %v7701_v47 = vld [vmem:[%s9937_s7 + $0xd0] sm:$0xff]  }
 0x45a   :  { %5079 = vmatpush1.bf16.msra.mxu1 %v7633_v52  ;;  %v7702_v52 = vld [vmem:[%s9937_s7 + $0x90] sm:$0xff]  }
 0x45b   :  { %5080 = vmatprep.subr.bf16.mxu1 %v7638_v57  ;;  %v7714_v57 = vld [vmem:[%s9937_s7 + $0x188] sm:$0xff]  }
 0x45e   :  { %5081 = vmatpush1.bf16.msra.mxu1 %v7636_v58  ;;  %v7703_v58 = vld [vmem:[%s9937_s7 + $0xd8] sm:$0xff]  }
 0x45f   :  { %5082 = vmatprep.subr.bf16.mxu1 %v7641_v59  ;;  %v7715_v59 = vld [vmem:[%s9937_s7 + $0x190] sm:$0xff]  }
 0x462   :  { %5083 = vmatpush1.bf16.msra.mxu1 %v7639_v60  ;;  %v7705_v60 = vld [vmem:[%s9937_s7 + $0xe0] sm:$0xff]  }
 0x463   :  { %5084 = vmatprep.subr.bf16.mxu1 %v7644_v54  ;;  %v7706_v54 = vld [vmem:[%s9937_s7 + $0xa0] sm:$0xff]  }
 0x466   :  { %5085 = vmatpush1.bf16.msra.mxu1 %v7642_v61  ;;  %v7716_v61 = vld [vmem:[%s9937_s7 + $0x198] sm:$0xff]  }
 0x467   :  { %5086 = vmatprep.subr.bf16.mxu1 %v7647_v62  ;;  %v7707_v62 = vld [vmem:[%s9937_s7 + $0xe8] sm:$0xff]  }
 0x46a   :  { %5087 = vmatpush1.bf16.msra.mxu1 %v7645_v3  ;;  %v7708_v3 = vld [vmem:[%s9937_s7 + $0xa8] sm:$0xff]  }
 0x46b   :  { %5088 = vmatprep.subr.bf16.mxu1 %v7650_v63  ;;  %v7717_v63 = vld [vmem:[%s9937_s7 + $0x1a0] sm:$0xff]  }
 0x46e   :  { %5089 = vmatpush1.bf16.msra.mxu1 %v7648_v0  ;;  %v2612_v0 = vrot.slane %v9753_v20, %v1661_v9  ;;  %v7711_v9 = vld [vmem:[%s9937_s7 + $0xf8] sm:$0xff]  }
 0x46f   :  { %5090 = vmatprep.subr.bf16.mxu1 %v7653_v2  ;;  %v7709_v2 = vld [vmem:[%s9937_s7 + $0xf0] sm:$0xff]  }
 0x472   :  { %5091 = vmatpush1.bf16.msra.mxu1 %v7651_v6  ;;  %v7710_v6 = vld [vmem:[%s9937_s7 + $0xb0] sm:$0xff]  }
 0x473   :  { %5092 = vmatprep.subr.bf16.mxu1 %v7657_v8  ;;  %v7718_v8 = vld [vmem:[%s9937_s7 + $0x1a8] sm:$0xff]  }
 0x476   :  { %5093 = vmatpush1.bf16.msra.mxu1 %v7655_v12 }
 0x477   :  { %5103 = vmatprep.subr.bf16.mxu1 %v7662_v14 }
 0x479   :  { %5095 = vmatmul.mubr.bf16.vlgmr.msra.gmra.mrb[20].mxu1 %v9087_v34  ;;  %v7677_v34 = vld [vmem:[%s9934_s5 + $0xb3c] ss:$28 sps:$4 sm:$0xff]  }
 0x47a   :  { %5104 = vmatpush1.bf16.msra.mxu1 %v7660_v15  ;;  %5135 = vmatprep.mubr.bf16.mxu1 %v7737_v1  ;;  %v7675_v1 = vld [vmem:[%s9934_s5 + $0xb38] ss:$28 sps:$4 sm:$0xff]  }
 0x47b   :  { %5105 = vmatprep.subr.bf16.mxu1 %v7667_v55  ;;  %v7712_v55 = vld [vmem:[%s9937_s7 + $0xb8] sm:$0xff]  }
 0x47e   :  { %5106 = vmatpush1.bf16.msra.mxu1 %v7665_v56  ;;  %v7719_v56 = vld [vmem:[%s9937_s7 + $0x1b0] sm:$0xff]  }
 0x47f   :  { %5107 = vmatprep.subr.bf16.mxu1 %v7672_v17 }
 0x482   :  { %5108 = vmatpush1.bf16.msra.mxu1 %v7670_v18 }
 0x483   :  { %5109 = vmatprep.subr.bf16.mxu1 %v7677_v34 }
 0x486   :  { %5110 = vmatpush1.bf16.msra.mxu1 %v7675_v1  ;;  %v7721_v1 = vld [vmem:[%s9937_s7 + $0x140] sm:$0xff]  }
 0x487   :  { %5111 = vmatprep.subr.bf16.mxu1 %v7682_v7 }
 0x48a   :  { %5112 = vmatpush1.bf16.msra.mxu1 %v7680_v19  ;;  %v7720_v19 = vld [vmem:[%s9937_s7 + $0x1b8] sm:$0xff]  }
 0x48b   :  { %5113 = vmatprep.subr.bf16.mxu1 %v7687_v43  ;;  %v7722_v43 = vld [vmem:[%s9937_s7 + $0x100] sm:$0xff]  }
 0x48c   :  { %v4809_v23 = vpop.f32.mrb[16].mxu1 }
 0x48d   :  { %v6939_v49 = vadd.f32 %v4809_v23, %v2604_v21  ;;  %v9773_v24 = vpop.f32.mrb[104].mxu0  ;;  %v4811_v27 = vpop.f32.mrb[17].mxu1  ;;  %v7728_v23 = vld [vmem:[%s9937_s7 + $0x118] sm:$0xff]  }
 0x48e   :  { %v6940_v28 = vadd.f32 %v4811_v27, %v2608_v32  ;;  %v4975_v51 = vpop.f32.mrb[105].mxu0  ;;  %v4813_v29 = vpop.f32.mrb[18].mxu1  ;;  %5114 = vmatpush1.bf16.msra.mxu1 %v7685_v22  ;;  %v6941_v12 = vadd.f32 %v9773_v24, %v2612_v0  ;;  %v7723_v32 = vld [vmem:[%s9937_s7 + $0x148] sm:$0xff]   ;;  %v7730_v24 = vld [vmem:[%s9937_s7 + $0x120] sm:$0xff]   ;;  %v2628_v27 = vrot.slane %v9753_v20, %v1677_v25  ;;  %v7733_v25 = vld [vmem:[%s9937_s7 + $0x170] sm:$0xff]  }
 0x48f   :  { %v5304_v31 = vmax.f32 %v6939_v49, 0.0  ;;  %v6942_v26 = vadd.f32 %v4975_v51, %v2616_v37  ;;  %v4977_v33 = vpop.f32.mrb[106].mxu0  ;;  %v4814_v35 = vpop.f32.mrb[19].mxu1  ;;  %5115 = vmatprep.subr.bf16.mxu1 %v7692_v53  ;;  %v7724_v22 = vld [vmem:[%s9937_s7 + $0x108] sm:$0xff]   ;;  %v7725_v37 = vld [vmem:[%s9937_s7 + $0x150] sm:$0xff]   ;;  %v7727_v53 = vld [vmem:[%s9937_s7 + $0x158] sm:$0xff]  }
 0x490   :  { %v5305_v50 = vmax.f32 %v6940_v28, 0.0  ;;  %v4978_v36 = vpop.f32.mrb[107].mxu0  ;;  %v5306_v17 = vmax.f32 %v6941_v12, 0.0  ;;  %v7729_v49 = vld [vmem:[%s9937_s7 + $0x160] sm:$0xff]   ;;  %v7731_v35 = vld [vmem:[%s9937_s7 + $0x168] sm:$0xff]  }
 0x491   :  { %v5307_v38 = vmax.f32 %v6942_v26, 0.0  ;;  %v5311_v10 = vpack.c.bf16 %v5304_v31, %v5304_v31 }
 0x492   :  { %v5312_v39 = vpack.c.bf16 %v5305_v50, %v5305_v50  ;;  %5116 = vmatpush1.bf16.msra.mxu1 %v7690_v30  ;;  %v5313_v21 = vpack.c.bf16 %v5306_v17, %v5306_v17 }
 0x493   :  { %5117 = vmatprep.subr.bf16.mxu1 %v7697_v4  ;;  %v5314_v44 = vpack.c.bf16 %v5307_v38, %v5307_v38  ;;  %v7732_v4 = vld [vmem:[%s9937_s7 + $0x128] sm:$0xff]   ;;  %v7734_v38 = vld [vmem:[%s9937_s7 + $0x130] sm:$0xff]  }
 0x494   :  { %5805 = vmatprep.mubr.bf16.mxu0 %v5312_v39 }
 0x495   :  { %5806 = vmatmul.mubr.bf16.vlgmr.msra.gmra.mrb[124].mxu0 %v5311_v10 }
 0x496   :  { %6715 = vmatpush3.bf16.msra.mxu0 %v7698_v13  ;;  %5118 = vmatpush1.bf16.msra.mxu1 %v7695_v41 }
 0x497   :  { %5845 = vmatprep.mubr.bf16.mxu0 %v5314_v44  ;;  %6716 = vmatprep.subr.bf16.mxu0 %v7699_v42  ;;  %v7735_v42 = vld [vmem:[%s9937_s7 + $0x178] sm:$0xff]  }
 0x498   :  { %6919 = vmatprep.subr.bf16.mxu1 %v7739_v5  ;;  %v7736_v44 = vld [vmem:[%s9937_s7 + $0x138] sm:$0xff]  }
 0x499   :  { %5136 = vmatmul.mubr.bf16.vlgmr.msra.gmra.mrb[20].mxu1 %v9194_v46  ;;  %v7704_v46 = vld [vmem:[%s9937_s7 + $0x98] sm:$0xff]  }
 0x49a   :  { %6717 = vmatpush3.bf16.msra.mxu0 %v7700_v11  ;;  %6920 = vmatpush3.bf16.msra.mxu1 %v7713_v45 }
 0x49b   :  { %6718 = vmatprep.subr.bf16.mxu0 %v7701_v47  ;;  %6921 = vmatprep.subr.bf16.mxu1 %v7739_v5 }
 0x49c   :  { %6935 = vmatprep.mubr.msk.bf16.mxu1 %vm7740_vm10, %v7739_v5 }
 0x49e   :  { %6719 = vmatpush3.bf16.msra.mxu0 %v7702_v52  ;;  %6922 = vmatpush3.bf16.msra.mxu1 %v7714_v57 }
 0x49f   :  { %6720 = vmatprep.subr.bf16.mxu0 %v7703_v58  ;;  %6923 = vmatprep.subr.bf16.mxu1 %v7739_v5 }
 0x4a2   :  { %6721 = vmatpush3.bf16.msra.mxu0 %v7704_v46  ;;  %6924 = vmatpush3.bf16.msra.mxu1 %v7715_v59 }
 0x4a3   :  { %6722 = vmatprep.subr.bf16.mxu0 %v7705_v60  ;;  %6925 = vmatprep.subr.bf16.mxu1 %v7739_v5 }
 0x4a6   :  { %6723 = vmatpush3.bf16.msra.mxu0 %v7706_v54  ;;  %6926 = vmatpush3.bf16.msra.mxu1 %v7716_v61  ;;  %v2620_v54 = vrot.slane %v9753_v20, %v1669_v40  ;;  %v6495_v40 = vld [vmem:[%s9939_s8] ss:$0 sm:$0xff] }
 0x4a7   :  { %6724 = vmatprep.subr.bf16.mxu0 %v7707_v62  ;;  %6927 = vmatprep.subr.bf16.mxu1 %v7739_v5 }
 0x4aa   :  { %6725 = vmatpush3.bf16.msra.mxu0 %v7708_v3  ;;  %6928 = vmatpush3.bf16.msra.mxu1 %v7717_v63  ;;  %v2624_v3 = vrot.slane %v9753_v20, %v1673_v16 }
 0x4ab   :  { %6726 = vmatprep.subr.bf16.mxu0 %v7709_v2  ;;  %6929 = vmatprep.subr.bf16.mxu1 %v7739_v5 }
 0x4ad   :  { %v6633_v14 = vpop.f32.mrb[108].mxu0 }
 0x4ae   :  { %v6634_v15 = vpop.f32.mrb[109].mxu0  ;;  %6727 = vmatpush3.bf16.msra.mxu0 %v7710_v6  ;;  %6930 = vmatpush3.bf16.msra.mxu1 %v7718_v8 }
 0x4af   :  { %v6635_v18 = vadd.f32 %v6634_v15, %v6633_v14  ;;  %v6636_v34 = vpop.f32.mrb[110].mxu0  ;;  %6728 = vmatprep.subr.bf16.mxu0 %v7711_v9  ;;  %6931 = vmatprep.subr.bf16.mxu1 %v7739_v5 }
 0x4b0   :  { %v6637_v7 = vpop.f32.mrb[111].mxu0 }
 0x4b1   :  { %v5179_v29 = vadd.f32 %v6635_v18, %v2628_v27 }
 0x4b2   :  { %6729 = vmatpush3.bf16.msra.mxu0 %v7712_v55  ;;  %6932 = vmatpush3.bf16.msra.mxu1 %v7719_v56 }
 0x4b3   :  { %6933 = vmatprep.subr.bf16.mxu1 %v7739_v5  ;;  %6736 = vmatprep.subr.bf16.mxu0 %v7721_v1  ;;  %v7726_v5 = vld [vmem:[%s9937_s7 + $0x110] sm:$0xff]  }
 0x4b5   :  { %5846 = vmatmul.mubr.bf16.vlgmr.msra.gmra.mrb[128].mxu0 %v5313_v21 }
 0x4b6   :  { %6934 = vmatpush3.bf16.msra.mxu1 %v7720_v19  ;;  %6737 = vmatpush3.bf16.msra.mxu0 %v7722_v43 }
 0x4b7   :  { %6738 = vmatprep.subr.bf16.mxu0 %v7723_v32 }
 0x4ba   :  { %6739 = vmatpush3.bf16.msra.mxu0 %v7724_v22 }
 0x4bb   :  { %6740 = vmatprep.subr.bf16.mxu0 %v7725_v37 }
 0x4be   :  { %6741 = vmatpush3.bf16.msra.mxu0 %v7726_v5 }
 0x4bf   :  { %6742 = vmatprep.subr.bf16.mxu0 %v7727_v53 }
 0x4c2   :  { %6743 = vmatpush3.bf16.msra.mxu0 %v7728_v23 }
 0x4c3   :  { %6744 = vmatprep.subr.bf16.mxu0 %v7729_v49 }
 0x4c6   :  { %6745 = vmatpush3.bf16.msra.mxu0 %v7730_v24 }
 0x4c7   :  { %6746 = vmatprep.subr.bf16.mxu0 %v7731_v35 }
 0x4ca   :  { %6747 = vmatpush3.bf16.msra.mxu0 %v7732_v4 }
 0x4cb   :  { %6748 = vmatprep.subr.bf16.mxu0 %v7733_v25 }
 0x4cd   :  { %v6655_v28 = vpop.f32.mrb[112].mxu0 }
 0x4ce   :  { %v6656_v51 = vpop.f32.mrb[113].mxu0  ;;  %6749 = vmatpush3.bf16.msra.mxu0 %v7734_v38 }
 0x4cf   :  { %v6657_v30 = vadd.f32 %v6656_v51, %v6655_v28  ;;  %v6658_v31 = vpop.f32.mrb[114].mxu0  ;;  %6750 = vmatprep.subr.bf16.mxu0 %v7735_v42 }
 0x4d0   :  { %v6659_v26 = vpop.f32.mrb[115].mxu0 }
 0x4d1   :  { %v5219_v33 = vadd.f32 %v6657_v30, %v5179_v29 }
 0x4d2   :  { %6751 = vmatpush3.bf16.msra.mxu0 %v7736_v44 }
 0x4ed   :  { %v6677_v50 = vpop.f32.mrb[116].mxu0 }
 0x4ee   :  { %v6678_v36 = vpop.f32.mrb[117].mxu0 }
 0x4ef   :  { %v6679_v39 = vadd.f32 %v6678_v36, %v6677_v50  ;;  %v6680_v41 = vpop.f32.mrb[118].mxu0 }
 0x4f0   :  { %v6681_v13 = vpop.f32.mrb[119].mxu0 }
 0x4f1   :  { %v5259_v10 = vadd.f32 %v6679_v39, %v5219_v33 }
 0x50d   :  { %v5298_v11 = vpop.f32.mrb[120].mxu0 }
 0x50e   :  { %v5299_v45 = vadd.f32 %v5298_v11, %v5259_v10  ;;  %v6917_v47 = vpop.f32.mrb[121].mxu0 }
 0x50f   :  { %v5301_v52 = vpop.f32.mrb[122].mxu0 }
 0x510   :  { %v5310_v57 = vmax.f32 %v5299_v45, 0.0  ;;  %v6918_v58 = vpop.f32.mrb[123].mxu0 }
 0x512   :  { %v5317_v46 = vpack.c.bf16 %v5310_v57, %v5310_v57 }
 0x514   :  { %6936 = vmatmul.mubr.bf16.vlgmr.msra.gmra.mrb[24].mxu1 %v5317_v46 }
 0x568   :  { %v6708_v59 = vpop.f32.mrb[124].mxu0 }
 0x569   :  { %v6709_v60 = vpop.f32.mrb[125].mxu0 }
 0x56a   :  { %v6710_v61 = vadd.f32 %v6709_v60, %v6708_v59  ;;  %v6711_v62 = vpop.f32.mrb[126].mxu0 }
 0x56b   :  { %v6712_v63 = vpop.f32.mrb[127].mxu0 }
 0x56c   :  { %v5137_v0 = vpop.f32.mrb[20].mxu1  ;;  %v5808_v16 = vadd.f32 %v6710_v61, %v6495_v40 }
 0x56d   :  { %v6943_v2 = vadd.f32 %v5137_v0, %v2620_v54  ;;  %v5139_v6 = vpop.f32.mrb[21].mxu1 }
 0x56e   :  { %v6944_v8 = vadd.f32 %v5139_v6, %v2624_v3  ;;  %v5141_v12 = vpop.f32.mrb[22].mxu1 }
 0x56f   :  { %v5308_v9 = vmax.f32 %v6943_v2, 0.0  ;;  %v5142_v14 = vpop.f32.mrb[23].mxu1 }
 0x570   :  { %v5309_v15 = vmax.f32 %v6944_v8, 0.0 }
 0x571   :  { %v5315_v56 = vpack.c.bf16 %v5308_v9, %v5308_v9 }
 0x572   :  { %v5316_v55 = vpack.c.bf16 %v5309_v15, %v5309_v15 }
 0x574   :  { %5885 = vmatprep.mubr.bf16.mxu0 %v5316_v55 }
 0x575   :  { %5886 = vmatmul.mubr.bf16.vlgmr.msra.gmra.mrb[132].mxu0 %v5315_v56 }
 0x588   :  { %v6730_v48 = vpop.f32.mrb[128].mxu0 }
 0x589   :  { %v6731_v17 = vpop.f32.mrb[129].mxu0 }
 0x58a   :  { %v6732_v20 = vadd.f32 %v6731_v17, %v6730_v48  ;;  %v6733_v18 = vpop.f32.mrb[130].mxu0 }
 0x58b   :  { %v6734_v34 = vpop.f32.mrb[131].mxu0 }
 0x58c   :  { %v5848_v1 = vadd.f32 %v6732_v20, %v5808_v16 }
 0x5e7   :  { %v5927_v7 = vpop.f32.mrb[24].mxu1 }
 0x5e8   :  { %v6937_v19 = vpop.f32.mrb[25].mxu1 }
 0x5e9   :  { %v5930_v43 = vpop.f32.mrb[26].mxu1 }
 0x5ea   :  { %v6938_v21 = vpop.f32.mrb[27].mxu1 }
 0x648   :  { %v6752_v32 = vpop.f32.mrb[132].mxu0 }
 0x649   :  { %v6753_v22 = vpop.f32.mrb[133].mxu0 }
 0x64a   :  { %v6754_v37 = vadd.f32 %v6753_v22, %v6752_v32  ;;  %v6755_v5 = vpop.f32.mrb[134].mxu0 }
 0x64b   :  { %v6756_v53 = vpop.f32.mrb[135].mxu0 }
 0x64c   :  { %v5888_v23 = vadd.f32 %v6754_v37, %v5848_v1 }
 0x64e   :  { %v5928_v49 = vadd.f32 %v5927_v7, %v5888_v23 }
 0x650   :  { %5933 = vst [vmem:[%s9940_s9] sm:$0xff] %v5928_v49 }

</bundles_post_ra>
